<compile_context>
chip_gen: v7x
topology: tpu7x:2x2x1
jax: 0.10.0
libtpu: 0.0.40
codegen_flags: <defaults>
</compile_context>

<pallas_src>
import functools
import math

import jax
import jax.numpy as jnp
from jax.experimental import pallas as pl
from jax.experimental.pallas import tpu as pltpu

EPS = 1e-5


# ----------------------------- Pallas kernels -----------------------------

def _convbn_kernel(w_ref, x_ref, b_ref, o_ref, *, relu):
    # out^T = W_folded @ patches^T + bias, optional ReLU.  bf16 operands, f32 accumulate.
    acc = jnp.dot(w_ref[...], x_ref[...], preferred_element_type=jnp.float32)
    acc = acc + b_ref[...]
    if relu:
        acc = jnp.maximum(acc, 0.0)
    o_ref[...] = acc


def _convbn_add_kernel(w_ref, x_ref, b_ref, r_ref, o_ref):
    # convBN2 + identity-shortcut residual add + ReLU (EltwiseAdd(relu=True))
    acc = jnp.dot(w_ref[...], x_ref[...], preferred_element_type=jnp.float32)
    o_ref[...] = jnp.maximum(acc + b_ref[...] + r_ref[...], 0.0)


def _convbn_proj_add_kernel(w_ref, x_ref, b_ref, ws_ref, xs_ref, bs_ref, o_ref):
    # convBN2 fused with the 1x1 projection-shortcut convBN, residual add + ReLU
    acc = jnp.dot(w_ref[...], x_ref[...], preferred_element_type=jnp.float32)
    sc = jnp.dot(ws_ref[...], xs_ref[...], preferred_element_type=jnp.float32)
    o_ref[...] = jnp.maximum(acc + b_ref[...] + sc + bs_ref[...], 0.0)


def _pool_fc_kernel(x_ref, w_ref, b_ref, o_ref, *, inv_divisor):
    # global avg-pool (with divisor_override) + fully-connected, transposed output (nc, N)
    pooled = jnp.sum(x_ref[...], axis=2) * inv_divisor            # (C, N)
    o_ref[...] = jnp.dot(w_ref[...], pooled,
                         preferred_element_type=jnp.float32) + b_ref[...]


# ----------------------------- Pallas wrappers -----------------------------

def _pick_tm(M, K):
    """Column-tile (lane) size: whole layer, or half of it so v7x's 2 TCs both get work.
    Guarded so a tile never grows past a few MiB of VMEM if batch/shape scales up."""
    tm = M
    if M >= 256 and M % 256 == 0:
        tm = M // 2
    while tm % 256 == 0 and tm > 256 and tm * K * 2 > (4 << 20):
        tm //= 2
    return tm


def conv_matmul_t(w, x, b, *, relu, residual=None, ws=None, xs=None, bs=None):
    """out^T (Cout, M) = relu?( w @ x + b (+ residual | + ws @ xs + bs) ), tiled over M columns."""
    cout, K = w.shape
    _, M = x.shape
    tm = _pick_tm(M, K)
    grid = (M // tm,)

    w_spec = pl.BlockSpec((cout, K), lambda i: (0, 0))
    x_spec = pl.BlockSpec((K, tm), lambda i: (0, i))
    b_spec = pl.BlockSpec((cout, 1), lambda i: (0, 0))
    o_spec = pl.BlockSpec((cout, tm), lambda i: (0, i))
    out_shape = jax.ShapeDtypeStruct((cout, M), jnp.float32)
    cparams = pltpu.CompilerParams(dimension_semantics=("parallel",))

    if ws is not None:
        ks = ws.shape[1]
        return pl.pallas_call(
            _convbn_proj_add_kernel, out_shape=out_shape, grid=grid,
            in_specs=[w_spec, x_spec, b_spec,
                      pl.BlockSpec((cout, ks), lambda i: (0, 0)),
                      pl.BlockSpec((ks, tm), lambda i: (0, i)),
                      b_spec],
            out_specs=o_spec, compiler_params=cparams,
        )(w, x, b, ws, xs, bs)

    if residual is not None:
        r_spec = pl.BlockSpec((cout, tm), lambda i: (0, i))
        return pl.pallas_call(
            _convbn_add_kernel, out_shape=out_shape, grid=grid,
            in_specs=[w_spec, x_spec, b_spec, r_spec],
            out_specs=o_spec, compiler_params=cparams,
        )(w, x, b, residual)

    kern = functools.partial(_convbn_kernel, relu=relu)
    return pl.pallas_call(
        kern, out_shape=out_shape, grid=grid,
        in_specs=[w_spec, x_spec, b_spec],
        out_specs=o_spec, compiler_params=cparams,
    )(w, x, b)


def avgpool_fc(a_cnhw, w_fc, b_fc, divisor):
    """AvgPool2d(kernel=H, divisor_override) -> flatten -> Linear, fused in one tiny kernel."""
    C, N, H, W = a_cnhw.shape
    nc = w_fc.shape[0]
    x3 = a_cnhw.reshape(C, N, H * W)
    kern = functools.partial(_pool_fc_kernel, inv_divisor=1.0 / float(divisor))
    out_t = pl.pallas_call(
        kern,
        out_shape=jax.ShapeDtypeStruct((nc, N), jnp.float32),
        grid=(1,),
        in_specs=[pl.BlockSpec((C, N, H * W), lambda i: (0, 0, 0)),
                  pl.BlockSpec((nc, C), lambda i: (0, 0)),
                  pl.BlockSpec((nc, 1), lambda i: (0, 0))],
        out_specs=pl.BlockSpec((nc, N), lambda i: (0, 0)),
    )(x3, w_fc, b_fc.reshape(nc, 1))
    return out_t.T                                   # (N, num_classes)


# ----------------------------- glue: im2col + param folding -----------------------------

def _pad_k(k):
    return ((k + 15) // 16) * 16                     # bf16 sublane alignment


def im2col_t(a_cnhw, kh, kw, stride, pad):
    """Transposed im2col: (C,N,H,W) -> (K, N*Ho*Wo) in bf16, K ordered (kh, kw, cin)."""
    C, N, H, W = a_cnhw.shape
    ap = jnp.pad(a_cnhw, ((0, 0), (0, 0), (pad, pad), (pad, pad)))
    Ho = (H + 2 * pad - kh) // stride + 1
    Wo = (W + 2 * pad - kw) // stride + 1
    cols = [ap[:, :, i:i + (Ho - 1) * stride + 1:stride,
               j:j + (Wo - 1) * stride + 1:stride]
            for i in range(kh) for j in range(kw)]
    patches = cols[0] if len(cols) == 1 else jnp.concatenate(cols, axis=0)
    K = kh * kw * C
    patches = patches.reshape(K, N * Ho * Wo)
    if K % 16 != 0:
        patches = jnp.pad(patches, ((0, _pad_k(K) - K), (0, 0)))
    return patches.astype(jnp.bfloat16), (N, Ho, Wo)


def fold_conv_bn(w_oihw, gamma, beta, mean, var):
    """Fold BN into the conv weight (per output channel) and a bias; bf16 weight, f32 bias."""
    cout, cin, kh, kw = w_oihw.shape
    scale = gamma / jnp.sqrt(var + EPS)
    bias = (beta - mean * scale).reshape(cout, 1).astype(jnp.float32)
    w_t = jnp.transpose(w_oihw, (0, 2, 3, 1)).reshape(cout, kh * kw * cin)  # K = (kh,kw,cin)
    w_t = w_t * scale[:, None]
    K = kh * kw * cin
    if K % 16 != 0:
        w_t = jnp.pad(w_t, ((0, 0), (0, _pad_k(K) - K)))
    return w_t.astype(jnp.bfloat16), bias


def fold_params(params):
    f = {}
    ic = params["in_conv"]
    f["stem"] = fold_conv_bn(ic["w"], ic["g"], ic["b"], ic["m"], ic["v"])
    blocks = []
    for blk in params["blocks"]:
        fb = {"stride": blk["stride"]}
        fb["w1m"], fb["b1v"] = fold_conv_bn(blk["w1"], blk["g1"], blk["b1"], blk["m1"], blk["v1"])
        fb["w2m"], fb["b2v"] = fold_conv_bn(blk["w2"], blk["g2"], blk["b2"], blk["m2"], blk["v2"])
        if "ws" in blk:
            fb["wsm"], fb["bsv"] = fold_conv_bn(blk["ws"], blk["gs"], blk["bs"],
                                                blk["ms"], blk["vs"])
        blocks.append(fb)
    f["blocks"] = blocks
    f["fc_w"] = params["fc_w"]
    f["fc_b"] = params["fc_b"]
    f["avgpool_divisor"] = params["avgpool_divisor"]
    return f


# ----------------------------- blocks & forward -----------------------------

def basic_block(a, p):
    """a: activation in (C, N, H, W) layout; returns (Cout, N, Ho, Wo)."""
    s = p["stride"]
    C, N, H, W = a.shape
    cout = p["w1m"].shape[0]

    # convBN1 (3x3, stride s, pad 1) + ReLU
    x1, (_, Ho, Wo) = im2col_t(a, 3, 3, s, 1)
    y1 = conv_matmul_t(p["w1m"], x1, p["b1v"], relu=True).reshape(cout, N, Ho, Wo)

    # convBN2 (3x3, stride 1, pad 1) fused with shortcut + residual add + ReLU
    x2, _ = im2col_t(y1, 3, 3, 1, 1)
    if "wsm" in p:
        xs, _ = im2col_t(a, 1, 1, s, 0)                  # 1x1 projection shortcut input
        out2d = conv_matmul_t(p["w2m"], x2, p["b2v"], relu=True,
                              ws=p["wsm"], xs=xs, bs=p["bsv"])
    else:
        res = a.reshape(C, N * H * W)                    # identity shortcut
        out2d = conv_matmul_t(p["w2m"], x2, p["b2v"], relu=True, residual=res)
    return out2d.reshape(cout, N, Ho, Wo)


def resnet_forward(x_nchw, f):
    # QuantStub / DeQuantStub are identity in float mode.
    a = jnp.transpose(x_nchw, (1, 0, 2, 3)).astype(jnp.float32)   # NCHW -> (C, N, H, W)
    w_t, b = f["stem"]
    patches, (N, Ho, Wo) = im2col_t(a, 3, 3, 1, 1)
    a = conv_matmul_t(w_t, patches, b, relu=True).reshape(w_t.shape[0], N, Ho, Wo)
    for blk in f["blocks"]:
        a = basic_block(a, blk)
    return avgpool_fc(a, f["fc_w"], f["fc_b"], f["avgpool_divisor"])


# ----------------------------- parameter init -----------------------------

def kaiming_conv(key, cout, cin, kh, kw):
    fan_out = cout * kh * kw
    std = math.sqrt(2.0 / fan_out)
    return jax.random.normal(key, (cout, cin, kh, kw), jnp.float32) * std


def bn_params(c, zero_gamma=False):
    return (jnp.zeros((c,), jnp.float32) if zero_gamma else jnp.ones((c,), jnp.float32),
            jnp.zeros((c,), jnp.float32),   # beta
            jnp.zeros((c,), jnp.float32),   # running_mean
            jnp.ones((c,), jnp.float32))    # running_var


def init_resnet_params(key, stage_planes=(16, 32, 64), stage_strides=(1, 2, 2),
                       num_blocks=(1, 1, 1), num_classes=10, in_planes=16):
    keys = iter(jax.random.split(key, 64))
    params = {}

    g, b, m, v = bn_params(in_planes)
    params["in_conv"] = dict(w=kaiming_conv(next(keys), in_planes, 3, 3, 3),
                             g=g, b=b, m=m, v=v)

    blocks = []
    cur = in_planes
    for planes, stride, nb in zip(stage_planes, stage_strides, num_blocks):
        strides = [stride] + [1] * (nb - 1)
        for s in strides:
            blk = {"stride": s}
            blk["w1"] = kaiming_conv(next(keys), planes, cur, 3, 3)
            blk["g1"], blk["b1"], blk["m1"], blk["v1"] = bn_params(planes)
            blk["w2"] = kaiming_conv(next(keys), planes, planes, 3, 3)
            blk["g2"], blk["b2"], blk["m2"], blk["v2"] = bn_params(planes, zero_gamma=True)
            if s != 1 or cur != planes:
                blk["ws"] = kaiming_conv(next(keys), planes, cur, 1, 1)
                blk["gs"], blk["bs"], blk["ms"], blk["vs"] = bn_params(planes)
            blocks.append(blk)
            cur = planes
    params["blocks"] = blocks

    # nn.Linear weight layout: (num_classes, in_features), init N(0, 0.01), zero bias
    params["fc_w"] = jax.random.normal(next(keys), (num_classes, cur), jnp.float32) * 0.01
    params["fc_b"] = jnp.zeros((num_classes,), jnp.float32)

    # avgpool_divisor = ceil(2 ** log2(8*8)) = 64
    params["avgpool_divisor"] = 64
    return params


if __name__ == "__main__":
    key = jax.random.PRNGKey(0)
    k_x, k_p = jax.random.split(key)
    # cifar10 family: input is NCHW (2, 3, 32, 32), spatial goes 32 -> 16 -> 8 -> avgpool(8)
    x = jax.random.normal(k_x, (2, 3, 32, 32), jnp.float32)
    params = init_resnet_params(k_p)
    folded = fold_params(params)          # one-time BN fold / bf16 cast / K padding

    fwd = jax.jit(lambda xx: resnet_forward(xx, folded))
    logits = fwd(x)
    jax.block_until_ready(logits)
    assert logits.shape == (2, 10) and logits.dtype == jnp.float32
    print("KERNEL_OK")
</pallas_src>

<mosaic_0001>
module attributes {stable_mosaic.version = 11 : i64} {
  func.func @_convbn_kernel(%arg0: i32, %arg1: memref<16x32xbf16, #tpu.memory_space<vmem>>, %arg2: memref<32x1024xbf16, #tpu.memory_space<vmem>>, %arg3: memref<16x1xf32, #tpu.memory_space<vmem>>, %arg4: memref<16x1024xf32, #tpu.memory_space<vmem>>) attributes {dimension_semantics = [#tpu.dimension_semantics<parallel>], iteration_bounds = array<i64: 2>, scalar_prefetch = 0 : i64, scratch_operands = 0 : i64, tpu.core_type = #tpu.core_type<tc>, window_params = [{pipeline_mode = #tpu.pipeline_mode<synchronous>, transform_indices = @transform_0, window_bounds = array<i64: 16, 32>}, {transform_indices = @transform_1, window_bounds = array<i64: 32, 1024>}, {pipeline_mode = #tpu.pipeline_mode<synchronous>, transform_indices = @transform_2, window_bounds = array<i64: 16, 1>}, {transform_indices = @transform_3, window_bounds = array<i64: 16, 1024>}]} {
    %c0 = arith.constant 0 : index
    %c0_0 = arith.constant 0 : index
    %0 = vector.load %arg1[%c0, %c0_0] : memref<16x32xbf16, #tpu.memory_space<vmem>>, vector<16x32xbf16>
    %c0_1 = arith.constant 0 : index
    %c0_2 = arith.constant 0 : index
    %1 = vector.load %arg2[%c0_1, %c0_2] : memref<32x1024xbf16, #tpu.memory_space<vmem>>, vector<32x1024xbf16>
    %cst = arith.constant dense<0.000000e+00> : vector<16x1024xf32>
    %2 = tpu.matmul %0, %1, %cst {dimension_numbers = #tpu.dot_dimension_numbers<[1], [0], [0], [1], [0, 0, 1, 1], [], []>} : vector<16x32xbf16>, vector<32x1024xbf16>, vector<16x1024xf32> -> vector<16x1024xf32>
    %c0_3 = arith.constant 0 : index
    %c0_4 = arith.constant 0 : index
    %3 = vector.load %arg3[%c0_3, %c0_4] : memref<16x1xf32, #tpu.memory_space<vmem>>, vector<16x1xf32>
    %4 = vector.broadcast %3 : vector<16x1xf32> to vector<16x1024xf32>
    %5 = arith.addf %2, %4 : vector<16x1024xf32>
    %cst_5 = arith.constant 0.000000e+00 : f32
    %6 = vector.broadcast %cst_5 : f32 to vector<16x1024xf32>
    %7 = arith.maximumf %5, %6 : vector<16x1024xf32>
    %c0_6 = arith.constant 0 : index
    %c0_7 = arith.constant 0 : index
    %8 = vector.load %arg4[%c0_6, %c0_7] : memref<16x1024xf32, #tpu.memory_space<vmem>>, vector<16x1024xf32>
    tpu.vector_store %arg4[%c0_6, %c0_7], %7 {strides = array<i32>} : memref<16x1024xf32, #tpu.memory_space<vmem>>, vector<16x1024xf32>,
    return
  }
  func.func @transform_0(%arg0: i32) -> (i32, i32) {
    %c0_i32 = arith.constant 0 : i32
    %c0_i32_0 = arith.constant 0 : i32
    %c0_i32_1 = arith.constant 0 : i32
    return %c0_i32, %c0_i32_0 : i32, i32
  }
  func.func @transform_1(%arg0: i32) -> (i32, i32) {
    %c0_i32 = arith.constant 0 : i32
    %c0_i32_0 = arith.constant 0 : i32
    return %c0_i32, %arg0 : i32, i32
  }
  func.func @transform_2(%arg0: i32) -> (i32, i32) {
    %c0_i32 = arith.constant 0 : i32
    %c0_i32_0 = arith.constant 0 : i32
    %c0_i32_1 = arith.constant 0 : i32
    return %c0_i32, %c0_i32_0 : i32, i32
  }
  func.func @transform_3(%arg0: i32) -> (i32, i32) {
    %c0_i32 = arith.constant 0 : i32
    %c0_i32_0 = arith.constant 0 : i32
    return %c0_i32, %arg0 : i32, i32
  }
}

module attributes {stable_mosaic.version = 11 : i64} {
  func.func @_convbn_kernel(%arg0: i32, %arg1: memref<16x144xbf16, #tpu.memory_space<vmem>>, %arg2: memref<144x1024xbf16, #tpu.memory_space<vmem>>, %arg3: memref<16x1xf32, #tpu.memory_space<vmem>>, %arg4: memref<16x1024xf32, #tpu.memory_space<vmem>>) attributes {dimension_semantics = [#tpu.dimension_semantics<parallel>], iteration_bounds = array<i64: 2>, scalar_prefetch = 0 : i64, scratch_operands = 0 : i64, tpu.core_type = #tpu.core_type<tc>, window_params = [{pipeline_mode = #tpu.pipeline_mode<synchronous>, transform_indices = @transform_0, window_bounds = array<i64: 16, 144>}, {transform_indices = @transform_1, window_bounds = array<i64: 144, 1024>}, {pipeline_mode = #tpu.pipeline_mode<synchronous>, transform_indices = @transform_2, window_bounds = array<i64: 16, 1>}, {transform_indices = @transform_3, window_bounds = array<i64: 16, 1024>}]} {
    %c0 = arith.constant 0 : index
    %c0_0 = arith.constant 0 : index
    %0 = vector.load %arg1[%c0, %c0_0] : memref<16x144xbf16, #tpu.memory_space<vmem>>, vector<16x144xbf16>
    %c0_1 = arith.constant 0 : index
    %c0_2 = arith.constant 0 : index
    %1 = vector.load %arg2[%c0_1, %c0_2] : memref<144x1024xbf16, #tpu.memory_space<vmem>>, vector<144x1024xbf16>
    %cst = arith.constant dense<0.000000e+00> : vector<16x1024xf32>
    %2 = tpu.matmul %0, %1, %cst {dimension_numbers = #tpu.dot_dimension_numbers<[1], [0], [0], [1], [0, 0, 1, 1], [], []>} : vector<16x144xbf16>, vector<144x1024xbf16>, vector<16x1024xf32> -> vector<16x1024xf32>
    %c0_3 = arith.constant 0 : index
    %c0_4 = arith.constant 0 : index
    %3 = vector.load %arg3[%c0_3, %c0_4] : memref<16x1xf32, #tpu.memory_space<vmem>>, vector<16x1xf32>
    %4 = vector.broadcast %3 : vector<16x1xf32> to vector<16x1024xf32>
    %5 = arith.addf %2, %4 : vector<16x1024xf32>
    %cst_5 = arith.constant 0.000000e+00 : f32
    %6 = vector.broadcast %cst_5 : f32 to vector<16x1024xf32>
    %7 = arith.maximumf %5, %6 : vector<16x1024xf32>
    %c0_6 = arith.constant 0 : index
    %c0_7 = arith.constant 0 : index
    %8 = vector.load %arg4[%c0_6, %c0_7] : memref<16x1024xf32, #tpu.memory_space<vmem>>, vector<16x1024xf32>
    tpu.vector_store %arg4[%c0_6, %c0_7], %7 {strides = array<i32>} : memref<16x1024xf32, #tpu.memory_space<vmem>>, vector<16x1024xf32>,
    return
  }
  func.func @transform_0(%arg0: i32) -> (i32, i32) {
    %c0_i32 = arith.constant 0 : i32
    %c0_i32_0 = arith.constant 0 : i32
    %c0_i32_1 = arith.constant 0 : i32
    return %c0_i32, %c0_i32_0 : i32, i32
  }
  func.func @transform_1(%arg0: i32) -> (i32, i32) {
    %c0_i32 = arith.constant 0 : i32
    %c0_i32_0 = arith.constant 0 : i32
    return %c0_i32, %arg0 : i32, i32
  }
  func.func @transform_2(%arg0: i32) -> (i32, i32) {
    %c0_i32 = arith.constant 0 : i32
    %c0_i32_0 = arith.constant 0 : i32
    %c0_i32_1 = arith.constant 0 : i32
    return %c0_i32, %c0_i32_0 : i32, i32
  }
  func.func @transform_3(%arg0: i32) -> (i32, i32) {
    %c0_i32 = arith.constant 0 : i32
    %c0_i32_0 = arith.constant 0 : i32
    return %c0_i32, %arg0 : i32, i32
  }
}

module attributes {stable_mosaic.version = 11 : i64} {
  func.func @_convbn_add_kernel(%arg0: i32, %arg1: memref<16x144xbf16, #tpu.memory_space<vmem>>, %arg2: memref<144x1024xbf16, #tpu.memory_space<vmem>>, %arg3: memref<16x1xf32, #tpu.memory_space<vmem>>, %arg4: memref<16x1024xf32, #tpu.memory_space<vmem>>, %arg5: memref<16x1024xf32, #tpu.memory_space<vmem>>) attributes {dimension_semantics = [#tpu.dimension_semantics<parallel>], iteration_bounds = array<i64: 2>, scalar_prefetch = 0 : i64, scratch_operands = 0 : i64, tpu.core_type = #tpu.core_type<tc>, window_params = [{pipeline_mode = #tpu.pipeline_mode<synchronous>, transform_indices = @transform_0, window_bounds = array<i64: 16, 144>}, {transform_indices = @transform_1, window_bounds = array<i64: 144, 1024>}, {pipeline_mode = #tpu.pipeline_mode<synchronous>, transform_indices = @transform_2, window_bounds = array<i64: 16, 1>}, {transform_indices = @transform_3, window_bounds = array<i64: 16, 1024>}, {transform_indices = @transform_4, window_bounds = array<i64: 16, 1024>}]} {
    %c0 = arith.constant 0 : index
    %c0_0 = arith.constant 0 : index
    %0 = vector.load %arg1[%c0, %c0_0] : memref<16x144xbf16, #tpu.memory_space<vmem>>, vector<16x144xbf16>
    %c0_1 = arith.constant 0 : index
    %c0_2 = arith.constant 0 : index
    %1 = vector.load %arg2[%c0_1, %c0_2] : memref<144x1024xbf16, #tpu.memory_space<vmem>>, vector<144x1024xbf16>
    %cst = arith.constant dense<0.000000e+00> : vector<16x1024xf32>
    %2 = tpu.matmul %0, %1, %cst {dimension_numbers = #tpu.dot_dimension_numbers<[1], [0], [0], [1], [0, 0, 1, 1], [], []>} : vector<16x144xbf16>, vector<144x1024xbf16>, vector<16x1024xf32> -> vector<16x1024xf32>
    %c0_3 = arith.constant 0 : index
    %c0_4 = arith.constant 0 : index
    %3 = vector.load %arg3[%c0_3, %c0_4] : memref<16x1xf32, #tpu.memory_space<vmem>>, vector<16x1xf32>
    %4 = vector.broadcast %3 : vector<16x1xf32> to vector<16x1024xf32>
    %5 = arith.addf %2, %4 : vector<16x1024xf32>
    %c0_5 = arith.constant 0 : index
    %c0_6 = arith.constant 0 : index
    %6 = vector.load %arg4[%c0_5, %c0_6] : memref<16x1024xf32, #tpu.memory_space<vmem>>, vector<16x1024xf32>
    %7 = arith.addf %5, %6 : vector<16x1024xf32>
    %cst_7 = arith.constant 0.000000e+00 : f32
    %8 = vector.broadcast %cst_7 : f32 to vector<16x1024xf32>
    %9 = arith.maximumf %7, %8 : vector<16x1024xf32>
    %c0_8 = arith.constant 0 : index
    %c0_9 = arith.constant 0 : index
    %10 = vector.load %arg5[%c0_8, %c0_9] : memref<16x1024xf32, #tpu.memory_space<vmem>>, vector<16x1024xf32>
    tpu.vector_store %arg5[%c0_8, %c0_9], %9 {strides = array<i32>} : memref<16x1024xf32, #tpu.memory_space<vmem>>, vector<16x1024xf32>,
    return
  }
  func.func @transform_0(%arg0: i32) -> (i32, i32) {
    %c0_i32 = arith.constant 0 : i32
    %c0_i32_0 = arith.constant 0 : i32
    %c0_i32_1 = arith.constant 0 : i32
    return %c0_i32, %c0_i32_0 : i32, i32
  }
  func.func @transform_1(%arg0: i32) -> (i32, i32) {
    %c0_i32 = arith.constant 0 : i32
    %c0_i32_0 = arith.constant 0 : i32
    return %c0_i32, %arg0 : i32, i32
  }
  func.func @transform_2(%arg0: i32) -> (i32, i32) {
    %c0_i32 = arith.constant 0 : i32
    %c0_i32_0 = arith.constant 0 : i32
    %c0_i32_1 = arith.constant 0 : i32
    return %c0_i32, %c0_i32_0 : i32, i32
  }
  func.func @transform_3(%arg0: i32) -> (i32, i32) {
    %c0_i32 = arith.constant 0 : i32
    %c0_i32_0 = arith.constant 0 : i32
    return %c0_i32, %arg0 : i32, i32
  }
  func.func @transform_4(%arg0: i32) -> (i32, i32) {
    %c0_i32 = arith.constant 0 : i32
    %c0_i32_0 = arith.constant 0 : i32
    return %c0_i32, %arg0 : i32, i32
  }
}

module attributes {stable_mosaic.version = 11 : i64} {
  func.func @_convbn_kernel(%arg0: i32, %arg1: memref<32x144xbf16, #tpu.memory_space<vmem>>, %arg2: memref<144x256xbf16, #tpu.memory_space<vmem>>, %arg3: memref<32x1xf32, #tpu.memory_space<vmem>>, %arg4: memref<32x256xf32, #tpu.memory_space<vmem>>) attributes {dimension_semantics = [#tpu.dimension_semantics<parallel>], iteration_bounds = array<i64: 2>, scalar_prefetch = 0 : i64, scratch_operands = 0 : i64, tpu.core_type = #tpu.core_type<tc>, window_params = [{pipeline_mode = #tpu.pipeline_mode<synchronous>, transform_indices = @transform_0, window_bounds = array<i64: 32, 144>}, {transform_indices = @transform_1, window_bounds = array<i64: 144, 256>}, {pipeline_mode = #tpu.pipeline_mode<synchronous>, transform_indices = @transform_2, window_bounds = array<i64: 32, 1>}, {transform_indices = @transform_3, window_bounds = array<i64: 32, 256>}]} {
    %c0 = arith.constant 0 : index
    %c0_0 = arith.constant 0 : index
    %0 = vector.load %arg1[%c0, %c0_0] : memref<32x144xbf16, #tpu.memory_space<vmem>>, vector<32x144xbf16>
    %c0_1 = arith.constant 0 : index
    %c0_2 = arith.constant 0 : index
    %1 = vector.load %arg2[%c0_1, %c0_2] : memref<144x256xbf16, #tpu.memory_space<vmem>>, vector<144x256xbf16>
    %cst = arith.constant dense<0.000000e+00> : vector<32x256xf32>
    %2 = tpu.matmul %0, %1, %cst {dimension_numbers = #tpu.dot_dimension_numbers<[1], [0], [0], [1], [0, 0, 1, 1], [], []>} : vector<32x144xbf16>, vector<144x256xbf16>, vector<32x256xf32> -> vector<32x256xf32>
    %c0_3 = arith.constant 0 : index
    %c0_4 = arith.constant 0 : index
    %3 = vector.load %arg3[%c0_3, %c0_4] : memref<32x1xf32, #tpu.memory_space<vmem>>, vector<32x1xf32>
    %4 = vector.broadcast %3 : vector<32x1xf32> to vector<32x256xf32>
    %5 = arith.addf %2, %4 : vector<32x256xf32>
    %cst_5 = arith.constant 0.000000e+00 : f32
    %6 = vector.broadcast %cst_5 : f32 to vector<32x256xf32>
    %7 = arith.maximumf %5, %6 : vector<32x256xf32>
    %c0_6 = arith.constant 0 : index
    %c0_7 = arith.constant 0 : index
    %8 = vector.load %arg4[%c0_6, %c0_7] : memref<32x256xf32, #tpu.memory_space<vmem>>, vector<32x256xf32>
    tpu.vector_store %arg4[%c0_6, %c0_7], %7 {strides = array<i32>} : memref<32x256xf32, #tpu.memory_space<vmem>>, vector<32x256xf32>,
    return
  }
  func.func @transform_0(%arg0: i32) -> (i32, i32) {
    %c0_i32 = arith.constant 0 : i32
    %c0_i32_0 = arith.constant 0 : i32
    %c0_i32_1 = arith.constant 0 : i32
    return %c0_i32, %c0_i32_0 : i32, i32
  }
  func.func @transform_1(%arg0: i32) -> (i32, i32) {
    %c0_i32 = arith.constant 0 : i32
    %c0_i32_0 = arith.constant 0 : i32
    return %c0_i32, %arg0 : i32, i32
  }
  func.func @transform_2(%arg0: i32) -> (i32, i32) {
    %c0_i32 = arith.constant 0 : i32
    %c0_i32_0 = arith.constant 0 : i32
    %c0_i32_1 = arith.constant 0 : i32
    return %c0_i32, %c0_i32_0 : i32, i32
  }
  func.func @transform_3(%arg0: i32) -> (i32, i32) {
    %c0_i32 = arith.constant 0 : i32
    %c0_i32_0 = arith.constant 0 : i32
    return %c0_i32, %arg0 : i32, i32
  }
}

module attributes {stable_mosaic.version = 11 : i64} {
  func.func @_convbn_proj_add_kernel(%arg0: i32, %arg1: memref<32x288xbf16, #tpu.memory_space<vmem>>, %arg2: memref<288x256xbf16, #tpu.memory_space<vmem>>, %arg3: memref<32x1xf32, #tpu.memory_space<vmem>>, %arg4: memref<32x16xbf16, #tpu.memory_space<vmem>>, %arg5: memref<16x256xbf16, #tpu.memory_space<vmem>>, %arg6: memref<32x1xf32, #tpu.memory_space<vmem>>, %arg7: memref<32x256xf32, #tpu.memory_space<vmem>>) attributes {dimension_semantics = [#tpu.dimension_semantics<parallel>], iteration_bounds = array<i64: 2>, scalar_prefetch = 0 : i64, scratch_operands = 0 : i64, tpu.core_type = #tpu.core_type<tc>, window_params = [{pipeline_mode = #tpu.pipeline_mode<synchronous>, transform_indices = @transform_0, window_bounds = array<i64: 32, 288>}, {transform_indices = @transform_1, window_bounds = array<i64: 288, 256>}, {pipeline_mode = #tpu.pipeline_mode<synchronous>, transform_indices = @transform_2, window_bounds = array<i64: 32, 1>}, {pipeline_mode = #tpu.pipeline_mode<synchronous>, transform_indices = @transform_3, window_bounds = array<i64: 32, 16>}, {transform_indices = @transform_4, window_bounds = array<i64: 16, 256>}, {pipeline_mode = #tpu.pipeline_mode<synchronous>, transform_indices = @transform_5, window_bounds = array<i64: 32, 1>}, {transform_indices = @transform_6, window_bounds = array<i64: 32, 256>}]} {
    %c0 = arith.constant 0 : index
    %c0_0 = arith.constant 0 : index
    %0 = vector.load %arg1[%c0, %c0_0] : memref<32x288xbf16, #tpu.memory_space<vmem>>, vector<32x288xbf16>
    %c0_1 = arith.constant 0 : index
    %c0_2 = arith.constant 0 : index
    %1 = vector.load %arg2[%c0_1, %c0_2] : memref<288x256xbf16, #tpu.memory_space<vmem>>, vector<288x256xbf16>
    %cst = arith.constant dense<0.000000e+00> : vector<32x256xf32>
    %2 = tpu.matmul %0, %1, %cst {dimension_numbers = #tpu.dot_dimension_numbers<[1], [0], [0], [1], [0, 0, 1, 1], [], []>} : vector<32x288xbf16>, vector<288x256xbf16>, vector<32x256xf32> -> vector<32x256xf32>
    %c0_3 = arith.constant 0 : index
    %c0_4 = arith.constant 0 : index
    %3 = vector.load %arg4[%c0_3, %c0_4] : memref<32x16xbf16, #tpu.memory_space<vmem>>, vector<32x16xbf16>
    %c0_5 = arith.constant 0 : index
    %c0_6 = arith.constant 0 : index
    %4 = vector.load %arg5[%c0_5, %c0_6] : memref<16x256xbf16, #tpu.memory_space<vmem>>, vector<16x256xbf16>
    %cst_7 = arith.constant dense<0.000000e+00> : vector<32x256xf32>
    %5 = tpu.matmul %3, %4, %cst_7 {dimension_numbers = #tpu.dot_dimension_numbers<[1], [0], [0], [1], [0, 0, 1, 1], [], []>} : vector<32x16xbf16>, vector<16x256xbf16>, vector<32x256xf32> -> vector<32x256xf32>
    %c0_8 = arith.constant 0 : index
    %c0_9 = arith.constant 0 : index
    %6 = vector.load %arg3[%c0_8, %c0_9] : memref<32x1xf32, #tpu.memory_space<vmem>>, vector<32x1xf32>
    %7 = vector.broadcast %6 : vector<32x1xf32> to vector<32x256xf32>
    %8 = arith.addf %2, %7 : vector<32x256xf32>
    %9 = arith.addf %8, %5 : vector<32x256xf32>
    %c0_10 = arith.constant 0 : index
    %c0_11 = arith.constant 0 : index
    %10 = vector.load %arg6[%c0_10, %c0_11] : memref<32x1xf32, #tpu.memory_space<vmem>>, vector<32x1xf32>
    %11 = vector.broadcast %10 : vector<32x1xf32> to vector<32x256xf32>
    %12 = arith.addf %9, %11 : vector<32x256xf32>
    %cst_12 = arith.constant 0.000000e+00 : f32
    %13 = vector.broadcast %cst_12 : f32 to vector<32x256xf32>
    %14 = arith.maximumf %12, %13 : vector<32x256xf32>
    %c0_13 = arith.constant 0 : index
    %c0_14 = arith.constant 0 : index
    %15 = vector.load %arg7[%c0_13, %c0_14] : memref<32x256xf32, #tpu.memory_space<vmem>>, vector<32x256xf32>
    tpu.vector_store %arg7[%c0_13, %c0_14], %14 {strides = array<i32>} : memref<32x256xf32, #tpu.memory_space<vmem>>, vector<32x256xf32>,
    return
  }
  func.func @transform_0(%arg0: i32) -> (i32, i32) {
    %c0_i32 = arith.constant 0 : i32
    %c0_i32_0 = arith.constant 0 : i32
    %c0_i32_1 = arith.constant 0 : i32
    return %c0_i32, %c0_i32_0 : i32, i32
  }
  func.func @transform_1(%arg0: i32) -> (i32, i32) {
    %c0_i32 = arith.constant 0 : i32
    %c0_i32_0 = arith.constant 0 : i32
    return %c0_i32, %arg0 : i32, i32
  }
  func.func @transform_2(%arg0: i32) -> (i32, i32) {
    %c0_i32 = arith.constant 0 : i32
    %c0_i32_0 = arith.constant 0 : i32
    %c0_i32_1 = arith.constant 0 : i32
    return %c0_i32, %c0_i32_0 : i32, i32
  }
  func.func @transform_3(%arg0: i32) -> (i32, i32) {
    %c0_i32 = arith.constant 0 : i32
    %c0_i32_0 = arith.constant 0 : i32
    %c0_i32_1 = arith.constant 0 : i32
    return %c0_i32, %c0_i32_0 : i32, i32
  }
  func.func @transform_4(%arg0: i32) -> (i32, i32) {
    %c0_i32 = arith.constant 0 : i32
    %c0_i32_0 = arith.constant 0 : i32
    return %c0_i32, %arg0 : i32, i32
  }
  func.func @transform_5(%arg0: i32) -> (i32, i32) {
    %c0_i32 = arith.constant 0 : i32
    %c0_i32_0 = arith.constant 0 : i32
    %c0_i32_1 = arith.constant 0 : i32
    return %c0_i32, %c0_i32_0 : i32, i32
  }
  func.func @transform_6(%arg0: i32) -> (i32, i32) {
    %c0_i32 = arith.constant 0 : i32
    %c0_i32_0 = arith.constant 0 : i32
    return %c0_i32, %arg0 : i32, i32
  }
}

module attributes {stable_mosaic.version = 11 : i64} {
  func.func @_convbn_kernel(%arg0: i32, %arg1: memref<64x288xbf16, #tpu.memory_space<vmem>>, %arg2: memref<288x128xbf16, #tpu.memory_space<vmem>>, %arg3: memref<64x1xf32, #tpu.memory_space<vmem>>, %arg4: memref<64x128xf32, #tpu.memory_space<vmem>>) attributes {dimension_semantics = [#tpu.dimension_semantics<parallel>], iteration_bounds = array<i64: 1>, scalar_prefetch = 0 : i64, scratch_operands = 0 : i64, tpu.core_type = #tpu.core_type<tc>, window_params = [{pipeline_mode = #tpu.pipeline_mode<synchronous>, transform_indices = @transform_0, window_bounds = array<i64: 64, 288>}, {transform_indices = @transform_1, window_bounds = array<i64: 288, 128>}, {pipeline_mode = #tpu.pipeline_mode<synchronous>, transform_indices = @transform_2, window_bounds = array<i64: 64, 1>}, {transform_indices = @transform_3, window_bounds = array<i64: 64, 128>}]} {
    %c0 = arith.constant 0 : index
    %c0_0 = arith.constant 0 : index
    %0 = vector.load %arg1[%c0, %c0_0] : memref<64x288xbf16, #tpu.memory_space<vmem>>, vector<64x288xbf16>
    %c0_1 = arith.constant 0 : index
    %c0_2 = arith.constant 0 : index
    %1 = vector.load %arg2[%c0_1, %c0_2] : memref<288x128xbf16, #tpu.memory_space<vmem>>, vector<288x128xbf16>
    %cst = arith.constant dense<0.000000e+00> : vector<64x128xf32>
    %2 = tpu.matmul %0, %1, %cst {dimension_numbers = #tpu.dot_dimension_numbers<[1], [0], [0], [1], [0, 0, 1, 1], [], []>} : vector<64x288xbf16>, vector<288x128xbf16>, vector<64x128xf32> -> vector<64x128xf32>
    %c0_3 = arith.constant 0 : index
    %c0_4 = arith.constant 0 : index
    %3 = vector.load %arg3[%c0_3, %c0_4] : memref<64x1xf32, #tpu.memory_space<vmem>>, vector<64x1xf32>
    %4 = vector.broadcast %3 : vector<64x1xf32> to vector<64x128xf32>
    %5 = arith.addf %2, %4 : vector<64x128xf32>
    %cst_5 = arith.constant 0.000000e+00 : f32
    %6 = vector.broadcast %cst_5 : f32 to vector<64x128xf32>
    %7 = arith.maximumf %5, %6 : vector<64x128xf32>
    %c0_6 = arith.constant 0 : index
    %c0_7 = arith.constant 0 : index
    %8 = vector.load %arg4[%c0_6, %c0_7] : memref<64x128xf32, #tpu.memory_space<vmem>>, vector<64x128xf32>
    tpu.vector_store %arg4[%c0_6, %c0_7], %7 {strides = array<i32>} : memref<64x128xf32, #tpu.memory_space<vmem>>, vector<64x128xf32>,
    return
  }
  func.func @transform_0(%arg0: i32) -> (i32, i32) {
    %c0_i32 = arith.constant 0 : i32
    %c0_i32_0 = arith.constant 0 : i32
    %c0_i32_1 = arith.constant 0 : i32
    return %c0_i32, %c0_i32_0 : i32, i32
  }
  func.func @transform_1(%arg0: i32) -> (i32, i32) {
    %c0_i32 = arith.constant 0 : i32
    %c0_i32_0 = arith.constant 0 : i32
    return %c0_i32, %arg0 : i32, i32
  }
  func.func @transform_2(%arg0: i32) -> (i32, i32) {
    %c0_i32 = arith.constant 0 : i32
    %c0_i32_0 = arith.constant 0 : i32
    %c0_i32_1 = arith.constant 0 : i32
    return %c0_i32, %c0_i32_0 : i32, i32
  }
  func.func @transform_3(%arg0: i32) -> (i32, i32) {
    %c0_i32 = arith.constant 0 : i32
    %c0_i32_0 = arith.constant 0 : i32
    return %c0_i32, %arg0 : i32, i32
  }
}

module attributes {stable_mosaic.version = 11 : i64} {
  func.func @_pool_fc_kernel(%arg0: i32, %arg1: memref<64x2x64xf32, #tpu.memory_space<vmem>>, %arg2: memref<10x64xf32, #tpu.memory_space<vmem>>, %arg3: memref<10x1xf32, #tpu.memory_space<vmem>>, %arg4: memref<10x2xf32, #tpu.memory_space<vmem>>) attributes {dimension_semantics = [#tpu.dimension_semantics<arbitrary>], iteration_bounds = array<i64: 1>, scalar_prefetch = 0 : i64, scratch_operands = 0 : i64, tpu.core_type = #tpu.core_type<tc>, window_params = [{pipeline_mode = #tpu.pipeline_mode<synchronous>, transform_indices = @transform_0, window_bounds = array<i64: 64, 2, 64>}, {pipeline_mode = #tpu.pipeline_mode<synchronous>, transform_indices = @transform_1, window_bounds = array<i64: 10, 64>}, {pipeline_mode = #tpu.pipeline_mode<synchronous>, transform_indices = @transform_2, window_bounds = array<i64: 10, 1>}, {pipeline_mode = #tpu.pipeline_mode<synchronous>, transform_indices = @transform_3, window_bounds = array<i64: 10, 2>}]} {
    %c0 = arith.constant 0 : index
    %c0_0 = arith.constant 0 : index
    %c0_1 = arith.constant 0 : index
    %0 = vector.load %arg1[%c0, %c0_0, %c0_1] : memref<64x2x64xf32, #tpu.memory_space<vmem>>, vector<64x2x64xf32>
    %cst = arith.constant dense<0.000000e+00> : vector<64x2xf32>
    %1 = vector.multi_reduction <add>, %0, %cst [2] : vector<64x2x64xf32> to vector<64x2xf32>
    %cst_2 = arith.constant 1.562500e-02 : f32
    %2 = vector.broadcast %cst_2 : f32 to vector<64x2xf32>
    %3 = arith.mulf %1, %2 : vector<64x2xf32>
    %c0_3 = arith.constant 0 : index
    %c0_4 = arith.constant 0 : index
    %4 = vector.load %arg2[%c0_3, %c0_4] : memref<10x64xf32, #tpu.memory_space<vmem>>, vector<10x64xf32>
    %cst_5 = arith.constant dense<0.000000e+00> : vector<10x2xf32>
    %5 = tpu.matmul %4, %3, %cst_5 {dimension_numbers = #tpu.dot_dimension_numbers<[1], [0], [0], [1], [0, 0, 1, 1], [], []>} : vector<10x64xf32>, vector<64x2xf32>, vector<10x2xf32> -> vector<10x2xf32>
    %c0_6 = arith.constant 0 : index
    %c0_7 = arith.constant 0 : index
    %6 = vector.load %arg3[%c0_6, %c0_7] : memref<10x1xf32, #tpu.memory_space<vmem>>, vector<10x1xf32>
    %7 = vector.broadcast %6 : vector<10x1xf32> to vector<10x2xf32>
    %8 = arith.addf %5, %7 : vector<10x2xf32>
    %c0_8 = arith.constant 0 : index
    %c0_9 = arith.constant 0 : index
    %9 = vector.load %arg4[%c0_8, %c0_9] : memref<10x2xf32, #tpu.memory_space<vmem>>, vector<10x2xf32>
    tpu.vector_store %arg4[%c0_8, %c0_9], %8 {strides = array<i32>} : memref<10x2xf32, #tpu.memory_space<vmem>>, vector<10x2xf32>,
    return
  }
  func.func @transform_0(%arg0: i32) -> (i32, i32, i32) {
    %c0_i32 = arith.constant 0 : i32
    %c0_i32_0 = arith.constant 0 : i32
    %c0_i32_1 = arith.constant 0 : i32
    %c0_i32_2 = arith.constant 0 : i32
    return %c0_i32, %c0_i32_0, %c0_i32_1 : i32, i32, i32
  }
  func.func @transform_1(%arg0: i32) -> (i32, i32) {
    %c0_i32 = arith.constant 0 : i32
    %c0_i32_0 = arith.constant 0 : i32
    %c0_i32_1 = arith.constant 0 : i32
    return %c0_i32, %c0_i32_0 : i32, i32
  }
  func.func @transform_2(%arg0: i32) -> (i32, i32) {
    %c0_i32 = arith.constant 0 : i32
    %c0_i32_0 = arith.constant 0 : i32
    %c0_i32_1 = arith.constant 0 : i32
    return %c0_i32, %c0_i32_0 : i32, i32
  }
  func.func @transform_3(%arg0: i32) -> (i32, i32) {
    %c0_i32 = arith.constant 0 : i32
    %c0_i32_0 = arith.constant 0 : i32
    %c0_i32_1 = arith.constant 0 : i32
    return %c0_i32, %c0_i32_0 : i32, i32
  }
}

module attributes {stable_mosaic.version = 11 : i64} {
  func.func @_convbn_proj_add_kernel(%arg0: i32, %arg1: memref<64x576xbf16, #tpu.memory_space<vmem>>, %arg2: memref<576x128xbf16, #tpu.memory_space<vmem>>, %arg3: memref<64x1xf32, #tpu.memory_space<vmem>>, %arg4: memref<64x32xbf16, #tpu.memory_space<vmem>>, %arg5: memref<32x128xbf16, #tpu.memory_space<vmem>>, %arg6: memref<64x1xf32, #tpu.memory_space<vmem>>, %arg7: memref<64x128xf32, #tpu.memory_space<vmem>>) attributes {dimension_semantics = [#tpu.dimension_semantics<parallel>], iteration_bounds = array<i64: 1>, scalar_prefetch = 0 : i64, scratch_operands = 0 : i64, tpu.core_type = #tpu.core_type<tc>, window_params = [{pipeline_mode = #tpu.pipeline_mode<synchronous>, transform_indices = @transform_0, window_bounds = array<i64: 64, 576>}, {transform_indices = @transform_1, window_bounds = array<i64: 576, 128>}, {pipeline_mode = #tpu.pipeline_mode<synchronous>, transform_indices = @transform_2, window_bounds = array<i64: 64, 1>}, {pipeline_mode = #tpu.pipeline_mode<synchronous>, transform_indices = @transform_3, window_bounds = array<i64: 64, 32>}, {transform_indices = @transform_4, window_bounds = array<i64: 32, 128>}, {pipeline_mode = #tpu.pipeline_mode<synchronous>, transform_indices = @transform_5, window_bounds = array<i64: 64, 1>}, {transform_indices = @transform_6, window_bounds = array<i64: 64, 128>}]} {
    %c0 = arith.constant 0 : index
    %c0_0 = arith.constant 0 : index
    %0 = vector.load %arg1[%c0, %c0_0] : memref<64x576xbf16, #tpu.memory_space<vmem>>, vector<64x576xbf16>
    %c0_1 = arith.constant 0 : index
    %c0_2 = arith.constant 0 : index
    %1 = vector.load %arg2[%c0_1, %c0_2] : memref<576x128xbf16, #tpu.memory_space<vmem>>, vector<576x128xbf16>
    %cst = arith.constant dense<0.000000e+00> : vector<64x128xf32>
    %2 = tpu.matmul %0, %1, %cst {dimension_numbers = #tpu.dot_dimension_numbers<[1], [0], [0], [1], [0, 0, 1, 1], [], []>} : vector<64x576xbf16>, vector<576x128xbf16>, vector<64x128xf32> -> vector<64x128xf32>
    %c0_3 = arith.constant 0 : index
    %c0_4 = arith.constant 0 : index
    %3 = vector.load %arg4[%c0_3, %c0_4] : memref<64x32xbf16, #tpu.memory_space<vmem>>, vector<64x32xbf16>
    %c0_5 = arith.constant 0 : index
    %c0_6 = arith.constant 0 : index
    %4 = vector.load %arg5[%c0_5, %c0_6] : memref<32x128xbf16, #tpu.memory_space<vmem>>, vector<32x128xbf16>
    %cst_7 = arith.constant dense<0.000000e+00> : vector<64x128xf32>
    %5 = tpu.matmul %3, %4, %cst_7 {dimension_numbers = #tpu.dot_dimension_numbers<[1], [0], [0], [1], [0, 0, 1, 1], [], []>} : vector<64x32xbf16>, vector<32x128xbf16>, vector<64x128xf32> -> vector<64x128xf32>
    %c0_8 = arith.constant 0 : index
    %c0_9 = arith.constant 0 : index
    %6 = vector.load %arg3[%c0_8, %c0_9] : memref<64x1xf32, #tpu.memory_space<vmem>>, vector<64x1xf32>
    %7 = vector.broadcast %6 : vector<64x1xf32> to vector<64x128xf32>
    %8 = arith.addf %2, %7 : vector<64x128xf32>
    %9 = arith.addf %8, %5 : vector<64x128xf32>
    %c0_10 = arith.constant 0 : index
    %c0_11 = arith.constant 0 : index
    %10 = vector.load %arg6[%c0_10, %c0_11] : memref<64x1xf32, #tpu.memory_space<vmem>>, vector<64x1xf32>
    %11 = vector.broadcast %10 : vector<64x1xf32> to vector<64x128xf32>
    %12 = arith.addf %9, %11 : vector<64x128xf32>
    %cst_12 = arith.constant 0.000000e+00 : f32
    %13 = vector.broadcast %cst_12 : f32 to vector<64x128xf32>
    %14 = arith.maximumf %12, %13 : vector<64x128xf32>
    %c0_13 = arith.constant 0 : index
    %c0_14 = arith.constant 0 : index
    %15 = vector.load %arg7[%c0_13, %c0_14] : memref<64x128xf32, #tpu.memory_space<vmem>>, vector<64x128xf32>
    tpu.vector_store %arg7[%c0_13, %c0_14], %14 {strides = array<i32>} : memref<64x128xf32, #tpu.memory_space<vmem>>, vector<64x128xf32>,
    return
  }
  func.func @transform_0(%arg0: i32) -> (i32, i32) {
    %c0_i32 = arith.constant 0 : i32
    %c0_i32_0 = arith.constant 0 : i32
    %c0_i32_1 = arith.constant 0 : i32
    return %c0_i32, %c0_i32_0 : i32, i32
  }
  func.func @transform_1(%arg0: i32) -> (i32, i32) {
    %c0_i32 = arith.constant 0 : i32
    %c0_i32_0 = arith.constant 0 : i32
    return %c0_i32, %arg0 : i32, i32
  }
  func.func @transform_2(%arg0: i32) -> (i32, i32) {
    %c0_i32 = arith.constant 0 : i32
    %c0_i32_0 = arith.constant 0 : i32
    %c0_i32_1 = arith.constant 0 : i32
    return %c0_i32, %c0_i32_0 : i32, i32
  }
  func.func @transform_3(%arg0: i32) -> (i32, i32) {
    %c0_i32 = arith.constant 0 : i32
    %c0_i32_0 = arith.constant 0 : i32
    %c0_i32_1 = arith.constant 0 : i32
    return %c0_i32, %c0_i32_0 : i32, i32
  }
  func.func @transform_4(%arg0: i32) -> (i32, i32) {
    %c0_i32 = arith.constant 0 : i32
    %c0_i32_0 = arith.constant 0 : i32
    return %c0_i32, %arg0 : i32, i32
  }
  func.func @transform_5(%arg0: i32) -> (i32, i32) {
    %c0_i32 = arith.constant 0 : i32
    %c0_i32_0 = arith.constant 0 : i32
    %c0_i32_1 = arith.constant 0 : i32
    return %c0_i32, %c0_i32_0 : i32, i32
  }
  func.func @transform_6(%arg0: i32) -> (i32, i32) {
    %c0_i32 = arith.constant 0 : i32
    %c0_i32_0 = arith.constant 0 : i32
    return %c0_i32, %arg0 : i32, i32
  }
}

</mosaic_0001>

<bundles_post_ra>
// kernel: _lambda_.8
= control target key start
LH: loop header
LB: loop body
LE: loop exit
PB: predicated region body
PF: predicated region fallthrough
CT: control target
= control target key end

     0   :  { %s764_s12 = smov 0   ;;  %s766_s13 = smov 0   ;;  %s911_s0 = inlined_call_operand.vmem [shape: bf16[16,32], index: 0, kind: input, shape index: {}]   ;;  %s912_s1 = inlined_call_operand.vmem [shape: bf16[32,2048], index: 1, kind: input, shape index: {}]   ;;  %s913_s2 = inlined_call_operand.vmem [shape: f32[16,1], index: 2, kind: input, shape index: {}]   ;;  %s914_s3 = inlined_call_operand.vmem [shape: f32[16,2048], index: 3, kind: output, shape index: {}]  }
   0x1   :  { %s768_s14 = smov 0  }
   0x2 LB: > { %s654_s15 = sadd.s32 4294967295, %s741_s14   ;;  %s781_s16 = sadd.s32 1, %s741_s14   ;;  %s741_s14 = sphi %s768_s14, %s918_s14   ;;  %s737_s13 = sphi %s766_s13, %s917_s13   ;;  %s733_s12 = sphi %s764_s12, %s916_s12  }
   0x3   : > { %s38_s17 = ssub.s32 %s741_s14, %s781_s16  ;;  %s41_s18 = sadd.s32 1, %s737_s13 }
   0x4   : > { %p39_p0 = scmp.eq.s32.totalorder %s38_s17, 0  ;;  %p48_p1 = scmp.ne.s32.totalorder %s737_s13, %s733_s12 }
   0x5   : > { %p49_p2 = scmp.eq.s32.totalorder %s741_s14, 0  ;;  %p99_p3 = scmp.eq.s32.totalorder %s654_s15, 1 }
   0x6   : > { %s792_s19 = scalar_select %p39_p0, %s737_s13, %s41_s18  }
   0x7   : > { %p50_p4 = por %p49_p2, %p48_p1  ;;  %p794_p5 = por %p99_p3, %p48_p1 }
   0x8   : > { %p657_p6 = scmp.ge.s32.totalorder %s741_s14, 2 }
   0xa   : > { %127 = sbr.rel (%p657_p6) target bundleno = 29 (0x1d), region = 24 }
  0x11   : > { %130 = sbr.rel (!%p50_p4) target bundleno = 29 (0x1d), region = 28  ;;  %s132_s21 = sand.u32 (%p50_p4), 1, %s737_s13  }
  0x12   : > { %s690_s22 = sshll.u32 (%p50_p4), %s741_s14, 5  ;;  %s658_s23 = sshll.u32 (%p50_p4), %s132_s21, 7 }
  0x13   : > { %s804_s26 = scalar_lea.vmem (%p50_p4), %s912_s1, %s690_s22  ;;  %s134_s27 = scalar_lea.vmem (%p50_p4), [#allocation2], %s658_s23 }
  0x14   : > { %v150_v0 = vld [vmem:[%s804_s26] sm:$0xff] (%p50_p4)  ;;  %v152_v1 = vld [vmem:[%s804_s26 + $0x8] sm:$0xff] (%p50_p4)  ;;  %v154_v2 = vld [vmem:[%s804_s26 + $0x10] sm:$0xff] (%p50_p4) }
  0x15   : > { %151 = vst [vmem:[%s134_s27] sm:$0xff] (%p50_p4), %v150_v0  ;;  %153 = vst [vmem:[%s134_s27 + $0x8] sm:$0xff] (%p50_p4), %v152_v1  ;;  %v156_v3 = vld [vmem:[%s804_s26 + $0x18] sm:$0xff] (%p50_p4)  ;;  %v158_v4 = vld [vmem:[%s804_s26 + $0x40] sm:$0xff] (%p50_p4) }
  0x16   : > { %155 = vst [vmem:[%s134_s27 + $0x10] sm:$0xff] (%p50_p4), %v154_v2  ;;  %v160_v5 = vld [vmem:[%s804_s26 + $0x48] sm:$0xff] (%p50_p4)  ;;  %157 = vst [vmem:[%s134_s27 + $0x18] sm:$0xff] (%p50_p4), %v156_v3  ;;  %v162_v6 = vld [vmem:[%s804_s26 + $0x50] sm:$0xff] (%p50_p4) }
  0x17   : > { %159 = vst [vmem:[%s134_s27 + $0x20] sm:$0xff] (%p50_p4), %v158_v4  ;;  %161 = vst [vmem:[%s134_s27 + $0x28] sm:$0xff] (%p50_p4), %v160_v5  ;;  %v164_v7 = vld [vmem:[%s804_s26 + $0x58] sm:$0xff] (%p50_p4)  ;;  %v166_v8 = vld [vmem:[%s804_s26 + $0x80] sm:$0xff] (%p50_p4) }
  0x18   : > { %163 = vst [vmem:[%s134_s27 + $0x30] sm:$0xff] %v162_v6  ;;  %165 = vst [vmem:[%s134_s27 + $0x38] sm:$0xff] %v164_v7  ;;  %v168_v9 = vld [vmem:[%s804_s26 + $0x88] sm:$0xff]  ;;  %v170_v10 = vld [vmem:[%s804_s26 + $0x90] sm:$0xff] }
  0x19   : > { %167 = vst [vmem:[%s134_s27 + $0x40] sm:$0xff] %v166_v8  ;;  %v172_v11 = vld [vmem:[%s804_s26 + $0x98] sm:$0xff]  ;;  %169 = vst [vmem:[%s134_s27 + $0x48] sm:$0xff] %v168_v9  ;;  %v174_v12 = vld [vmem:[%s804_s26 + $0xc0] sm:$0xff] }
  0x1a   : > { %171 = vst [vmem:[%s134_s27 + $0x50] sm:$0xff] %v170_v10  ;;  %173 = vst [vmem:[%s134_s27 + $0x58] sm:$0xff] %v172_v11  ;;  %v176_v13 = vld [vmem:[%s804_s26 + $0xc8] sm:$0xff]  ;;  %v178_v14 = vld [vmem:[%s804_s26 + $0xd0] sm:$0xff] }
  0x1b   : > { %175 = vst [vmem:[%s134_s27 + $0x60] sm:$0xff] %v174_v12  ;;  %177 = vst [vmem:[%s134_s27 + $0x68] sm:$0xff] %v176_v13  ;;  %v180_v15 = vld [vmem:[%s804_s26 + $0xd8] sm:$0xff] }
  0x1c   : > { %179 = vst [vmem:[%s134_s27 + $0x70] sm:$0xff] %v178_v14  ;;  %181 = vst [vmem:[%s134_s27 + $0x78] sm:$0xff] %v180_v15 }
  0x1d PF: > { %p661_p7 = scmp.ge.s32.totalorder %s741_s14, 1  ;;  %p186_p8 = scmp.lt.s32.totalorder %s741_s14, 3 }
  0x1f   : > { %p187_p9 = pnand %p661_p7, %p186_p8 }
  0x20   : > { %s193_s28 = sand.u32 (!%p187_p9), 1, %s733_s12   ;;  %v743_v16 = vmov (!%p187_p9), 0   ;;  %v236_v17 = vld [vmem:[%s913_s2] sm:$0xff] (!%p187_p9)  ;;  %v237_v26 = vld [vmem:[%s913_s2 + $0x8] sm:$0xff] (!%p187_p9)  ;;  %vm333_vm0 = vcmask (!%p187_p9), 261120  }
  0x21   : > { %190 = sbr.rel (%p187_p9) target bundleno = 283 (0x11b), region = 51  ;;  %s825_s29 = sshll.u32 (!%p187_p9), %s193_s28, 7  ;;  %369 = vmatprep.mubr.bf16.mxu0 (!%p187_p9), %v743_v16  ;;  %412 = vmatprep.mubr.bf16.mxu1 (!%p187_p9), %v743_v16  ;;  %v718_v43 = vld [vmem:[%s911_s0] sm:$0xff] (!%p187_p9)  }
  0x22   : > { %717 = vset.pattern.permute.xlu0 (!%p187_p9), %v743_v16  ;;  %s831_s5 = scalar_lea.vmem (!%p187_p9), [#allocation2], %s825_s29  ;;  %s860_s10 = scalar_lea.vmem (!%p187_p9), [#allocation3], %s825_s29 }
  0x23   : > { %v220_v18 = vld [vmem:[%s831_s5] sm:$0xff] (!%p187_p9)  ;;  %v221_v20 = vld [vmem:[%s831_s5 + $0x8] sm:$0xff] (!%p187_p9)  ;;  %240 = vperm.xlu0 (!%p187_p9), %717, %v236_v17   ;;  %v222_v32 = vld [vmem:[%s831_s5 + $0x10] sm:$0xff] (!%p187_p9) }
  0x24   : > { %v224_v19 = vld [vmem:[%s831_s5 + $0x20] sm:$0xff] (!%p187_p9)  ;;  %v225_v22 = vld [vmem:[%s831_s5 + $0x28] sm:$0xff] (!%p187_p9)  ;;  %v226_v34 = vld [vmem:[%s831_s5 + $0x30] sm:$0xff] (!%p187_p9) }
  0x25   : > { %v666_v21 = vcombine.high (!%p187_p9), %v220_v18, %v224_v19  ;;  %v665_v23 = vcombine.low (!%p187_p9), %v220_v18, %v224_v19  ;;  %v228_v24 = vld [vmem:[%s831_s5 + $0x40] sm:$0xff] (!%p187_p9)  ;;  %v668_v27 = vcombine.high (!%p187_p9), %v221_v20, %v225_v22  ;;  %v667_v28 = vcombine.low (!%p187_p9), %v221_v20, %v225_v22  ;;  %v229_v30 = vld [vmem:[%s831_s5 + $0x48] sm:$0xff] (!%p187_p9)  ;;  %v223_v35 = vld [vmem:[%s831_s5 + $0x18] sm:$0xff] (!%p187_p9) }
  0x26   : > { %v232_v25 = vld [vmem:[%s831_s5 + $0x60] sm:$0xff] (!%p187_p9)  ;;  %v233_v31 = vld [vmem:[%s831_s5 + $0x68] sm:$0xff] (!%p187_p9)  ;;  %v227_v36 = vld [vmem:[%s831_s5 + $0x38] sm:$0xff] (!%p187_p9)  ;;  %v670_v39 = vcombine.high (!%p187_p9), %v222_v32, %v226_v34  ;;  %v669_v46 = vcombine.low (!%p187_p9), %v222_v32, %v226_v34 }
  0x27   : > { %v674_v29 = vcombine.high (!%p187_p9), %v228_v24, %v232_v25  ;;  %337 = vmatprep.subr.bf16.mxu0 (!%p187_p9), %v666_v21  ;;  %v676_v33 = vcombine.high (!%p187_p9), %v229_v30, %v233_v31  ;;  %380 = vmatprep.subr.bf16.mxu1 (!%p187_p9), %v668_v27  ;;  %v673_v37 = vcombine.low (!%p187_p9), %v228_v24, %v232_v25  ;;  %v230_v41 = vld [vmem:[%s831_s5 + $0x50] sm:$0xff] (!%p187_p9)  ;;  %v231_v44 = vld [vmem:[%s831_s5 + $0x58] sm:$0xff] (!%p187_p9) }
  0x28   : > { %338 = vmatpush1.bf16.msra.mxu0 %v665_v23  ;;  %381 = vmatpush1.bf16.msra.mxu1 %v667_v28  ;;  %v675_v38 = vcombine.low %v229_v30, %v233_v31  ;;  %v672_v40 = vcombine.high %v223_v35, %v227_v36  ;;  %v234_v42 = vld [vmem:[%s831_s5 + $0x70] sm:$0xff]  ;;  %v235_v45 = vld [vmem:[%s831_s5 + $0x78] sm:$0xff]  ;;  %v671_v47 = vcombine.low %v223_v35, %v227_v36  ;;  %s691_s11 = sshll.u32 (%p794_p5), %s654_s15, 6 }
  0x29   : > { %339 = vmatprep.subr.bf16.mxu0 %v674_v29  ;;  %382 = vmatprep.subr.bf16.mxu1 %v676_v33  ;;  %v678_v48 = vcombine.high %v230_v41, %v234_v42  ;;  %v680_v49 = vcombine.high %v231_v44, %v235_v45  ;;  %v677_v50 = vcombine.low %v230_v41, %v234_v42  ;;  %s550_s18 = scalar_lea.vmem (%p794_p5), %s914_s3, %s691_s11 }
  0x2a   : > { %245 = vperm.xlu0 %717, %v237_v26   ;;  %v679_v51 = vcombine.low %v231_v44, %v235_v45 }
  0x2c   : > { %340 = vmatpush1.bf16.msra.mxu0 %v673_v37  ;;  %383 = vmatpush1.bf16.msra.mxu1 %v675_v38 }
  0x2d   : > { %423 = vmatprep.subr.bf16.mxu0 %v670_v39  ;;  %466 = vmatprep.subr.bf16.mxu1 %v672_v40 }
  0x2f   : > { %681 = vmatmul.mubr.msk.bf16.vlgmr.msra.gmra.mrb[0].mxu0 %vm333_vm0, %v718_v43  ;;  %682 = vmatmul.mubr.msk.bf16.vlgmr.msra.gmra.mrb[0].mxu1 %vm333_vm0, %v718_v43 }
  0x30   : > { %424 = vmatpush1.bf16.msra.mxu0 %v669_v46  ;;  %467 = vmatpush1.bf16.msra.mxu1 %v671_v47 }
  0x31   : > { %425 = vmatprep.subr.bf16.mxu0 %v678_v48  ;;  %468 = vmatprep.subr.bf16.mxu1 %v680_v49 }
  0x32   : > { %455 = vmatprep.mubr.bf16.mxu0 %v743_v16  ;;  %498 = vmatprep.mubr.bf16.mxu1 %v743_v16 }
  0x34   : > { %426 = vmatpush1.bf16.msra.mxu0 %v677_v50  ;;  %469 = vmatpush1.bf16.msra.mxu1 %v679_v51 }
  0x37   : > { %683 = vmatmul.mubr.msk.bf16.vlgmr.msra.gmra.mrb[4].mxu0 %vm333_vm0, %v718_v43  ;;  %684 = vmatmul.mubr.msk.bf16.vlgmr.msra.gmra.mrb[4].mxu1 %vm333_vm0, %v718_v43 }
  0xa2   : > { %v241_v52 = vpop.permute.xlu0 %240 }
  0xa9   : > { %v246_v54 = vpop.permute.xlu0 %245 }
 0x102   : > { %v371_v53 = vpop.f32.mrb[0].mxu0  ;;  %v414_v56 = vpop.f32.mrb[0].mxu1 }
 0x103   : > { %v372_v55 = vadd.f32 %v371_v53, %v241_v52  ;;  %v373_v57 = vpop.f32.mrb[1].mxu0  ;;  %v415_v58 = vadd.f32 %v414_v56, %v241_v52  ;;  %v416_v60 = vpop.f32.mrb[1].mxu1 }
 0x104   : > { %v374_v59 = vadd.f32 %v373_v57, %v241_v52  ;;  %v375_v61 = vpop.f32.mrb[2].mxu0  ;;  %v417_v63 = vadd.f32 %v416_v60, %v241_v52  ;;  %v418_v1 = vpop.f32.mrb[2].mxu1 }
 0x105   : > { %v509_v62 = vmax.f32 %v372_v55, 0.0  ;;  %v376_v0 = vadd.f32 %v375_v61, %v246_v54  ;;  %v377_v2 = vpop.f32.mrb[3].mxu0  ;;  %v511_v3 = vmax.f32 %v415_v58, 0.0  ;;  %v419_v5 = vadd.f32 %v418_v1, %v246_v54  ;;  %v420_v7 = vpop.f32.mrb[3].mxu1 }
 0x106   : > { %v510_v4 = vmax.f32 %v374_v59, 0.0  ;;  %v378_v6 = vadd.f32 %v377_v2, %v246_v54  ;;  %v512_v8 = vmax.f32 %v417_v63, 0.0  ;;  %v421_v10 = vadd.f32 %v420_v7, %v246_v54 }
 0x107   : > { %525 = vst [vmem:[%s860_s10] sm:$0xff] %v509_v62  ;;  %v517_v9 = vmax.f32 %v376_v0, 0.0  ;;  %527 = vst [vmem:[%s860_s10 + $0x10] sm:$0xff] %v511_v3  ;;  %v519_v11 = vmax.f32 %v419_v5, 0.0 }
 0x108   : > { %526 = vst [vmem:[%s860_s10 + $0x8] sm:$0xff] %v510_v4  ;;  %v518_v12 = vmax.f32 %v378_v6, 0.0  ;;  %528 = vst [vmem:[%s860_s10 + $0x18] sm:$0xff] %v512_v8  ;;  %v520_v13 = vmax.f32 %v421_v10, 0.0 }
 0x109   : > { %533 = vst [vmem:[%s860_s10 + $0x40] sm:$0xff] %v517_v9  ;;  %535 = vst [vmem:[%s860_s10 + $0x50] sm:$0xff] %v519_v11 }
 0x10a   : > { %534 = vst [vmem:[%s860_s10 + $0x48] sm:$0xff] %v518_v12  ;;  %v457_v14 = vpop.f32.mrb[4].mxu0  ;;  %536 = vst [vmem:[%s860_s10 + $0x58] sm:$0xff] %v520_v13  ;;  %v500_v16 = vpop.f32.mrb[4].mxu1 }
 0x10b   : > { %v458_v15 = vadd.f32 %v457_v14, %v241_v52  ;;  %v459_v17 = vpop.f32.mrb[5].mxu0  ;;  %v501_v18 = vadd.f32 %v500_v16, %v241_v52  ;;  %v502_v20 = vpop.f32.mrb[5].mxu1 }
 0x10c   : > { %v460_v19 = vadd.f32 %v459_v17, %v241_v52  ;;  %v461_v21 = vpop.f32.mrb[6].mxu0  ;;  %v503_v23 = vadd.f32 %v502_v20, %v241_v52  ;;  %v504_v25 = vpop.f32.mrb[6].mxu1  ;;  %547 = sbr.rel (!%p794_p5) target bundleno = 283 (0x11b), region = 59 }
 0x10d   : > { %v513_v22 = vmax.f32 %v458_v15, 0.0  ;;  %v462_v24 = vadd.f32 %v461_v21, %v246_v54  ;;  %v463_v26 = vpop.f32.mrb[7].mxu0  ;;  %v515_v27 = vmax.f32 %v501_v18, 0.0  ;;  %v505_v29 = vadd.f32 %v504_v25, %v246_v54  ;;  %v506_v31 = vpop.f32.mrb[7].mxu1 }
 0x10e   : > { %v514_v28 = vmax.f32 %v460_v19, 0.0  ;;  %v464_v30 = vadd.f32 %v463_v26, %v246_v54  ;;  %v516_v32 = vmax.f32 %v503_v23, 0.0  ;;  %v507_v34 = vadd.f32 %v506_v31, %v246_v54  ;;  %v563_v38 = vld [vmem:[%s860_s10] sm:$0xff] (%p794_p5)  ;;  %v567_v40 = vld [vmem:[%s860_s10 + $0x10] sm:$0xff] (%p794_p5) }
 0x10f   : > { %529 = vst [vmem:[%s860_s10 + $0x20] sm:$0xff] %v513_v22  ;;  %v521_v33 = vmax.f32 %v462_v24, 0.0  ;;  %531 = vst [vmem:[%s860_s10 + $0x30] sm:$0xff] %v515_v27  ;;  %v523_v35 = vmax.f32 %v505_v29, 0.0  ;;  %v565_v39 = vld [vmem:[%s860_s10 + $0x8] sm:$0xff] (%p794_p5)  ;;  %v569_v41 = vld [vmem:[%s860_s10 + $0x18] sm:$0xff] (%p794_p5) }
 0x110   : > { %530 = vst [vmem:[%s860_s10 + $0x28] sm:$0xff] %v514_v28  ;;  %v522_v36 = vmax.f32 %v464_v30, 0.0  ;;  %532 = vst [vmem:[%s860_s10 + $0x38] sm:$0xff] %v516_v32  ;;  %v524_v37 = vmax.f32 %v507_v34, 0.0  ;;  %v579_v46 = vld [vmem:[%s860_s10 + $0x40] sm:$0xff] (%p794_p5)  ;;  %v583_v48 = vld [vmem:[%s860_s10 + $0x50] sm:$0xff] (%p794_p5) }
 0x111   : > { %537 = vst [vmem:[%s860_s10 + $0x60] sm:$0xff] %v521_v33  ;;  %539 = vst [vmem:[%s860_s10 + $0x70] sm:$0xff] %v523_v35  ;;  %v581_v47 = vld [vmem:[%s860_s10 + $0x48] sm:$0xff] (%p794_p5)  ;;  %v585_v49 = vld [vmem:[%s860_s10 + $0x58] sm:$0xff] (%p794_p5) }
 0x112   : > { %538 = vst [vmem:[%s860_s10 + $0x68] sm:$0xff] %v522_v36  ;;  %540 = vst [vmem:[%s860_s10 + $0x78] sm:$0xff] %v524_v37 }
 0x113   : > { %564 = vst [vmem:[%s550_s18] sm:$0xff] %v563_v38  ;;  %566 = vst [vmem:[%s550_s18 + $0x8] sm:$0xff] %v565_v39 }
 0x114   : > { %568 = vst [vmem:[%s550_s18 + $0x10] sm:$0xff] %v567_v40  ;;  %570 = vst [vmem:[%s550_s18 + $0x18] sm:$0xff] %v569_v41 }
 0x115   : > { %580 = vst [vmem:[%s550_s18 + $0x80] sm:$0xff] %v579_v46  ;;  %582 = vst [vmem:[%s550_s18 + $0x88] sm:$0xff] %v581_v47 }
 0x116   : > { %v571_v42 = vld [vmem:[%s860_s10 + $0x20] sm:$0xff]  ;;  %v575_v44 = vld [vmem:[%s860_s10 + $0x30] sm:$0xff]  ;;  %584 = vst [vmem:[%s550_s18 + $0x90] sm:$0xff] %v583_v48  ;;  %586 = vst [vmem:[%s550_s18 + $0x98] sm:$0xff] %v585_v49 }
 0x117   : > { %v573_v43 = vld [vmem:[%s860_s10 + $0x28] sm:$0xff]  ;;  %572 = vst [vmem:[%s550_s18 + $0x20] sm:$0xff] %v571_v42  ;;  %v577_v45 = vld [vmem:[%s860_s10 + $0x38] sm:$0xff]  ;;  %576 = vst [vmem:[%s550_s18 + $0x30] sm:$0xff] %v575_v44 }
 0x118   : > { %574 = vst [vmem:[%s550_s18 + $0x28] sm:$0xff] %v573_v43  ;;  %578 = vst [vmem:[%s550_s18 + $0x38] sm:$0xff] %v577_v45  ;;  %v587_v50 = vld [vmem:[%s860_s10 + $0x60] sm:$0xff]  ;;  %v591_v52 = vld [vmem:[%s860_s10 + $0x70] sm:$0xff] }
 0x119   : > { %v589_v51 = vld [vmem:[%s860_s10 + $0x68] sm:$0xff]  ;;  %588 = vst [vmem:[%s550_s18 + $0xa0] sm:$0xff] %v587_v50  ;;  %592 = vst [vmem:[%s550_s18 + $0xb0] sm:$0xff] %v591_v52  ;;  %v593_v53 = vld [vmem:[%s860_s10 + $0x78] sm:$0xff] }
 0x11a   : > { %590 = vst [vmem:[%s550_s18 + $0xa8] sm:$0xff] %v589_v51  ;;  %594 = vst [vmem:[%s550_s18 + $0xb8] sm:$0xff] %v593_v53 }
 0x11b PF: > { %p10_p10 = scmp.ge.s32.totalorder %s781_s16, 4   ;;  %s916_s12 = smov %s737_s13 }
 0x11c   : > { %s917_s13 = smov %s792_s19  ;;  %s918_s14 = smov %s781_s16 }
 0x11d   :  { %12 = sbr.rel (!%p10_p10) target bundleno = 2 (0x2), region = 113 }

// kernel: _lambda_.9
= control target key start
LH: loop header
LB: loop body
LE: loop exit
PB: predicated region body
PF: predicated region fallthrough
CT: control target
= control target key end

     0   :  { %s1275_s12 = smov 0   ;;  %s1277_s13 = smov 0   ;;  %s1623_s0 = inlined_call_operand.vmem [shape: bf16[16,144], index: 0, kind: input, shape index: {}]   ;;  %s1624_s1 = inlined_call_operand.vmem [shape: bf16[144,2048], index: 1, kind: input, shape index: {}]   ;;  %s1625_s2 = inlined_call_operand.vmem [shape: f32[16,1], index: 2, kind: input, shape index: {}]   ;;  %s1626_s3 = inlined_call_operand.vmem [shape: f32[16,2048], index: 3, kind: output, shape index: {}]  }
   0x1   :  { %s1279_s14 = smov 0  }
   0x2 LB: > { %s1106_s15 = sadd.s32 4294967295, %s1252_s14   ;;  %s1292_s16 = sadd.s32 1, %s1252_s14   ;;  %s1252_s14 = sphi %s1279_s14, %s1630_s14   ;;  %s1248_s13 = sphi %s1277_s13, %s1629_s13   ;;  %s1244_s12 = sphi %s1275_s12, %s1628_s12  }
   0x3   : > { %s38_s17 = ssub.s32 %s1252_s14, %s1292_s16  ;;  %s41_s18 = sadd.s32 1, %s1248_s13 }
   0x4   : > { %p39_p0 = scmp.eq.s32.totalorder %s38_s17, 0  ;;  %p48_p1 = scmp.ne.s32.totalorder %s1248_s13, %s1244_s12 }
   0x5   : > { %p49_p2 = scmp.eq.s32.totalorder %s1252_s14, 0  ;;  %p99_p3 = scmp.eq.s32.totalorder %s1106_s15, 1 }
   0x6   : > { %s1303_s19 = scalar_select %p39_p0, %s1248_s13, %s41_s18  }
   0x7   : > { %p50_p4 = por %p49_p2, %p48_p1  ;;  %p1305_p5 = por %p99_p3, %p48_p1 }
   0x8   : > { %p1109_p6 = scmp.ge.s32.totalorder %s1252_s14, 2 }
   0xa   : > { %127 = sbr.rel (%p1109_p6) target bundleno = 58 (0x3a), region = 24 }
  0x11   : > { %130 = sbr.rel (!%p50_p4) target bundleno = 58 (0x3a), region = 28  ;;  %s132_s21 = sand.u32 (%p50_p4), 1, %s1248_s13  }
  0x12   : > { %s1197_s22 = sshll.u32 (%p50_p4), %s1252_s14, 5  ;;  %s1199_s23 = smul.u32 (%p50_p4), 576, %s132_s21 }
  0x13   : > { %s1315_s26 = scalar_lea.vmem (%p50_p4), %s1624_s1, %s1197_s22 }
  0x14   : > { %v150_v0 = vld [vmem:[%s1315_s26] sm:$0xff] (%p50_p4)  ;;  %v152_v1 = vld [vmem:[%s1315_s26 + $0x8] sm:$0xff] (%p50_p4)  ;;  %v154_v2 = vld [vmem:[%s1315_s26 + $0x10] sm:$0xff] (%p50_p4)  ;;  %s1323_s27 = scalar_lea.vmem (%p50_p4), [#allocation2], %s1199_s23 }
  0x15   : > { %v156_v3 = vld [vmem:[%s1315_s26 + $0x18] sm:$0xff] (%p50_p4)  ;;  %v158_v4 = vld [vmem:[%s1315_s26 + $0x40] sm:$0xff] (%p50_p4)  ;;  %v160_v5 = vld [vmem:[%s1315_s26 + $0x48] sm:$0xff] (%p50_p4)  ;;  %151 = vst [vmem:[%s1323_s27] sm:$0xff] (%p50_p4), %v150_v0 }
  0x16   : > { %153 = vst [vmem:[%s1323_s27 + $0x8] sm:$0xff] (%p50_p4), %v152_v1  ;;  %155 = vst [vmem:[%s1323_s27 + $0x10] sm:$0xff] (%p50_p4), %v154_v2  ;;  %v162_v6 = vld [vmem:[%s1315_s26 + $0x50] sm:$0xff] (%p50_p4)  ;;  %v164_v7 = vld [vmem:[%s1315_s26 + $0x58] sm:$0xff] (%p50_p4) }
  0x17   : > { %157 = vst [vmem:[%s1323_s27 + $0x18] sm:$0xff] (%p50_p4), %v156_v3  ;;  %159 = vst [vmem:[%s1323_s27 + $0x20] sm:$0xff] (%p50_p4), %v158_v4  ;;  %v166_v8 = vld [vmem:[%s1315_s26 + $0x80] sm:$0xff] (%p50_p4)  ;;  %v168_v9 = vld [vmem:[%s1315_s26 + $0x88] sm:$0xff] (%p50_p4) }
  0x18   : > { %161 = vst [vmem:[%s1323_s27 + $0x28] sm:$0xff] %v160_v5  ;;  %163 = vst [vmem:[%s1323_s27 + $0x30] sm:$0xff] %v162_v6  ;;  %v170_v10 = vld [vmem:[%s1315_s26 + $0x90] sm:$0xff]  ;;  %v172_v11 = vld [vmem:[%s1315_s26 + $0x98] sm:$0xff] }
  0x19   : > { %165 = vst [vmem:[%s1323_s27 + $0x38] sm:$0xff] %v164_v7  ;;  %167 = vst [vmem:[%s1323_s27 + $0x40] sm:$0xff] %v166_v8  ;;  %v174_v12 = vld [vmem:[%s1315_s26 + $0xc0] sm:$0xff]  ;;  %v176_v13 = vld [vmem:[%s1315_s26 + $0xc8] sm:$0xff] }
  0x1a   : > { %169 = vst [vmem:[%s1323_s27 + $0x48] sm:$0xff] %v168_v9  ;;  %171 = vst [vmem:[%s1323_s27 + $0x50] sm:$0xff] %v170_v10  ;;  %v178_v14 = vld [vmem:[%s1315_s26 + $0xd0] sm:$0xff]  ;;  %v180_v15 = vld [vmem:[%s1315_s26 + $0xd8] sm:$0xff] }
  0x1b   : > { %173 = vst [vmem:[%s1323_s27 + $0x58] sm:$0xff] %v172_v11  ;;  %175 = vst [vmem:[%s1323_s27 + $0x60] sm:$0xff] %v174_v12  ;;  %v182_v16 = vld [vmem:[%s1315_s26 + $0x100] sm:$0xff]  ;;  %v184_v17 = vld [vmem:[%s1315_s26 + $0x108] sm:$0xff] }
  0x1c   : > { %177 = vst [vmem:[%s1323_s27 + $0x68] sm:$0xff] %v176_v13  ;;  %179 = vst [vmem:[%s1323_s27 + $0x70] sm:$0xff] %v178_v14  ;;  %v186_v18 = vld [vmem:[%s1315_s26 + $0x110] sm:$0xff]  ;;  %v188_v19 = vld [vmem:[%s1315_s26 + $0x118] sm:$0xff] }
  0x1d   : > { %181 = vst [vmem:[%s1323_s27 + $0x78] sm:$0xff] %v180_v15  ;;  %183 = vst [vmem:[%s1323_s27 + $0x80] sm:$0xff] %v182_v16  ;;  %v190_v20 = vld [vmem:[%s1315_s26 + $0x140] sm:$0xff]  ;;  %v192_v21 = vld [vmem:[%s1315_s26 + $0x148] sm:$0xff] }
  0x1e   : > { %185 = vst [vmem:[%s1323_s27 + $0x88] sm:$0xff] %v184_v17  ;;  %187 = vst [vmem:[%s1323_s27 + $0x90] sm:$0xff] %v186_v18  ;;  %v194_v22 = vld [vmem:[%s1315_s26 + $0x150] sm:$0xff]  ;;  %v196_v23 = vld [vmem:[%s1315_s26 + $0x158] sm:$0xff] }
  0x1f   : > { %189 = vst [vmem:[%s1323_s27 + $0x98] sm:$0xff] %v188_v19  ;;  %191 = vst [vmem:[%s1323_s27 + $0xa0] sm:$0xff] %v190_v20  ;;  %v198_v24 = vld [vmem:[%s1315_s26 + $0x180] sm:$0xff]  ;;  %v200_v25 = vld [vmem:[%s1315_s26 + $0x188] sm:$0xff] }
  0x20   : > { %193 = vst [vmem:[%s1323_s27 + $0xa8] sm:$0xff] %v192_v21  ;;  %195 = vst [vmem:[%s1323_s27 + $0xb0] sm:$0xff] %v194_v22  ;;  %v202_v26 = vld [vmem:[%s1315_s26 + $0x190] sm:$0xff]  ;;  %v204_v27 = vld [vmem:[%s1315_s26 + $0x198] sm:$0xff] }
  0x21   : > { %197 = vst [vmem:[%s1323_s27 + $0xb8] sm:$0xff] %v196_v23  ;;  %199 = vst [vmem:[%s1323_s27 + $0xc0] sm:$0xff] %v198_v24  ;;  %v206_v28 = vld [vmem:[%s1315_s26 + $0x1c0] sm:$0xff]  ;;  %v208_v29 = vld [vmem:[%s1315_s26 + $0x1c8] sm:$0xff] }
  0x22   : > { %201 = vst [vmem:[%s1323_s27 + $0xc8] sm:$0xff] %v200_v25  ;;  %203 = vst [vmem:[%s1323_s27 + $0xd0] sm:$0xff] %v202_v26  ;;  %v210_v30 = vld [vmem:[%s1315_s26 + $0x1d0] sm:$0xff]  ;;  %v212_v31 = vld [vmem:[%s1315_s26 + $0x1d8] sm:$0xff] }
  0x23   : > { %205 = vst [vmem:[%s1323_s27 + $0xd8] sm:$0xff] %v204_v27  ;;  %207 = vst [vmem:[%s1323_s27 + $0xe0] sm:$0xff] %v206_v28  ;;  %v214_v32 = vld [vmem:[%s1315_s26 + $0x200] sm:$0xff]  ;;  %v216_v33 = vld [vmem:[%s1315_s26 + $0x208] sm:$0xff] }
  0x24   : > { %209 = vst [vmem:[%s1323_s27 + $0xe8] sm:$0xff] %v208_v29  ;;  %211 = vst [vmem:[%s1323_s27 + $0xf0] sm:$0xff] %v210_v30  ;;  %v218_v34 = vld [vmem:[%s1315_s26 + $0x210] sm:$0xff]  ;;  %v220_v35 = vld [vmem:[%s1315_s26 + $0x218] sm:$0xff] }
  0x25   : > { %213 = vst [vmem:[%s1323_s27 + $0xf8] sm:$0xff] %v212_v31  ;;  %215 = vst [vmem:[%s1323_s27 + $0x100] sm:$0xff] %v214_v32  ;;  %v222_v36 = vld [vmem:[%s1315_s26 + $0x240] sm:$0xff]  ;;  %v224_v37 = vld [vmem:[%s1315_s26 + $0x248] sm:$0xff] }
  0x26   : > { %217 = vst [vmem:[%s1323_s27 + $0x108] sm:$0xff] %v216_v33  ;;  %219 = vst [vmem:[%s1323_s27 + $0x110] sm:$0xff] %v218_v34  ;;  %v226_v38 = vld [vmem:[%s1315_s26 + $0x250] sm:$0xff]  ;;  %v228_v39 = vld [vmem:[%s1315_s26 + $0x258] sm:$0xff] }
  0x27   : > { %221 = vst [vmem:[%s1323_s27 + $0x118] sm:$0xff] %v220_v35  ;;  %223 = vst [vmem:[%s1323_s27 + $0x120] sm:$0xff] %v222_v36  ;;  %v230_v40 = vld [vmem:[%s1315_s26 + $0x280] sm:$0xff]  ;;  %v232_v41 = vld [vmem:[%s1315_s26 + $0x288] sm:$0xff] }
  0x28   : > { %225 = vst [vmem:[%s1323_s27 + $0x128] sm:$0xff] %v224_v37  ;;  %227 = vst [vmem:[%s1323_s27 + $0x130] sm:$0xff] %v226_v38  ;;  %v234_v42 = vld [vmem:[%s1315_s26 + $0x290] sm:$0xff]  ;;  %v236_v43 = vld [vmem:[%s1315_s26 + $0x298] sm:$0xff] }
  0x29   : > { %229 = vst [vmem:[%s1323_s27 + $0x138] sm:$0xff] %v228_v39  ;;  %231 = vst [vmem:[%s1323_s27 + $0x140] sm:$0xff] %v230_v40  ;;  %v238_v44 = vld [vmem:[%s1315_s26 + $0x2c0] sm:$0xff]  ;;  %v240_v45 = vld [vmem:[%s1315_s26 + $0x2c8] sm:$0xff] }
  0x2a   : > { %233 = vst [vmem:[%s1323_s27 + $0x148] sm:$0xff] %v232_v41  ;;  %235 = vst [vmem:[%s1323_s27 + $0x150] sm:$0xff] %v234_v42  ;;  %v242_v46 = vld [vmem:[%s1315_s26 + $0x2d0] sm:$0xff]  ;;  %v244_v47 = vld [vmem:[%s1315_s26 + $0x2d8] sm:$0xff] }
  0x2b   : > { %237 = vst [vmem:[%s1323_s27 + $0x158] sm:$0xff] %v236_v43  ;;  %239 = vst [vmem:[%s1323_s27 + $0x160] sm:$0xff] %v238_v44  ;;  %v246_v48 = vld [vmem:[%s1315_s26 + $0x300] sm:$0xff]  ;;  %v248_v49 = vld [vmem:[%s1315_s26 + $0x308] sm:$0xff] }
  0x2c   : > { %241 = vst [vmem:[%s1323_s27 + $0x168] sm:$0xff] %v240_v45  ;;  %243 = vst [vmem:[%s1323_s27 + $0x170] sm:$0xff] %v242_v46  ;;  %v250_v50 = vld [vmem:[%s1315_s26 + $0x310] sm:$0xff]  ;;  %v252_v51 = vld [vmem:[%s1315_s26 + $0x318] sm:$0xff] }
  0x2d   : > { %245 = vst [vmem:[%s1323_s27 + $0x178] sm:$0xff] %v244_v47  ;;  %247 = vst [vmem:[%s1323_s27 + $0x180] sm:$0xff] %v246_v48  ;;  %v254_v52 = vld [vmem:[%s1315_s26 + $0x340] sm:$0xff]  ;;  %v256_v53 = vld [vmem:[%s1315_s26 + $0x348] sm:$0xff] }
  0x2e   : > { %249 = vst [vmem:[%s1323_s27 + $0x188] sm:$0xff] %v248_v49  ;;  %251 = vst [vmem:[%s1323_s27 + $0x190] sm:$0xff] %v250_v50  ;;  %v258_v54 = vld [vmem:[%s1315_s26 + $0x350] sm:$0xff]  ;;  %v260_v55 = vld [vmem:[%s1315_s26 + $0x358] sm:$0xff] }
  0x2f   : > { %253 = vst [vmem:[%s1323_s27 + $0x198] sm:$0xff] %v252_v51  ;;  %255 = vst [vmem:[%s1323_s27 + $0x1a0] sm:$0xff] %v254_v52  ;;  %v262_v56 = vld [vmem:[%s1315_s26 + $0x380] sm:$0xff]  ;;  %v264_v57 = vld [vmem:[%s1315_s26 + $0x388] sm:$0xff] }
  0x30   : > { %257 = vst [vmem:[%s1323_s27 + $0x1a8] sm:$0xff] %v256_v53  ;;  %259 = vst [vmem:[%s1323_s27 + $0x1b0] sm:$0xff] %v258_v54  ;;  %v266_v58 = vld [vmem:[%s1315_s26 + $0x390] sm:$0xff]  ;;  %v268_v59 = vld [vmem:[%s1315_s26 + $0x398] sm:$0xff] }
  0x31   : > { %261 = vst [vmem:[%s1323_s27 + $0x1b8] sm:$0xff] %v260_v55  ;;  %263 = vst [vmem:[%s1323_s27 + $0x1c0] sm:$0xff] %v262_v56  ;;  %v270_v60 = vld [vmem:[%s1315_s26 + $0x3c0] sm:$0xff]  ;;  %v272_v61 = vld [vmem:[%s1315_s26 + $0x3c8] sm:$0xff] }
  0x32   : > { %265 = vst [vmem:[%s1323_s27 + $0x1c8] sm:$0xff] %v264_v57  ;;  %267 = vst [vmem:[%s1323_s27 + $0x1d0] sm:$0xff] %v266_v58  ;;  %v274_v62 = vld [vmem:[%s1315_s26 + $0x3d0] sm:$0xff]  ;;  %v276_v63 = vld [vmem:[%s1315_s26 + $0x3d8] sm:$0xff] }
  0x33   : > { %269 = vst [vmem:[%s1323_s27 + $0x1d8] sm:$0xff] %v268_v59  ;;  %271 = vst [vmem:[%s1323_s27 + $0x1e0] sm:$0xff] %v270_v60  ;;  %v278_v0 = vld [vmem:[%s1315_s26 + $0x400] sm:$0xff]  ;;  %v280_v1 = vld [vmem:[%s1315_s26 + $0x408] sm:$0xff] }
  0x34   : > { %273 = vst [vmem:[%s1323_s27 + $0x1e8] sm:$0xff] %v272_v61  ;;  %275 = vst [vmem:[%s1323_s27 + $0x1f0] sm:$0xff] %v274_v62  ;;  %v282_v2 = vld [vmem:[%s1315_s26 + $0x410] sm:$0xff]  ;;  %v284_v3 = vld [vmem:[%s1315_s26 + $0x418] sm:$0xff] }
  0x35   : > { %277 = vst [vmem:[%s1323_s27 + $0x1f8] sm:$0xff] %v276_v63  ;;  %279 = vst [vmem:[%s1323_s27 + $0x200] sm:$0xff] %v278_v0  ;;  %v286_v4 = vld [vmem:[%s1315_s26 + $0x440] sm:$0xff]  ;;  %v288_v5 = vld [vmem:[%s1315_s26 + $0x448] sm:$0xff] }
  0x36   : > { %281 = vst [vmem:[%s1323_s27 + $0x208] sm:$0xff] %v280_v1  ;;  %283 = vst [vmem:[%s1323_s27 + $0x210] sm:$0xff] %v282_v2  ;;  %v290_v6 = vld [vmem:[%s1315_s26 + $0x450] sm:$0xff]  ;;  %v292_v7 = vld [vmem:[%s1315_s26 + $0x458] sm:$0xff] }
  0x37   : > { %285 = vst [vmem:[%s1323_s27 + $0x218] sm:$0xff] %v284_v3  ;;  %287 = vst [vmem:[%s1323_s27 + $0x220] sm:$0xff] %v286_v4 }
  0x38   : > { %289 = vst [vmem:[%s1323_s27 + $0x228] sm:$0xff] %v288_v5  ;;  %291 = vst [vmem:[%s1323_s27 + $0x230] sm:$0xff] %v290_v6 }
  0x39   : > { %293 = vst [vmem:[%s1323_s27 + $0x238] sm:$0xff] %v292_v7 }
  0x3a PF: > { %p1112_p7 = scmp.ge.s32.totalorder %s1252_s14, 1  ;;  %p298_p8 = scmp.lt.s32.totalorder %s1252_s14, 3 }
  0x3c   : > { %p299_p9 = pnand %p1112_p7, %p298_p8 }
  0x3d   : > { %s305_s28 = sand.u32 (!%p299_p9), 1, %s1244_s12   ;;  %v1469_v8 = vld [vmem:[%s1623_s0 + $0x4] ss:$8 sps:$4 sm:$0xff] (!%p299_p9)   ;;  %vm785_vm0 = vcmask (!%p299_p9), 130048   ;;  %v1254_v10 = vmov (!%p299_p9), 0  }
  0x3e   : > { %302 = sbr.rel (%p299_p9) target bundleno = 370 (0x172), region = 51  ;;  %v404_v9 = vld [vmem:[%s1625_s2] sm:$0xff] (!%p299_p9)  ;;  %1188 = vmatprep.mubr.msk.bf16.mxu0 (!%p299_p9), %vm785_vm0, %v1469_v8  ;;  %1189 = vmatprep.mubr.msk.bf16.mxu1 (!%p299_p9), %vm785_vm0, %v1469_v8  ;;  %v405_v30 = vld [vmem:[%s1625_s2 + $0x8] sm:$0xff] (!%p299_p9)  ;;  %s1113_s17 = sshll.u32 (!%p299_p9), %s305_s28, 7 }
  0x3f   : > { %s1200_s4 = smul.u32 (!%p299_p9), 576, %s305_s28  ;;  %1226 = vset.pattern.permute.xlu0 (!%p299_p9), %v1254_v10  ;;  %s1572_s12 = scalar_lea.vmem (!%p299_p9), [#allocation3], %s1113_s17 }
  0x40   : > { %408 = vperm.xlu0 (!%p299_p9), %1226, %v404_v9  }
  0x41   : > { %s1480_s7 = scalar_lea.vmem (!%p299_p9), [#allocation2], %s1200_s4 }
  0x42   : > { %v332_v11 = vld [vmem:[%s1480_s7] sm:$0xff] (!%p299_p9)  ;;  %v333_v13 = vld [vmem:[%s1480_s7 + $0x8] sm:$0xff] (!%p299_p9) }
  0x43   : > { %v336_v12 = vld [vmem:[%s1480_s7 + $0x20] sm:$0xff] (!%p299_p9)  ;;  %v337_v15 = vld [vmem:[%s1480_s7 + $0x28] sm:$0xff] (!%p299_p9) }
  0x44   : > { %v1117_v14 = vcombine.high (!%p299_p9), %v332_v11, %v336_v12  ;;  %v1116_v16 = vcombine.low (!%p299_p9), %v332_v11, %v336_v12  ;;  %v340_v17 = vld [vmem:[%s1480_s7 + $0x40] sm:$0xff] (!%p299_p9)  ;;  %v1119_v19 = vcombine.high (!%p299_p9), %v333_v13, %v337_v15  ;;  %v1118_v20 = vcombine.low (!%p299_p9), %v333_v13, %v337_v15  ;;  %v341_v22 = vld [vmem:[%s1480_s7 + $0x48] sm:$0xff] (!%p299_p9)  ;;  %413 = vperm.xlu0 (!%p299_p9), %1226, %v405_v30   ;;  %v343_v30 = vld [vmem:[%s1480_s7 + $0x58] sm:$0xff] (!%p299_p9) }
  0x45   : > { %v344_v18 = vld [vmem:[%s1480_s7 + $0x60] sm:$0xff]  ;;  %v345_v23 = vld [vmem:[%s1480_s7 + $0x68] sm:$0xff]  ;;  %s1198_s18 = sshll.u32 (%p1305_p5), %s1106_s15, 6 }
  0x46   : > { %v1125_v21 = vcombine.high %v340_v17, %v344_v18  ;;  %v348_v24 = vld [vmem:[%s1480_s7 + $0x80] sm:$0xff]  ;;  %789 = vmatprep.subr.bf16.mxu0 %v1117_v14  ;;  %v1127_v25 = vcombine.high %v341_v22, %v345_v23  ;;  %v349_v27 = vld [vmem:[%s1480_s7 + $0x88] sm:$0xff]  ;;  %832 = vmatprep.subr.bf16.mxu1 %v1119_v19  ;;  %v1124_v29 = vcombine.low %v340_v17, %v344_v18  ;;  %v334_v19 = vld [vmem:[%s1480_s7 + $0x10] sm:$0xff]  ;;  %s1002_s20 = scalar_lea.vmem (%p1305_p5), %s1626_s3, %s1198_s18 }
  0x47   : > { %v352_v26 = vld [vmem:[%s1480_s7 + $0xa0] sm:$0xff]  ;;  %v353_v28 = vld [vmem:[%s1480_s7 + $0xa8] sm:$0xff]  ;;  %790 = vmatpush1.bf16.msra.mxu0 %v1116_v16  ;;  %833 = vmatpush1.bf16.msra.mxu1 %v1118_v20  ;;  %v1126_v31 = vcombine.low %v341_v22, %v345_v23  ;;  %v338_v20 = vld [vmem:[%s1480_s7 + $0x30] sm:$0xff] }
  0x48   : > { %791 = vmatprep.subr.bf16.mxu0 %v1125_v21  ;;  %v1133_v32 = vcombine.high %v348_v24, %v352_v26  ;;  %834 = vmatprep.subr.bf16.mxu1 %v1127_v25  ;;  %v1135_v33 = vcombine.high %v349_v27, %v353_v28  ;;  %v356_v34 = vld [vmem:[%s1480_s7 + $0xc0] sm:$0xff]  ;;  %v357_v36 = vld [vmem:[%s1480_s7 + $0xc8] sm:$0xff]  ;;  %v1132_v38 = vcombine.low %v348_v24, %v352_v26  ;;  %v335_v21 = vld [vmem:[%s1480_s7 + $0x18] sm:$0xff] }
  0x49   : > { %v360_v35 = vld [vmem:[%s1480_s7 + $0xe0] sm:$0xff]  ;;  %v361_v37 = vld [vmem:[%s1480_s7 + $0xe8] sm:$0xff]  ;;  %v1134_v39 = vcombine.low %v349_v27, %v353_v28  ;;  %v339_v22 = vld [vmem:[%s1480_s7 + $0x38] sm:$0xff]  ;;  %v1121_v25 = vcombine.high %v334_v19, %v338_v20 }
  0x4a   : > { %v1141_v40 = vcombine.high %v356_v34, %v360_v35  ;;  %v1143_v41 = vcombine.high %v357_v36, %v361_v37  ;;  %v364_v42 = vld [vmem:[%s1480_s7 + $0x100] sm:$0xff]  ;;  %v365_v44 = vld [vmem:[%s1480_s7 + $0x108] sm:$0xff]  ;;  %v1140_v46 = vcombine.low %v356_v34, %v360_v35  ;;  %v1142_v47 = vcombine.low %v357_v36, %v361_v37  ;;  %v342_v27 = vld [vmem:[%s1480_s7 + $0x50] sm:$0xff] }
  0x4b   : > { %792 = vmatpush1.bf16.msra.mxu0 %v1124_v29  ;;  %835 = vmatpush1.bf16.msra.mxu1 %v1126_v31  ;;  %v368_v43 = vld [vmem:[%s1480_s7 + $0x120] sm:$0xff]  ;;  %v369_v45 = vld [vmem:[%s1480_s7 + $0x128] sm:$0xff]  ;;  %v1123_v26 = vcombine.high %v335_v21, %v339_v22  ;;  %v346_v28 = vld [vmem:[%s1480_s7 + $0x70] sm:$0xff] }
  0x4c   : > { %793 = vmatprep.subr.bf16.mxu0 %v1133_v32  ;;  %836 = vmatprep.subr.bf16.mxu1 %v1135_v33  ;;  %v1149_v48 = vcombine.high %v364_v42, %v368_v43  ;;  %v1151_v49 = vcombine.high %v365_v44, %v369_v45  ;;  %v372_v50 = vld [vmem:[%s1480_s7 + $0x140] sm:$0xff]  ;;  %v373_v52 = vld [vmem:[%s1480_s7 + $0x148] sm:$0xff]  ;;  %v1148_v54 = vcombine.low %v364_v42, %v368_v43  ;;  %v347_v31 = vld [vmem:[%s1480_s7 + $0x78] sm:$0xff] }
  0x4d   : > { %v376_v51 = vld [vmem:[%s1480_s7 + $0x160] sm:$0xff]  ;;  %v377_v53 = vld [vmem:[%s1480_s7 + $0x168] sm:$0xff]  ;;  %v1150_v55 = vcombine.low %v365_v44, %v369_v45  ;;  %v1120_v32 = vcombine.low %v334_v19, %v338_v20  ;;  %v1122_v33 = vcombine.low %v335_v21, %v339_v22  ;;  %v1129_v34 = vcombine.high %v342_v27, %v346_v28  ;;  %v350_v36 = vld [vmem:[%s1480_s7 + $0x90] sm:$0xff] }
  0x4e   : > { %v1157_v56 = vcombine.high %v372_v50, %v376_v51  ;;  %v1159_v57 = vcombine.high %v373_v52, %v377_v53  ;;  %v380_v58 = vld [vmem:[%s1480_s7 + $0x180] sm:$0xff]  ;;  %v381_v60 = vld [vmem:[%s1480_s7 + $0x188] sm:$0xff]  ;;  %v1156_v62 = vcombine.low %v372_v50, %v376_v51  ;;  %v1158_v63 = vcombine.low %v373_v52, %v377_v53  ;;  %v354_v37 = vld [vmem:[%s1480_s7 + $0xb0] sm:$0xff] }
  0x4f   : > { %794 = vmatpush1.bf16.msra.mxu0 %v1132_v38  ;;  %837 = vmatpush1.bf16.msra.mxu1 %v1134_v39  ;;  %v384_v59 = vld [vmem:[%s1480_s7 + $0x1a0] sm:$0xff]  ;;  %v385_v61 = vld [vmem:[%s1480_s7 + $0x1a8] sm:$0xff]  ;;  %v1131_v35 = vcombine.high %v343_v30, %v347_v31  ;;  %v351_v38 = vld [vmem:[%s1480_s7 + $0x98] sm:$0xff]  ;;  %v1137_v42 = vcombine.high %v350_v36, %v354_v37 }
  0x50   : > { %795 = vmatprep.subr.bf16.mxu0 %v1141_v40  ;;  %838 = vmatprep.subr.bf16.mxu1 %v1143_v41  ;;  %v1165_v0 = vcombine.high %v380_v58, %v384_v59  ;;  %v1167_v1 = vcombine.high %v381_v60, %v385_v61  ;;  %v388_v2 = vld [vmem:[%s1480_s7 + $0x1c0] sm:$0xff]  ;;  %v389_v4 = vld [vmem:[%s1480_s7 + $0x1c8] sm:$0xff]  ;;  %v1164_v6 = vcombine.low %v380_v58, %v384_v59  ;;  %v355_v39 = vld [vmem:[%s1480_s7 + $0xb8] sm:$0xff] }
  0x51   : > { %v392_v3 = vld [vmem:[%s1480_s7 + $0x1e0] sm:$0xff]  ;;  %v393_v5 = vld [vmem:[%s1480_s7 + $0x1e8] sm:$0xff]  ;;  %v1166_v7 = vcombine.low %v381_v60, %v385_v61  ;;  %v1128_v40 = vcombine.low %v342_v27, %v346_v28  ;;  %v1130_v41 = vcombine.low %v343_v30, %v347_v31  ;;  %v1139_v43 = vcombine.high %v351_v38, %v355_v39  ;;  %v358_v44 = vld [vmem:[%s1480_s7 + $0xd0] sm:$0xff] }
  0x52   : > { %v1173_v9 = vcombine.high %v388_v2, %v392_v3  ;;  %v1175_v10 = vcombine.high %v389_v4, %v393_v5  ;;  %v396_v11 = vld [vmem:[%s1480_s7 + $0x200] sm:$0xff]  ;;  %v397_v13 = vld [vmem:[%s1480_s7 + $0x208] sm:$0xff]  ;;  %v1172_v15 = vcombine.low %v388_v2, %v392_v3  ;;  %v1174_v16 = vcombine.low %v389_v4, %v393_v5  ;;  %v362_v45 = vld [vmem:[%s1480_s7 + $0xf0] sm:$0xff] }
  0x53   : > { %796 = vmatpush1.bf16.msra.mxu0 %v1140_v46  ;;  %839 = vmatpush1.bf16.msra.mxu1 %v1142_v47  ;;  %v400_v12 = vld [vmem:[%s1480_s7 + $0x220] sm:$0xff]  ;;  %v401_v14 = vld [vmem:[%s1480_s7 + $0x228] sm:$0xff]  ;;  %v359_v46 = vld [vmem:[%s1480_s7 + $0xd8] sm:$0xff]  ;;  %v1145_v50 = vcombine.high %v358_v44, %v362_v45 }
  0x54   : > { %797 = vmatprep.subr.bf16.mxu0 %v1149_v48  ;;  %840 = vmatprep.subr.bf16.mxu1 %v1151_v49  ;;  %v1181_v17 = vcombine.high %v396_v11, %v400_v12  ;;  %v1183_v18 = vcombine.high %v397_v13, %v401_v14  ;;  %v1180_v23 = vcombine.low %v396_v11, %v400_v12  ;;  %v1530_v29 = vld [vmem:[%s1623_s0] ss:$8 sps:$4 sm:$0xff]   ;;  %v363_v47 = vld [vmem:[%s1480_s7 + $0xf8] sm:$0xff]  ;;  %v366_v52 = vld [vmem:[%s1480_s7 + $0x110] sm:$0xff] }
  0x55   : > { %v1182_v24 = vcombine.low %v397_v13, %v401_v14  ;;  %v1136_v48 = vcombine.low %v350_v36, %v354_v37  ;;  %v1138_v49 = vcombine.low %v351_v38, %v355_v39  ;;  %v1147_v51 = vcombine.high %v359_v46, %v363_v47  ;;  %v370_v53 = vld [vmem:[%s1480_s7 + $0x130] sm:$0xff]  ;;  %v375_v61 = vld [vmem:[%s1480_s7 + $0x158] sm:$0xff] }
  0x56   : > { %v374_v59 = vld [vmem:[%s1480_s7 + $0x150] sm:$0xff]  ;;  %v383_v5 = vld [vmem:[%s1480_s7 + $0x198] sm:$0xff] }
  0x57   : > { %798 = vmatpush1.bf16.msra.mxu0 %v1148_v54  ;;  %841 = vmatpush1.bf16.msra.mxu1 %v1150_v55  ;;  %v367_v54 = vld [vmem:[%s1480_s7 + $0x118] sm:$0xff]  ;;  %v378_v60 = vld [vmem:[%s1480_s7 + $0x170] sm:$0xff] }
  0x58   : > { %799 = vmatprep.subr.bf16.mxu0 %v1157_v56  ;;  %842 = vmatprep.subr.bf16.mxu1 %v1159_v57  ;;  %v371_v55 = vld [vmem:[%s1480_s7 + $0x138] sm:$0xff]  ;;  %v1144_v56 = vcombine.low %v358_v44, %v362_v45  ;;  %v1153_v57 = vcombine.high %v366_v52, %v370_v53  ;;  %v382_v3 = vld [vmem:[%s1480_s7 + $0x190] sm:$0xff] }
  0x59   : > { %v1155_v58 = vcombine.high %v367_v54, %v371_v55  ;;  %v386_v4 = vld [vmem:[%s1480_s7 + $0x1b0] sm:$0xff]  ;;  %v391_v14 = vld [vmem:[%s1480_s7 + $0x1d8] sm:$0xff] }
  0x5a   : > { %v390_v12 = vld [vmem:[%s1480_s7 + $0x1d0] sm:$0xff]  ;;  %v399_v22 = vld [vmem:[%s1480_s7 + $0x218] sm:$0xff] }
  0x5b   : > { %800 = vmatpush1.bf16.msra.mxu0 %v1156_v62  ;;  %843 = vmatpush1.bf16.msra.mxu1 %v1158_v63  ;;  %v379_v62 = vld [vmem:[%s1480_s7 + $0x178] sm:$0xff]  ;;  %v1152_v63 = vcombine.low %v366_v52, %v370_v53  ;;  %v394_v13 = vld [vmem:[%s1480_s7 + $0x1f0] sm:$0xff] }
  0x5c   : > { %801 = vmatprep.subr.bf16.mxu0 %v1165_v0  ;;  %844 = vmatprep.subr.bf16.mxu1 %v1167_v1  ;;  %v1154_v0 = vcombine.low %v367_v54, %v371_v55  ;;  %v1161_v1 = vcombine.high %v374_v59, %v378_v60  ;;  %v1163_v2 = vcombine.high %v375_v61, %v379_v62  ;;  %v398_v20 = vld [vmem:[%s1480_s7 + $0x210] sm:$0xff] }
  0x5d   : > { %v402_v21 = vld [vmem:[%s1480_s7 + $0x230] sm:$0xff] }
  0x5e   : > { %v1184_v28 = vcombine.low %v398_v20, %v402_v21 }
  0x5f   : > { %802 = vmatpush1.bf16.msra.mxu0 %v1164_v6  ;;  %845 = vmatpush1.bf16.msra.mxu1 %v1166_v7  ;;  %v387_v6 = vld [vmem:[%s1480_s7 + $0x1b8] sm:$0xff]  ;;  %v1160_v7 = vcombine.low %v374_v59, %v378_v60 }
  0x60   : > { %803 = vmatprep.subr.bf16.mxu0 %v1173_v9  ;;  %846 = vmatprep.subr.bf16.mxu1 %v1175_v10  ;;  %v1162_v9 = vcombine.low %v375_v61, %v379_v62  ;;  %v1169_v10 = vcombine.high %v382_v3, %v386_v4  ;;  %v1171_v11 = vcombine.high %v383_v5, %v387_v6 }
  0x63   : > { %804 = vmatpush1.bf16.msra.mxu0 %v1172_v15  ;;  %847 = vmatpush1.bf16.msra.mxu1 %v1174_v16  ;;  %v395_v15 = vld [vmem:[%s1480_s7 + $0x1f8] sm:$0xff]  ;;  %v1168_v16 = vcombine.low %v382_v3, %v386_v4 }
  0x64   : > { %805 = vmatprep.subr.bf16.mxu0 %v1181_v17  ;;  %848 = vmatprep.subr.bf16.mxu1 %v1183_v18  ;;  %v1170_v17 = vcombine.low %v383_v5, %v387_v6  ;;  %v1177_v18 = vcombine.high %v390_v12, %v394_v13  ;;  %v1179_v19 = vcombine.high %v391_v14, %v395_v15 }
  0x67   : > { %806 = vmatpush1.bf16.msra.mxu0 %v1180_v23  ;;  %849 = vmatpush1.bf16.msra.mxu1 %v1182_v24  ;;  %v403_v23 = vld [vmem:[%s1480_s7 + $0x238] sm:$0xff]  ;;  %v1176_v24 = vcombine.low %v390_v12, %v394_v13 }
  0x68   : > { %875 = vmatprep.subr.bf16.mxu0 %v1121_v25  ;;  %918 = vmatprep.subr.bf16.mxu1 %v1123_v26  ;;  %v1178_v25 = vcombine.low %v391_v14, %v395_v15  ;;  %v1185_v26 = vcombine.high %v398_v20, %v402_v21  ;;  %v1187_v27 = vcombine.high %v399_v22, %v403_v23 }
  0x69   : > { %v1186_v30 = vcombine.low %v399_v22, %v403_v23 }
  0x6a   : > { %822 = vmatmul.mubr.bf16.vlgmr.msra.gmra.mrb[0].mxu0 %v1530_v29  ;;  %865 = vmatmul.mubr.bf16.vlgmr.msra.gmra.mrb[0].mxu1 %v1530_v29 }
  0x6b   : > { %876 = vmatpush1.bf16.msra.mxu0 %v1120_v32  ;;  %919 = vmatpush1.bf16.msra.mxu1 %v1122_v33 }
  0x6c   : > { %877 = vmatprep.subr.bf16.mxu0 %v1129_v34  ;;  %920 = vmatprep.subr.bf16.mxu1 %v1131_v35 }
  0x6d   : > { %1190 = vmatprep.mubr.msk.bf16.mxu0 %vm785_vm0, %v1469_v8  ;;  %1191 = vmatprep.mubr.msk.bf16.mxu1 %vm785_vm0, %v1469_v8  ;;  %v1146_v8 = vcombine.low %v359_v46, %v363_v47 }
  0x6f   : > { %878 = vmatpush1.bf16.msra.mxu0 %v1128_v40  ;;  %921 = vmatpush1.bf16.msra.mxu1 %v1130_v41 }
  0x70   : > { %879 = vmatprep.subr.bf16.mxu0 %v1137_v42  ;;  %922 = vmatprep.subr.bf16.mxu1 %v1139_v43 }
  0x73   : > { %880 = vmatpush1.bf16.msra.mxu0 %v1136_v48  ;;  %923 = vmatpush1.bf16.msra.mxu1 %v1138_v49 }
  0x74   : > { %881 = vmatprep.subr.bf16.mxu0 %v1145_v50  ;;  %924 = vmatprep.subr.bf16.mxu1 %v1147_v51 }
  0x77   : > { %882 = vmatpush1.bf16.msra.mxu0 %v1144_v56  ;;  %925 = vmatpush1.bf16.msra.mxu1 %v1146_v8 }
  0x78   : > { %883 = vmatprep.subr.bf16.mxu0 %v1153_v57  ;;  %926 = vmatprep.subr.bf16.mxu1 %v1155_v58 }
  0x7b   : > { %884 = vmatpush1.bf16.msra.mxu0 %v1152_v63  ;;  %927 = vmatpush1.bf16.msra.mxu1 %v1154_v0 }
  0x7c   : > { %885 = vmatprep.subr.bf16.mxu0 %v1161_v1  ;;  %928 = vmatprep.subr.bf16.mxu1 %v1163_v2 }
  0x7f   : > { %886 = vmatpush1.bf16.msra.mxu0 %v1160_v7  ;;  %929 = vmatpush1.bf16.msra.mxu1 %v1162_v9 }
  0x80   : > { %887 = vmatprep.subr.bf16.mxu0 %v1169_v10  ;;  %930 = vmatprep.subr.bf16.mxu1 %v1171_v11 }
  0x83   : > { %888 = vmatpush1.bf16.msra.mxu0 %v1168_v16  ;;  %931 = vmatpush1.bf16.msra.mxu1 %v1170_v17 }
  0x84   : > { %889 = vmatprep.subr.bf16.mxu0 %v1177_v18  ;;  %932 = vmatprep.subr.bf16.mxu1 %v1179_v19 }
  0x87   : > { %890 = vmatpush1.bf16.msra.mxu0 %v1176_v24  ;;  %933 = vmatpush1.bf16.msra.mxu1 %v1178_v25 }
  0x88   : > { %891 = vmatprep.subr.bf16.mxu0 %v1185_v26  ;;  %934 = vmatprep.subr.bf16.mxu1 %v1187_v27 }
  0x8b   : > { %892 = vmatpush1.bf16.msra.mxu0 %v1184_v28  ;;  %935 = vmatpush1.bf16.msra.mxu1 %v1186_v30 }
  0x8e   : > { %908 = vmatmul.mubr.bf16.vlgmr.msra.gmra.mrb[4].mxu0 %v1530_v29  ;;  %951 = vmatmul.mubr.bf16.vlgmr.msra.gmra.mrb[4].mxu1 %v1530_v29 }
  0xbf   : > { %v409_v31 = vpop.permute.xlu0 %408 }
  0xc3   : > { %v414_v33 = vpop.permute.xlu0 %413 }
 0x13d   : > { %v823_v32 = vpop.f32.mrb[0].mxu0  ;;  %v866_v35 = vpop.f32.mrb[0].mxu1 }
 0x13e   : > { %v824_v34 = vadd.f32 %v823_v32, %v409_v31  ;;  %v825_v36 = vpop.f32.mrb[1].mxu0  ;;  %v867_v37 = vadd.f32 %v866_v35, %v409_v31  ;;  %v868_v39 = vpop.f32.mrb[1].mxu1 }
 0x13f   : > { %v826_v38 = vadd.f32 %v825_v36, %v409_v31  ;;  %v827_v40 = vpop.f32.mrb[2].mxu0  ;;  %v869_v42 = vadd.f32 %v868_v39, %v409_v31  ;;  %v870_v44 = vpop.f32.mrb[2].mxu1 }
 0x140   : > { %v961_v41 = vmax.f32 %v824_v34, 0.0  ;;  %v828_v43 = vadd.f32 %v827_v40, %v414_v33  ;;  %v829_v45 = vpop.f32.mrb[3].mxu0  ;;  %v963_v46 = vmax.f32 %v867_v37, 0.0  ;;  %v871_v29 = vadd.f32 %v870_v44, %v414_v33  ;;  %v872_v49 = vpop.f32.mrb[3].mxu1 }
 0x141   : > { %v962_v47 = vmax.f32 %v826_v38, 0.0  ;;  %v830_v48 = vadd.f32 %v829_v45, %v414_v33  ;;  %v964_v50 = vmax.f32 %v869_v42, 0.0  ;;  %v873_v52 = vadd.f32 %v872_v49, %v414_v33 }
 0x142   : > { %977 = vst [vmem:[%s1572_s12] sm:$0xff] %v961_v41  ;;  %v969_v51 = vmax.f32 %v828_v43, 0.0  ;;  %979 = vst [vmem:[%s1572_s12 + $0x10] sm:$0xff] %v963_v46  ;;  %v971_v53 = vmax.f32 %v871_v29, 0.0 }
 0x143   : > { %978 = vst [vmem:[%s1572_s12 + $0x8] sm:$0xff] %v962_v47  ;;  %v970_v54 = vmax.f32 %v830_v48, 0.0  ;;  %980 = vst [vmem:[%s1572_s12 + $0x18] sm:$0xff] %v964_v50  ;;  %v972_v55 = vmax.f32 %v873_v52, 0.0 }
 0x144   : > { %985 = vst [vmem:[%s1572_s12 + $0x40] sm:$0xff] %v969_v51  ;;  %987 = vst [vmem:[%s1572_s12 + $0x50] sm:$0xff] %v971_v53 }
 0x145   : > { %986 = vst [vmem:[%s1572_s12 + $0x48] sm:$0xff] %v970_v54  ;;  %988 = vst [vmem:[%s1572_s12 + $0x58] sm:$0xff] %v972_v55 }
 0x149   : > { %v1015_v16 = vld [vmem:[%s1572_s12] sm:$0xff] (%p1305_p5)  ;;  %v1019_v18 = vld [vmem:[%s1572_s12 + $0x10] sm:$0xff] (%p1305_p5) }
 0x14a   : > { %v1017_v17 = vld [vmem:[%s1572_s12 + $0x8] sm:$0xff] (%p1305_p5)  ;;  %v1021_v19 = vld [vmem:[%s1572_s12 + $0x18] sm:$0xff] (%p1305_p5)  ;;  %1016 = vst [vmem:[%s1002_s20] sm:$0xff] (%p1305_p5), %v1015_v16  ;;  %1020 = vst [vmem:[%s1002_s20 + $0x10] sm:$0xff] (%p1305_p5), %v1019_v18 }
 0x14b   : > { %1018 = vst [vmem:[%s1002_s20 + $0x8] sm:$0xff] (%p1305_p5), %v1017_v17  ;;  %1022 = vst [vmem:[%s1002_s20 + $0x18] sm:$0xff] (%p1305_p5), %v1021_v19  ;;  %v1031_v24 = vld [vmem:[%s1572_s12 + $0x40] sm:$0xff] (%p1305_p5)  ;;  %v1035_v26 = vld [vmem:[%s1572_s12 + $0x50] sm:$0xff] (%p1305_p5) }
 0x14c   : > { %1032 = vst [vmem:[%s1002_s20 + $0x80] sm:$0xff] (%p1305_p5), %v1031_v24  ;;  %v1033_v25 = vld [vmem:[%s1572_s12 + $0x48] sm:$0xff] (%p1305_p5)  ;;  %v1037_v27 = vld [vmem:[%s1572_s12 + $0x58] sm:$0xff] (%p1305_p5)  ;;  %1036 = vst [vmem:[%s1002_s20 + $0x90] sm:$0xff] (%p1305_p5), %v1035_v26 }
 0x14d   : > { %1034 = vst [vmem:[%s1002_s20 + $0x88] sm:$0xff] (%p1305_p5), %v1033_v25  ;;  %1038 = vst [vmem:[%s1002_s20 + $0x98] sm:$0xff] (%p1305_p5), %v1037_v27 }
 0x161   : > { %v909_v56 = vpop.f32.mrb[4].mxu0  ;;  %v952_v57 = vpop.f32.mrb[4].mxu1 }
 0x162   : > { %v910_v8 = vadd.f32 %v909_v56, %v409_v31  ;;  %v911_v58 = vpop.f32.mrb[5].mxu0  ;;  %v953_v59 = vadd.f32 %v952_v57, %v409_v31  ;;  %v954_v61 = vpop.f32.mrb[5].mxu1 }
 0x163   : > { %v912_v60 = vadd.f32 %v911_v58, %v409_v31  ;;  %v913_v62 = vpop.f32.mrb[6].mxu0  ;;  %v955_v0 = vadd.f32 %v954_v61, %v409_v31  ;;  %v956_v2 = vpop.f32.mrb[6].mxu1  ;;  %999 = sbr.rel (!%p1305_p5) target bundleno = 370 (0x172), region = 59 }
 0x164   : > { %v965_v63 = vmax.f32 %v910_v8, 0.0  ;;  %v914_v1 = vadd.f32 %v913_v62, %v414_v33  ;;  %v915_v3 = vpop.f32.mrb[7].mxu0  ;;  %v967_v4 = vmax.f32 %v953_v59, 0.0  ;;  %v957_v6 = vadd.f32 %v956_v2, %v414_v33  ;;  %v958_v9 = vpop.f32.mrb[7].mxu1 }
 0x165   : > { %v966_v5 = vmax.f32 %v912_v60, 0.0  ;;  %v916_v7 = vadd.f32 %v915_v3, %v414_v33  ;;  %v968_v10 = vmax.f32 %v955_v0, 0.0  ;;  %v959_v12 = vadd.f32 %v958_v9, %v414_v33 }
 0x166   : > { %981 = vst [vmem:[%s1572_s12 + $0x20] sm:$0xff] %v965_v63  ;;  %v973_v11 = vmax.f32 %v914_v1, 0.0  ;;  %983 = vst [vmem:[%s1572_s12 + $0x30] sm:$0xff] %v967_v4  ;;  %v975_v13 = vmax.f32 %v957_v6, 0.0 }
 0x167   : > { %982 = vst [vmem:[%s1572_s12 + $0x28] sm:$0xff] %v966_v5  ;;  %v974_v14 = vmax.f32 %v916_v7, 0.0  ;;  %984 = vst [vmem:[%s1572_s12 + $0x38] sm:$0xff] %v968_v10  ;;  %v976_v15 = vmax.f32 %v959_v12, 0.0 }
 0x168   : > { %989 = vst [vmem:[%s1572_s12 + $0x60] sm:$0xff] %v973_v11  ;;  %991 = vst [vmem:[%s1572_s12 + $0x70] sm:$0xff] %v975_v13 }
 0x169   : > { %990 = vst [vmem:[%s1572_s12 + $0x68] sm:$0xff] %v974_v14  ;;  %992 = vst [vmem:[%s1572_s12 + $0x78] sm:$0xff] %v976_v15 }
 0x16d   : > { %v1023_v20 = vld [vmem:[%s1572_s12 + $0x20] sm:$0xff]  ;;  %v1027_v22 = vld [vmem:[%s1572_s12 + $0x30] sm:$0xff] }
 0x16e   : > { %v1025_v21 = vld [vmem:[%s1572_s12 + $0x28] sm:$0xff]  ;;  %1024 = vst [vmem:[%s1002_s20 + $0x20] sm:$0xff] %v1023_v20  ;;  %v1029_v23 = vld [vmem:[%s1572_s12 + $0x38] sm:$0xff]  ;;  %1028 = vst [vmem:[%s1002_s20 + $0x30] sm:$0xff] %v1027_v22 }
 0x16f   : > { %1026 = vst [vmem:[%s1002_s20 + $0x28] sm:$0xff] %v1025_v21  ;;  %1030 = vst [vmem:[%s1002_s20 + $0x38] sm:$0xff] %v1029_v23  ;;  %v1039_v28 = vld [vmem:[%s1572_s12 + $0x60] sm:$0xff]  ;;  %v1043_v31 = vld [vmem:[%s1572_s12 + $0x70] sm:$0xff] }
 0x170   : > { %v1041_v30 = vld [vmem:[%s1572_s12 + $0x68] sm:$0xff]  ;;  %1040 = vst [vmem:[%s1002_s20 + $0xa0] sm:$0xff] %v1039_v28  ;;  %1044 = vst [vmem:[%s1002_s20 + $0xb0] sm:$0xff] %v1043_v31  ;;  %v1045_v32 = vld [vmem:[%s1572_s12 + $0x78] sm:$0xff] }
 0x171   : > { %1042 = vst [vmem:[%s1002_s20 + $0xa8] sm:$0xff] %v1041_v30  ;;  %1046 = vst [vmem:[%s1002_s20 + $0xb8] sm:$0xff] %v1045_v32 }
 0x172 PF: > { %p10_p10 = scmp.ge.s32.totalorder %s1292_s16, 4   ;;  %s1628_s12 = smov %s1248_s13 }
 0x173   : > { %s1629_s13 = smov %s1303_s19  ;;  %s1630_s14 = smov %s1292_s16 }
 0x174   :  { %12 = sbr.rel (!%p10_p10) target bundleno = 2 (0x2), region = 113 }

// kernel: _lambda_.10
= control target key start
LH: loop header
LB: loop body
LE: loop exit
PB: predicated region body
PF: predicated region fallthrough
CT: control target
= control target key end

     0   :  { %s1433_s15 = smov 0   ;;  %s1435_s16 = smov 0   ;;  %s1854_s0 = inlined_call_operand.vmem [shape: bf16[16,144], index: 0, kind: input, shape index: {}]   ;;  %s1855_s1 = inlined_call_operand.vmem [shape: bf16[144,2048], index: 1, kind: input, shape index: {}]   ;;  %s1856_s2 = inlined_call_operand.vmem [shape: f32[16,1], index: 2, kind: input, shape index: {}]   ;;  %s1857_s3 = inlined_call_operand.vmem [shape: f32[16,2048], index: 3, kind: input, shape index: {}]   ;;  %s1858_s4 = inlined_call_operand.vmem [shape: f32[16,2048], index: 4, kind: output, shape index: {}]  }
   0x1   :  { %s1437_s17 = smov 0  }
   0x2 LB: > { %s1254_s18 = sadd.s32 4294967295, %s1405_s17   ;;  %s1450_s19 = sadd.s32 1, %s1405_s17   ;;  %s1405_s17 = sphi %s1437_s17, %s1863_s17   ;;  %s1401_s16 = sphi %s1435_s16, %s1862_s16   ;;  %s1397_s15 = sphi %s1433_s15, %s1861_s15  }
   0x3   : > { %s39_s20 = ssub.s32 %s1405_s17, %s1450_s19  ;;  %s42_s21 = sadd.s32 1, %s1401_s16 }
   0x4   : > { %p40_p0 = scmp.eq.s32.totalorder %s39_s20, 0  ;;  %p49_p1 = scmp.ne.s32.totalorder %s1401_s16, %s1397_s15 }
   0x5   : > { %p50_p2 = scmp.eq.s32.totalorder %s1405_s17, 0  ;;  %p126_p3 = scmp.eq.s32.totalorder %s1254_s18, 1 }
   0x6   : > { %s1461_s22 = scalar_select %p40_p0, %s1401_s16, %s42_s21  }
   0x7   : > { %p1463_p4 = por %p50_p2, %p49_p1  ;;  %p1467_p5 = por %p126_p3, %p49_p1 }
   0x8   : > { %p1257_p6 = scmp.ge.s32.totalorder %s1405_s17, 2 }
   0xa   : > { %154 = sbr.rel (%p1257_p6) target bundleno = 70 (0x46), region = 24 }
  0x11   : > { %157 = sbr.rel (!%p1463_p4) target bundleno = 58 (0x3a), region = 28  ;;  %s159_s25 = sand.u32 (%p1463_p4), 1, %s1401_s16  }
  0x12   : > { %s1349_s26 = sshll.u32 (%p1463_p4), %s1405_s17, 5  ;;  %s1352_s27 = smul.u32 (%p1463_p4), 576, %s159_s25 }
  0x13   : > { %s1479_s30 = scalar_lea.vmem (%p1463_p4), %s1855_s1, %s1349_s26 }
  0x14   : > { %v177_v0 = vld [vmem:[%s1479_s30] sm:$0xff] (%p1463_p4)  ;;  %v179_v1 = vld [vmem:[%s1479_s30 + $0x8] sm:$0xff] (%p1463_p4)  ;;  %v181_v2 = vld [vmem:[%s1479_s30 + $0x10] sm:$0xff] (%p1463_p4)  ;;  %s1487_s5 = scalar_lea.vmem (%p1463_p4), [#allocation2], %s1352_s27 }
  0x15   : > { %v183_v3 = vld [vmem:[%s1479_s30 + $0x18] sm:$0xff] (%p1463_p4)  ;;  %v185_v4 = vld [vmem:[%s1479_s30 + $0x40] sm:$0xff] (%p1463_p4)  ;;  %v187_v5 = vld [vmem:[%s1479_s30 + $0x48] sm:$0xff] (%p1463_p4)  ;;  %178 = vst [vmem:[%s1487_s5] sm:$0xff] (%p1463_p4), %v177_v0 }
  0x16   : > { %180 = vst [vmem:[%s1487_s5 + $0x8] sm:$0xff] (%p1463_p4), %v179_v1  ;;  %182 = vst [vmem:[%s1487_s5 + $0x10] sm:$0xff] (%p1463_p4), %v181_v2  ;;  %v189_v6 = vld [vmem:[%s1479_s30 + $0x50] sm:$0xff] (%p1463_p4)  ;;  %v191_v7 = vld [vmem:[%s1479_s30 + $0x58] sm:$0xff] (%p1463_p4) }
  0x17   : > { %184 = vst [vmem:[%s1487_s5 + $0x18] sm:$0xff] (%p1463_p4), %v183_v3  ;;  %186 = vst [vmem:[%s1487_s5 + $0x20] sm:$0xff] (%p1463_p4), %v185_v4  ;;  %v193_v8 = vld [vmem:[%s1479_s30 + $0x80] sm:$0xff] (%p1463_p4)  ;;  %v195_v9 = vld [vmem:[%s1479_s30 + $0x88] sm:$0xff] (%p1463_p4) }
  0x18   : > { %188 = vst [vmem:[%s1487_s5 + $0x28] sm:$0xff] %v187_v5  ;;  %190 = vst [vmem:[%s1487_s5 + $0x30] sm:$0xff] %v189_v6  ;;  %v197_v10 = vld [vmem:[%s1479_s30 + $0x90] sm:$0xff]  ;;  %v199_v11 = vld [vmem:[%s1479_s30 + $0x98] sm:$0xff] }
  0x19   : > { %192 = vst [vmem:[%s1487_s5 + $0x38] sm:$0xff] %v191_v7  ;;  %194 = vst [vmem:[%s1487_s5 + $0x40] sm:$0xff] %v193_v8  ;;  %v201_v12 = vld [vmem:[%s1479_s30 + $0xc0] sm:$0xff]  ;;  %v203_v13 = vld [vmem:[%s1479_s30 + $0xc8] sm:$0xff] }
  0x1a   : > { %196 = vst [vmem:[%s1487_s5 + $0x48] sm:$0xff] %v195_v9  ;;  %198 = vst [vmem:[%s1487_s5 + $0x50] sm:$0xff] %v197_v10  ;;  %v205_v14 = vld [vmem:[%s1479_s30 + $0xd0] sm:$0xff]  ;;  %v207_v15 = vld [vmem:[%s1479_s30 + $0xd8] sm:$0xff] }
  0x1b   : > { %200 = vst [vmem:[%s1487_s5 + $0x58] sm:$0xff] %v199_v11  ;;  %202 = vst [vmem:[%s1487_s5 + $0x60] sm:$0xff] %v201_v12  ;;  %v209_v16 = vld [vmem:[%s1479_s30 + $0x100] sm:$0xff]  ;;  %v211_v17 = vld [vmem:[%s1479_s30 + $0x108] sm:$0xff] }
  0x1c   : > { %204 = vst [vmem:[%s1487_s5 + $0x68] sm:$0xff] %v203_v13  ;;  %206 = vst [vmem:[%s1487_s5 + $0x70] sm:$0xff] %v205_v14  ;;  %v213_v18 = vld [vmem:[%s1479_s30 + $0x110] sm:$0xff]  ;;  %v215_v19 = vld [vmem:[%s1479_s30 + $0x118] sm:$0xff] }
  0x1d   : > { %208 = vst [vmem:[%s1487_s5 + $0x78] sm:$0xff] %v207_v15  ;;  %210 = vst [vmem:[%s1487_s5 + $0x80] sm:$0xff] %v209_v16  ;;  %v217_v20 = vld [vmem:[%s1479_s30 + $0x140] sm:$0xff]  ;;  %v219_v21 = vld [vmem:[%s1479_s30 + $0x148] sm:$0xff] }
  0x1e   : > { %212 = vst [vmem:[%s1487_s5 + $0x88] sm:$0xff] %v211_v17  ;;  %214 = vst [vmem:[%s1487_s5 + $0x90] sm:$0xff] %v213_v18  ;;  %v221_v22 = vld [vmem:[%s1479_s30 + $0x150] sm:$0xff]  ;;  %v223_v23 = vld [vmem:[%s1479_s30 + $0x158] sm:$0xff] }
  0x1f   : > { %216 = vst [vmem:[%s1487_s5 + $0x98] sm:$0xff] %v215_v19  ;;  %218 = vst [vmem:[%s1487_s5 + $0xa0] sm:$0xff] %v217_v20  ;;  %v225_v24 = vld [vmem:[%s1479_s30 + $0x180] sm:$0xff]  ;;  %v227_v25 = vld [vmem:[%s1479_s30 + $0x188] sm:$0xff] }
  0x20   : > { %220 = vst [vmem:[%s1487_s5 + $0xa8] sm:$0xff] %v219_v21  ;;  %222 = vst [vmem:[%s1487_s5 + $0xb0] sm:$0xff] %v221_v22  ;;  %v229_v26 = vld [vmem:[%s1479_s30 + $0x190] sm:$0xff]  ;;  %v231_v27 = vld [vmem:[%s1479_s30 + $0x198] sm:$0xff] }
  0x21   : > { %224 = vst [vmem:[%s1487_s5 + $0xb8] sm:$0xff] %v223_v23  ;;  %226 = vst [vmem:[%s1487_s5 + $0xc0] sm:$0xff] %v225_v24  ;;  %v233_v28 = vld [vmem:[%s1479_s30 + $0x1c0] sm:$0xff]  ;;  %v235_v29 = vld [vmem:[%s1479_s30 + $0x1c8] sm:$0xff] }
  0x22   : > { %228 = vst [vmem:[%s1487_s5 + $0xc8] sm:$0xff] %v227_v25  ;;  %230 = vst [vmem:[%s1487_s5 + $0xd0] sm:$0xff] %v229_v26  ;;  %v237_v30 = vld [vmem:[%s1479_s30 + $0x1d0] sm:$0xff]  ;;  %v239_v31 = vld [vmem:[%s1479_s30 + $0x1d8] sm:$0xff] }
  0x23   : > { %232 = vst [vmem:[%s1487_s5 + $0xd8] sm:$0xff] %v231_v27  ;;  %234 = vst [vmem:[%s1487_s5 + $0xe0] sm:$0xff] %v233_v28  ;;  %v241_v32 = vld [vmem:[%s1479_s30 + $0x200] sm:$0xff]  ;;  %v243_v33 = vld [vmem:[%s1479_s30 + $0x208] sm:$0xff] }
  0x24   : > { %236 = vst [vmem:[%s1487_s5 + $0xe8] sm:$0xff] %v235_v29  ;;  %238 = vst [vmem:[%s1487_s5 + $0xf0] sm:$0xff] %v237_v30  ;;  %v245_v34 = vld [vmem:[%s1479_s30 + $0x210] sm:$0xff]  ;;  %v247_v35 = vld [vmem:[%s1479_s30 + $0x218] sm:$0xff] }
  0x25   : > { %240 = vst [vmem:[%s1487_s5 + $0xf8] sm:$0xff] %v239_v31  ;;  %242 = vst [vmem:[%s1487_s5 + $0x100] sm:$0xff] %v241_v32  ;;  %v249_v36 = vld [vmem:[%s1479_s30 + $0x240] sm:$0xff]  ;;  %v251_v37 = vld [vmem:[%s1479_s30 + $0x248] sm:$0xff] }
  0x26   : > { %244 = vst [vmem:[%s1487_s5 + $0x108] sm:$0xff] %v243_v33  ;;  %246 = vst [vmem:[%s1487_s5 + $0x110] sm:$0xff] %v245_v34  ;;  %v253_v38 = vld [vmem:[%s1479_s30 + $0x250] sm:$0xff]  ;;  %v255_v39 = vld [vmem:[%s1479_s30 + $0x258] sm:$0xff] }
  0x27   : > { %248 = vst [vmem:[%s1487_s5 + $0x118] sm:$0xff] %v247_v35  ;;  %250 = vst [vmem:[%s1487_s5 + $0x120] sm:$0xff] %v249_v36  ;;  %v257_v40 = vld [vmem:[%s1479_s30 + $0x280] sm:$0xff]  ;;  %v259_v41 = vld [vmem:[%s1479_s30 + $0x288] sm:$0xff] }
  0x28   : > { %252 = vst [vmem:[%s1487_s5 + $0x128] sm:$0xff] %v251_v37  ;;  %254 = vst [vmem:[%s1487_s5 + $0x130] sm:$0xff] %v253_v38  ;;  %v261_v42 = vld [vmem:[%s1479_s30 + $0x290] sm:$0xff]  ;;  %v263_v43 = vld [vmem:[%s1479_s30 + $0x298] sm:$0xff] }
  0x29   : > { %256 = vst [vmem:[%s1487_s5 + $0x138] sm:$0xff] %v255_v39  ;;  %258 = vst [vmem:[%s1487_s5 + $0x140] sm:$0xff] %v257_v40  ;;  %v265_v44 = vld [vmem:[%s1479_s30 + $0x2c0] sm:$0xff]  ;;  %v267_v45 = vld [vmem:[%s1479_s30 + $0x2c8] sm:$0xff] }
  0x2a   : > { %260 = vst [vmem:[%s1487_s5 + $0x148] sm:$0xff] %v259_v41  ;;  %262 = vst [vmem:[%s1487_s5 + $0x150] sm:$0xff] %v261_v42  ;;  %v269_v46 = vld [vmem:[%s1479_s30 + $0x2d0] sm:$0xff]  ;;  %v271_v47 = vld [vmem:[%s1479_s30 + $0x2d8] sm:$0xff] }
  0x2b   : > { %264 = vst [vmem:[%s1487_s5 + $0x158] sm:$0xff] %v263_v43  ;;  %266 = vst [vmem:[%s1487_s5 + $0x160] sm:$0xff] %v265_v44  ;;  %v273_v48 = vld [vmem:[%s1479_s30 + $0x300] sm:$0xff]  ;;  %v275_v49 = vld [vmem:[%s1479_s30 + $0x308] sm:$0xff] }
  0x2c   : > { %268 = vst [vmem:[%s1487_s5 + $0x168] sm:$0xff] %v267_v45  ;;  %270 = vst [vmem:[%s1487_s5 + $0x170] sm:$0xff] %v269_v46  ;;  %v277_v50 = vld [vmem:[%s1479_s30 + $0x310] sm:$0xff]  ;;  %v279_v51 = vld [vmem:[%s1479_s30 + $0x318] sm:$0xff] }
  0x2d   : > { %272 = vst [vmem:[%s1487_s5 + $0x178] sm:$0xff] %v271_v47  ;;  %274 = vst [vmem:[%s1487_s5 + $0x180] sm:$0xff] %v273_v48  ;;  %v281_v52 = vld [vmem:[%s1479_s30 + $0x340] sm:$0xff]  ;;  %v283_v53 = vld [vmem:[%s1479_s30 + $0x348] sm:$0xff] }
  0x2e   : > { %276 = vst [vmem:[%s1487_s5 + $0x188] sm:$0xff] %v275_v49  ;;  %278 = vst [vmem:[%s1487_s5 + $0x190] sm:$0xff] %v277_v50  ;;  %v285_v54 = vld [vmem:[%s1479_s30 + $0x350] sm:$0xff]  ;;  %v287_v55 = vld [vmem:[%s1479_s30 + $0x358] sm:$0xff] }
  0x2f   : > { %280 = vst [vmem:[%s1487_s5 + $0x198] sm:$0xff] %v279_v51  ;;  %282 = vst [vmem:[%s1487_s5 + $0x1a0] sm:$0xff] %v281_v52  ;;  %v289_v56 = vld [vmem:[%s1479_s30 + $0x380] sm:$0xff]  ;;  %v291_v57 = vld [vmem:[%s1479_s30 + $0x388] sm:$0xff] }
  0x30   : > { %284 = vst [vmem:[%s1487_s5 + $0x1a8] sm:$0xff] %v283_v53  ;;  %286 = vst [vmem:[%s1487_s5 + $0x1b0] sm:$0xff] %v285_v54  ;;  %v293_v58 = vld [vmem:[%s1479_s30 + $0x390] sm:$0xff]  ;;  %v295_v59 = vld [vmem:[%s1479_s30 + $0x398] sm:$0xff] }
  0x31   : > { %288 = vst [vmem:[%s1487_s5 + $0x1b8] sm:$0xff] %v287_v55  ;;  %290 = vst [vmem:[%s1487_s5 + $0x1c0] sm:$0xff] %v289_v56  ;;  %v297_v60 = vld [vmem:[%s1479_s30 + $0x3c0] sm:$0xff]  ;;  %v299_v61 = vld [vmem:[%s1479_s30 + $0x3c8] sm:$0xff] }
  0x32   : > { %292 = vst [vmem:[%s1487_s5 + $0x1c8] sm:$0xff] %v291_v57  ;;  %294 = vst [vmem:[%s1487_s5 + $0x1d0] sm:$0xff] %v293_v58  ;;  %v301_v62 = vld [vmem:[%s1479_s30 + $0x3d0] sm:$0xff]  ;;  %v303_v63 = vld [vmem:[%s1479_s30 + $0x3d8] sm:$0xff] }
  0x33   : > { %296 = vst [vmem:[%s1487_s5 + $0x1d8] sm:$0xff] %v295_v59  ;;  %298 = vst [vmem:[%s1487_s5 + $0x1e0] sm:$0xff] %v297_v60  ;;  %v305_v0 = vld [vmem:[%s1479_s30 + $0x400] sm:$0xff]  ;;  %v307_v1 = vld [vmem:[%s1479_s30 + $0x408] sm:$0xff] }
  0x34   : > { %300 = vst [vmem:[%s1487_s5 + $0x1e8] sm:$0xff] %v299_v61  ;;  %302 = vst [vmem:[%s1487_s5 + $0x1f0] sm:$0xff] %v301_v62  ;;  %v309_v2 = vld [vmem:[%s1479_s30 + $0x410] sm:$0xff]  ;;  %v311_v3 = vld [vmem:[%s1479_s30 + $0x418] sm:$0xff] }
  0x35   : > { %304 = vst [vmem:[%s1487_s5 + $0x1f8] sm:$0xff] %v303_v63  ;;  %306 = vst [vmem:[%s1487_s5 + $0x200] sm:$0xff] %v305_v0  ;;  %v313_v4 = vld [vmem:[%s1479_s30 + $0x440] sm:$0xff]  ;;  %v315_v5 = vld [vmem:[%s1479_s30 + $0x448] sm:$0xff] }
  0x36   : > { %308 = vst [vmem:[%s1487_s5 + $0x208] sm:$0xff] %v307_v1  ;;  %310 = vst [vmem:[%s1487_s5 + $0x210] sm:$0xff] %v309_v2  ;;  %v317_v6 = vld [vmem:[%s1479_s30 + $0x450] sm:$0xff]  ;;  %v319_v7 = vld [vmem:[%s1479_s30 + $0x458] sm:$0xff] }
  0x37   : > { %312 = vst [vmem:[%s1487_s5 + $0x218] sm:$0xff] %v311_v3  ;;  %314 = vst [vmem:[%s1487_s5 + $0x220] sm:$0xff] %v313_v4 }
  0x38   : > { %316 = vst [vmem:[%s1487_s5 + $0x228] sm:$0xff] %v315_v5  ;;  %318 = vst [vmem:[%s1487_s5 + $0x230] sm:$0xff] %v317_v6 }
  0x39   : > { %320 = vst [vmem:[%s1487_s5 + $0x238] sm:$0xff] %v319_v7 }
  0x3a PF: > { %326 = sbr.rel (!%p1463_p4) target bundleno = 70 (0x46), region = 51  ;;  %s328_s6 = sand.u32 (%p1463_p4), 1, %s1401_s16  }
  0x3b   : > { %s1350_s7 = sshll.u32 (%p1463_p4), %s1405_s17, 6  ;;  %s1260_s8 = sshll.u32 (%p1463_p4), %s328_s6, 7 }
  0x3c   : > { %s1634_s11 = scalar_lea.vmem (%p1463_p4), %s1857_s3, %s1350_s7  ;;  %s330_s12 = scalar_lea.vmem (%p1463_p4), [#allocation3], %s1260_s8 }
  0x3d   : > { %v346_v8 = vld [vmem:[%s1634_s11] sm:$0xff] (%p1463_p4)  ;;  %v348_v9 = vld [vmem:[%s1634_s11 + $0x8] sm:$0xff] (%p1463_p4)  ;;  %v350_v10 = vld [vmem:[%s1634_s11 + $0x10] sm:$0xff] (%p1463_p4) }
  0x3e   : > { %347 = vst [vmem:[%s330_s12] sm:$0xff] (%p1463_p4), %v346_v8  ;;  %349 = vst [vmem:[%s330_s12 + $0x8] sm:$0xff] (%p1463_p4), %v348_v9  ;;  %v352_v11 = vld [vmem:[%s1634_s11 + $0x18] sm:$0xff] (%p1463_p4)  ;;  %v354_v12 = vld [vmem:[%s1634_s11 + $0x20] sm:$0xff] (%p1463_p4) }
  0x3f   : > { %351 = vst [vmem:[%s330_s12 + $0x10] sm:$0xff] (%p1463_p4), %v350_v10  ;;  %v356_v13 = vld [vmem:[%s1634_s11 + $0x28] sm:$0xff] (%p1463_p4)  ;;  %353 = vst [vmem:[%s330_s12 + $0x18] sm:$0xff] (%p1463_p4), %v352_v11  ;;  %v358_v14 = vld [vmem:[%s1634_s11 + $0x30] sm:$0xff] (%p1463_p4) }
  0x40   : > { %355 = vst [vmem:[%s330_s12 + $0x20] sm:$0xff] (%p1463_p4), %v354_v12  ;;  %357 = vst [vmem:[%s330_s12 + $0x28] sm:$0xff] (%p1463_p4), %v356_v13  ;;  %v360_v15 = vld [vmem:[%s1634_s11 + $0x38] sm:$0xff] (%p1463_p4)  ;;  %v362_v16 = vld [vmem:[%s1634_s11 + $0x80] sm:$0xff] (%p1463_p4) }
  0x41   : > { %359 = vst [vmem:[%s330_s12 + $0x30] sm:$0xff] %v358_v14  ;;  %361 = vst [vmem:[%s330_s12 + $0x38] sm:$0xff] %v360_v15  ;;  %v364_v17 = vld [vmem:[%s1634_s11 + $0x88] sm:$0xff]  ;;  %v366_v18 = vld [vmem:[%s1634_s11 + $0x90] sm:$0xff] }
  0x42   : > { %363 = vst [vmem:[%s330_s12 + $0x40] sm:$0xff] %v362_v16  ;;  %v368_v19 = vld [vmem:[%s1634_s11 + $0x98] sm:$0xff]  ;;  %365 = vst [vmem:[%s330_s12 + $0x48] sm:$0xff] %v364_v17  ;;  %v370_v20 = vld [vmem:[%s1634_s11 + $0xa0] sm:$0xff] }
  0x43   : > { %367 = vst [vmem:[%s330_s12 + $0x50] sm:$0xff] %v366_v18  ;;  %369 = vst [vmem:[%s330_s12 + $0x58] sm:$0xff] %v368_v19  ;;  %v372_v21 = vld [vmem:[%s1634_s11 + $0xa8] sm:$0xff]  ;;  %v374_v22 = vld [vmem:[%s1634_s11 + $0xb0] sm:$0xff] }
  0x44   : > { %371 = vst [vmem:[%s330_s12 + $0x60] sm:$0xff] %v370_v20  ;;  %373 = vst [vmem:[%s330_s12 + $0x68] sm:$0xff] %v372_v21  ;;  %v376_v23 = vld [vmem:[%s1634_s11 + $0xb8] sm:$0xff] }
  0x45   : > { %375 = vst [vmem:[%s330_s12 + $0x70] sm:$0xff] %v374_v22  ;;  %377 = vst [vmem:[%s330_s12 + $0x78] sm:$0xff] %v376_v23 }
  0x46 PF: > { %p1263_p7 = scmp.ge.s32.totalorder %s1405_s17, 1  ;;  %p382_p8 = scmp.lt.s32.totalorder %s1405_s17, 3 }
  0x48   : > { %p383_p9 = pnand %p1263_p7, %p382_p8 }
  0x49   : > { %s389_s13 = sand.u32 (!%p383_p9), 1, %s1397_s15   ;;  %v1658_v24 = vld [vmem:[%s1854_s0 + $0x4] ss:$8 sps:$4 sm:$0xff] (!%p383_p9)   ;;  %vm883_vm0 = vcmask (!%p383_p9), 130048   ;;  %v1407_v26 = vmov (!%p383_p9), 0  }
  0x4a   : > { %386 = sbr.rel (%p383_p9) target bundleno = 384 (0x180), region = 74  ;;  %v502_v25 = vld [vmem:[%s1856_s2] sm:$0xff] (!%p383_p9)  ;;  %1340 = vmatprep.mubr.msk.bf16.mxu0 (!%p383_p9), %vm883_vm0, %v1658_v24  ;;  %1341 = vmatprep.mubr.msk.bf16.mxu1 (!%p383_p9), %vm883_vm0, %v1658_v24  ;;  %v503_v46 = vld [vmem:[%s1856_s2 + $0x8] sm:$0xff] (!%p383_p9)  ;;  %s1763_s5 = sshll.u32 (!%p383_p9), %s389_s13, 7 }
  0x4b   : > { %s1353_s21 = smul.u32 (!%p383_p9), 576, %s389_s13  ;;  %1379 = vset.pattern.permute.xlu0 (!%p383_p9), %v1407_v26  ;;  %s1766_s6 = scalar_lea.vmem (!%p383_p9), [#allocation3], %s1763_s5 }
  0x4c   : > { %506 = vperm.xlu0 (!%p383_p9), %1379, %v502_v25   ;;  %s1787_s15 = scalar_lea.vmem (!%p383_p9), [#allocation4], %s1763_s5 }
  0x4d   : > { %s1669_s26 = scalar_lea.vmem (!%p383_p9), [#allocation2], %s1353_s21 }
  0x4e   : > { %v430_v27 = vld [vmem:[%s1669_s26] sm:$0xff] (!%p383_p9)  ;;  %v431_v29 = vld [vmem:[%s1669_s26 + $0x8] sm:$0xff] (!%p383_p9) }
  0x4f   : > { %v434_v28 = vld [vmem:[%s1669_s26 + $0x20] sm:$0xff] (!%p383_p9)  ;;  %v435_v31 = vld [vmem:[%s1669_s26 + $0x28] sm:$0xff] (!%p383_p9) }
  0x50   : > { %v1269_v30 = vcombine.high (!%p383_p9), %v430_v27, %v434_v28  ;;  %v1268_v32 = vcombine.low (!%p383_p9), %v430_v27, %v434_v28  ;;  %v438_v33 = vld [vmem:[%s1669_s26 + $0x40] sm:$0xff] (!%p383_p9)  ;;  %v1271_v35 = vcombine.high (!%p383_p9), %v431_v29, %v435_v31  ;;  %v1270_v36 = vcombine.low (!%p383_p9), %v431_v29, %v435_v31  ;;  %v439_v38 = vld [vmem:[%s1669_s26 + $0x48] sm:$0xff] (!%p383_p9)  ;;  %511 = vperm.xlu0 (!%p383_p9), %1379, %v503_v46   ;;  %v441_v46 = vld [vmem:[%s1669_s26 + $0x58] sm:$0xff] (!%p383_p9) }
  0x51   : > { %v442_v34 = vld [vmem:[%s1669_s26 + $0x60] sm:$0xff]  ;;  %v443_v39 = vld [vmem:[%s1669_s26 + $0x68] sm:$0xff]  ;;  %s1351_s7 = sshll.u32 (%p1467_p5), %s1254_s18, 6 }
  0x52   : > { %v1277_v37 = vcombine.high %v438_v33, %v442_v34  ;;  %v446_v40 = vld [vmem:[%s1669_s26 + $0x80] sm:$0xff]  ;;  %887 = vmatprep.subr.bf16.mxu0 %v1269_v30  ;;  %v1279_v41 = vcombine.high %v439_v38, %v443_v39  ;;  %v447_v43 = vld [vmem:[%s1669_s26 + $0x88] sm:$0xff]  ;;  %930 = vmatprep.subr.bf16.mxu1 %v1271_v35  ;;  %v1276_v45 = vcombine.low %v438_v33, %v442_v34  ;;  %v432_v35 = vld [vmem:[%s1669_s26 + $0x10] sm:$0xff]  ;;  %s1132_s24 = scalar_lea.vmem (%p1467_p5), %s1858_s4, %s1351_s7 }
  0x53   : > { %v450_v42 = vld [vmem:[%s1669_s26 + $0xa0] sm:$0xff]  ;;  %v451_v44 = vld [vmem:[%s1669_s26 + $0xa8] sm:$0xff]  ;;  %888 = vmatpush1.bf16.msra.mxu0 %v1268_v32  ;;  %931 = vmatpush1.bf16.msra.mxu1 %v1270_v36  ;;  %v1278_v47 = vcombine.low %v439_v38, %v443_v39  ;;  %v436_v36 = vld [vmem:[%s1669_s26 + $0x30] sm:$0xff] }
  0x54   : > { %889 = vmatprep.subr.bf16.mxu0 %v1277_v37  ;;  %v1285_v48 = vcombine.high %v446_v40, %v450_v42  ;;  %932 = vmatprep.subr.bf16.mxu1 %v1279_v41  ;;  %v1287_v49 = vcombine.high %v447_v43, %v451_v44  ;;  %v454_v50 = vld [vmem:[%s1669_s26 + $0xc0] sm:$0xff]  ;;  %v455_v52 = vld [vmem:[%s1669_s26 + $0xc8] sm:$0xff]  ;;  %v1284_v54 = vcombine.low %v446_v40, %v450_v42  ;;  %v433_v37 = vld [vmem:[%s1669_s26 + $0x18] sm:$0xff] }
  0x55   : > { %v458_v51 = vld [vmem:[%s1669_s26 + $0xe0] sm:$0xff]  ;;  %v459_v53 = vld [vmem:[%s1669_s26 + $0xe8] sm:$0xff]  ;;  %v1286_v55 = vcombine.low %v447_v43, %v451_v44  ;;  %v437_v38 = vld [vmem:[%s1669_s26 + $0x38] sm:$0xff]  ;;  %v1273_v41 = vcombine.high %v432_v35, %v436_v36 }
  0x56   : > { %v1293_v56 = vcombine.high %v454_v50, %v458_v51  ;;  %v1295_v57 = vcombine.high %v455_v52, %v459_v53  ;;  %v462_v58 = vld [vmem:[%s1669_s26 + $0x100] sm:$0xff]  ;;  %v463_v60 = vld [vmem:[%s1669_s26 + $0x108] sm:$0xff]  ;;  %v1292_v62 = vcombine.low %v454_v50, %v458_v51  ;;  %v1294_v63 = vcombine.low %v455_v52, %v459_v53  ;;  %v440_v43 = vld [vmem:[%s1669_s26 + $0x50] sm:$0xff] }
  0x57   : > { %890 = vmatpush1.bf16.msra.mxu0 %v1276_v45  ;;  %933 = vmatpush1.bf16.msra.mxu1 %v1278_v47  ;;  %v466_v59 = vld [vmem:[%s1669_s26 + $0x120] sm:$0xff]  ;;  %v467_v61 = vld [vmem:[%s1669_s26 + $0x128] sm:$0xff]  ;;  %v1275_v42 = vcombine.high %v433_v37, %v437_v38  ;;  %v444_v44 = vld [vmem:[%s1669_s26 + $0x70] sm:$0xff] }
  0x58   : > { %891 = vmatprep.subr.bf16.mxu0 %v1285_v48  ;;  %934 = vmatprep.subr.bf16.mxu1 %v1287_v49  ;;  %v1301_v0 = vcombine.high %v462_v58, %v466_v59  ;;  %v1303_v1 = vcombine.high %v463_v60, %v467_v61  ;;  %v470_v2 = vld [vmem:[%s1669_s26 + $0x140] sm:$0xff]  ;;  %v471_v4 = vld [vmem:[%s1669_s26 + $0x148] sm:$0xff]  ;;  %v1300_v6 = vcombine.low %v462_v58, %v466_v59  ;;  %v445_v47 = vld [vmem:[%s1669_s26 + $0x78] sm:$0xff] }
  0x59   : > { %v474_v3 = vld [vmem:[%s1669_s26 + $0x160] sm:$0xff]  ;;  %v475_v5 = vld [vmem:[%s1669_s26 + $0x168] sm:$0xff]  ;;  %v1302_v7 = vcombine.low %v463_v60, %v467_v61  ;;  %v1272_v48 = vcombine.low %v432_v35, %v436_v36  ;;  %v1274_v49 = vcombine.low %v433_v37, %v437_v38  ;;  %v1281_v50 = vcombine.high %v440_v43, %v444_v44  ;;  %v448_v52 = vld [vmem:[%s1669_s26 + $0x90] sm:$0xff] }
  0x5a   : > { %v1309_v8 = vcombine.high %v470_v2, %v474_v3  ;;  %v1311_v9 = vcombine.high %v471_v4, %v475_v5  ;;  %v478_v10 = vld [vmem:[%s1669_s26 + $0x180] sm:$0xff]  ;;  %v479_v12 = vld [vmem:[%s1669_s26 + $0x188] sm:$0xff]  ;;  %v1308_v14 = vcombine.low %v470_v2, %v474_v3  ;;  %v1310_v15 = vcombine.low %v471_v4, %v475_v5  ;;  %v452_v53 = vld [vmem:[%s1669_s26 + $0xb0] sm:$0xff] }
  0x5b   : > { %892 = vmatpush1.bf16.msra.mxu0 %v1284_v54  ;;  %935 = vmatpush1.bf16.msra.mxu1 %v1286_v55  ;;  %v482_v11 = vld [vmem:[%s1669_s26 + $0x1a0] sm:$0xff]  ;;  %v483_v13 = vld [vmem:[%s1669_s26 + $0x1a8] sm:$0xff]  ;;  %v1283_v51 = vcombine.high %v441_v46, %v445_v47  ;;  %v449_v54 = vld [vmem:[%s1669_s26 + $0x98] sm:$0xff]  ;;  %v1289_v58 = vcombine.high %v448_v52, %v452_v53 }
  0x5c   : > { %893 = vmatprep.subr.bf16.mxu0 %v1293_v56  ;;  %936 = vmatprep.subr.bf16.mxu1 %v1295_v57  ;;  %v1317_v16 = vcombine.high %v478_v10, %v482_v11  ;;  %v1319_v17 = vcombine.high %v479_v12, %v483_v13  ;;  %v486_v18 = vld [vmem:[%s1669_s26 + $0x1c0] sm:$0xff]  ;;  %v487_v20 = vld [vmem:[%s1669_s26 + $0x1c8] sm:$0xff]  ;;  %v1316_v22 = vcombine.low %v478_v10, %v482_v11  ;;  %v453_v55 = vld [vmem:[%s1669_s26 + $0xb8] sm:$0xff] }
  0x5d   : > { %v490_v19 = vld [vmem:[%s1669_s26 + $0x1e0] sm:$0xff]  ;;  %v491_v21 = vld [vmem:[%s1669_s26 + $0x1e8] sm:$0xff]  ;;  %v1318_v23 = vcombine.low %v479_v12, %v483_v13  ;;  %v1280_v56 = vcombine.low %v440_v43, %v444_v44  ;;  %v1282_v57 = vcombine.low %v441_v46, %v445_v47  ;;  %v1291_v59 = vcombine.high %v449_v54, %v453_v55  ;;  %v456_v60 = vld [vmem:[%s1669_s26 + $0xd0] sm:$0xff] }
  0x5e   : > { %v1325_v25 = vcombine.high %v486_v18, %v490_v19  ;;  %v1327_v26 = vcombine.high %v487_v20, %v491_v21  ;;  %v494_v27 = vld [vmem:[%s1669_s26 + $0x200] sm:$0xff]  ;;  %v495_v29 = vld [vmem:[%s1669_s26 + $0x208] sm:$0xff]  ;;  %v1324_v31 = vcombine.low %v486_v18, %v490_v19  ;;  %v1326_v32 = vcombine.low %v487_v20, %v491_v21  ;;  %v460_v61 = vld [vmem:[%s1669_s26 + $0xf0] sm:$0xff] }
  0x5f   : > { %894 = vmatpush1.bf16.msra.mxu0 %v1292_v62  ;;  %937 = vmatpush1.bf16.msra.mxu1 %v1294_v63  ;;  %v498_v28 = vld [vmem:[%s1669_s26 + $0x220] sm:$0xff]  ;;  %v499_v30 = vld [vmem:[%s1669_s26 + $0x228] sm:$0xff]  ;;  %v457_v62 = vld [vmem:[%s1669_s26 + $0xd8] sm:$0xff]  ;;  %v1297_v2 = vcombine.high %v456_v60, %v460_v61 }
  0x60   : > { %895 = vmatprep.subr.bf16.mxu0 %v1301_v0  ;;  %938 = vmatprep.subr.bf16.mxu1 %v1303_v1  ;;  %v1333_v33 = vcombine.high %v494_v27, %v498_v28  ;;  %v1335_v34 = vcombine.high %v495_v29, %v499_v30  ;;  %v1332_v39 = vcombine.low %v494_v27, %v498_v28  ;;  %v1719_v45 = vld [vmem:[%s1854_s0] ss:$8 sps:$4 sm:$0xff]   ;;  %v461_v63 = vld [vmem:[%s1669_s26 + $0xf8] sm:$0xff]  ;;  %v464_v4 = vld [vmem:[%s1669_s26 + $0x110] sm:$0xff] }
  0x61   : > { %v1334_v40 = vcombine.low %v495_v29, %v499_v30  ;;  %v1288_v0 = vcombine.low %v448_v52, %v452_v53  ;;  %v1290_v1 = vcombine.low %v449_v54, %v453_v55  ;;  %v1299_v3 = vcombine.high %v457_v62, %v461_v63  ;;  %v468_v5 = vld [vmem:[%s1669_s26 + $0x130] sm:$0xff]  ;;  %v473_v13 = vld [vmem:[%s1669_s26 + $0x158] sm:$0xff]  ;;  %v1060_v54 = vld [vmem:[%s1766_s6 + $0x8] sm:$0xff] }
  0x62   : > { %v472_v11 = vld [vmem:[%s1669_s26 + $0x150] sm:$0xff]  ;;  %v481_v21 = vld [vmem:[%s1669_s26 + $0x198] sm:$0xff] }
  0x63   : > { %896 = vmatpush1.bf16.msra.mxu0 %v1300_v6  ;;  %939 = vmatpush1.bf16.msra.mxu1 %v1302_v7  ;;  %v465_v6 = vld [vmem:[%s1669_s26 + $0x118] sm:$0xff]  ;;  %v476_v12 = vld [vmem:[%s1669_s26 + $0x170] sm:$0xff] }
  0x64   : > { %897 = vmatprep.subr.bf16.mxu0 %v1309_v8  ;;  %940 = vmatprep.subr.bf16.mxu1 %v1311_v9  ;;  %v469_v7 = vld [vmem:[%s1669_s26 + $0x138] sm:$0xff]  ;;  %v1296_v8 = vcombine.low %v456_v60, %v460_v61  ;;  %v1305_v9 = vcombine.high %v464_v4, %v468_v5  ;;  %v480_v19 = vld [vmem:[%s1669_s26 + $0x190] sm:$0xff]  ;;  %v1067_v60 = vld [vmem:[%s1766_s6 + $0x40] sm:$0xff] }
  0x65   : > { %v1307_v10 = vcombine.high %v465_v6, %v469_v7  ;;  %v484_v20 = vld [vmem:[%s1669_s26 + $0x1b0] sm:$0xff]  ;;  %v489_v30 = vld [vmem:[%s1669_s26 + $0x1d8] sm:$0xff] }
  0x66   : > { %v488_v28 = vld [vmem:[%s1669_s26 + $0x1d0] sm:$0xff]  ;;  %v497_v38 = vld [vmem:[%s1669_s26 + $0x218] sm:$0xff] }
  0x67   : > { %898 = vmatpush1.bf16.msra.mxu0 %v1308_v14  ;;  %941 = vmatpush1.bf16.msra.mxu1 %v1310_v15  ;;  %v477_v14 = vld [vmem:[%s1669_s26 + $0x178] sm:$0xff]  ;;  %v1304_v15 = vcombine.low %v464_v4, %v468_v5  ;;  %v492_v29 = vld [vmem:[%s1669_s26 + $0x1f0] sm:$0xff] }
  0x68   : > { %899 = vmatprep.subr.bf16.mxu0 %v1317_v16  ;;  %942 = vmatprep.subr.bf16.mxu1 %v1319_v17  ;;  %v1306_v16 = vcombine.low %v465_v6, %v469_v7  ;;  %v1313_v17 = vcombine.high %v472_v11, %v476_v12  ;;  %v1315_v18 = vcombine.high %v473_v13, %v477_v14  ;;  %v496_v36 = vld [vmem:[%s1669_s26 + $0x210] sm:$0xff] }
  0x69   : > { %v500_v37 = vld [vmem:[%s1669_s26 + $0x230] sm:$0xff] }
  0x6a   : > { %v1336_v44 = vcombine.low %v496_v36, %v500_v37  ;;  %v1061_v52 = vld [vmem:[%s1766_s6 + $0x10] sm:$0xff] }
  0x6b   : > { %900 = vmatpush1.bf16.msra.mxu0 %v1316_v22  ;;  %943 = vmatpush1.bf16.msra.mxu1 %v1318_v23  ;;  %v485_v22 = vld [vmem:[%s1669_s26 + $0x1b8] sm:$0xff]  ;;  %v1312_v23 = vcombine.low %v472_v11, %v476_v12 }
  0x6c   : > { %901 = vmatprep.subr.bf16.mxu0 %v1325_v25  ;;  %944 = vmatprep.subr.bf16.mxu1 %v1327_v26  ;;  %v1314_v25 = vcombine.low %v473_v13, %v477_v14  ;;  %v1321_v26 = vcombine.high %v480_v19, %v484_v20  ;;  %v1323_v27 = vcombine.high %v481_v21, %v485_v22 }
  0x6f   : > { %902 = vmatpush1.bf16.msra.mxu0 %v1324_v31  ;;  %945 = vmatpush1.bf16.msra.mxu1 %v1326_v32  ;;  %v493_v31 = vld [vmem:[%s1669_s26 + $0x1f8] sm:$0xff]  ;;  %v1320_v32 = vcombine.low %v480_v19, %v484_v20 }
  0x70   : > { %903 = vmatprep.subr.bf16.mxu0 %v1333_v33  ;;  %946 = vmatprep.subr.bf16.mxu1 %v1335_v34  ;;  %v1322_v33 = vcombine.low %v481_v21, %v485_v22  ;;  %v1329_v34 = vcombine.high %v488_v28, %v492_v29  ;;  %v1331_v35 = vcombine.high %v489_v30, %v493_v31 }
  0x73   : > { %904 = vmatpush1.bf16.msra.mxu0 %v1332_v39  ;;  %947 = vmatpush1.bf16.msra.mxu1 %v1334_v40  ;;  %v501_v39 = vld [vmem:[%s1669_s26 + $0x238] sm:$0xff]  ;;  %v1328_v40 = vcombine.low %v488_v28, %v492_v29  ;;  %v1065_v28 = vld [vmem:[%s1766_s6 + $0x30] sm:$0xff] }
  0x74   : > { %973 = vmatprep.subr.bf16.mxu0 %v1273_v41  ;;  %1016 = vmatprep.subr.bf16.mxu1 %v1275_v42  ;;  %v1330_v41 = vcombine.low %v489_v30, %v493_v31  ;;  %v1337_v42 = vcombine.high %v496_v36, %v500_v37  ;;  %v1339_v43 = vcombine.high %v497_v38, %v501_v39  ;;  %v1064_v30 = vld [vmem:[%s1766_s6 + $0x28] sm:$0xff]  ;;  %v1071_v36 = vld [vmem:[%s1766_s6 + $0x60] sm:$0xff] }
  0x75   : > { %v1338_v46 = vcombine.low %v497_v38, %v501_v39 }
  0x76   : > { %920 = vmatmul.mubr.bf16.vlgmr.msra.gmra.mrb[0].mxu0 %v1719_v45  ;;  %963 = vmatmul.mubr.bf16.vlgmr.msra.gmra.mrb[0].mxu1 %v1719_v45 }
  0x77   : > { %974 = vmatpush1.bf16.msra.mxu0 %v1272_v48  ;;  %1017 = vmatpush1.bf16.msra.mxu1 %v1274_v49  ;;  %v1059_v49 = vld [vmem:[%s1766_s6] sm:$0xff] }
  0x78   : > { %975 = vmatprep.subr.bf16.mxu0 %v1281_v50  ;;  %1018 = vmatprep.subr.bf16.mxu1 %v1283_v51 }
  0x79   : > { %1342 = vmatprep.mubr.msk.bf16.mxu0 %vm883_vm0, %v1658_v24  ;;  %1343 = vmatprep.mubr.msk.bf16.mxu1 %vm883_vm0, %v1658_v24  ;;  %v1298_v24 = vcombine.low %v457_v62, %v461_v63 }
  0x7b   : > { %976 = vmatpush1.bf16.msra.mxu0 %v1280_v56  ;;  %1019 = vmatpush1.bf16.msra.mxu1 %v1282_v57 }
  0x7c   : > { %977 = vmatprep.subr.bf16.mxu0 %v1289_v58  ;;  %1020 = vmatprep.subr.bf16.mxu1 %v1291_v59  ;;  %v1062_v58 = vld [vmem:[%s1766_s6 + $0x18] sm:$0xff] }
  0x7f   : > { %978 = vmatpush1.bf16.msra.mxu0 %v1288_v0  ;;  %1021 = vmatpush1.bf16.msra.mxu1 %v1290_v1  ;;  %v1069_v1 = vld [vmem:[%s1766_s6 + $0x50] sm:$0xff] }
  0x80   : > { %979 = vmatprep.subr.bf16.mxu0 %v1297_v2  ;;  %1022 = vmatprep.subr.bf16.mxu1 %v1299_v3  ;;  %v1068_v3 = vld [vmem:[%s1766_s6 + $0x48] sm:$0xff] }
  0x83   : > { %980 = vmatpush1.bf16.msra.mxu0 %v1296_v8  ;;  %1023 = vmatpush1.bf16.msra.mxu1 %v1298_v24  ;;  %v1070_v24 = vld [vmem:[%s1766_s6 + $0x58] sm:$0xff] }
  0x84   : > { %981 = vmatprep.subr.bf16.mxu0 %v1305_v9  ;;  %1024 = vmatprep.subr.bf16.mxu1 %v1307_v10 }
  0x87   : > { %982 = vmatpush1.bf16.msra.mxu0 %v1304_v15  ;;  %1025 = vmatpush1.bf16.msra.mxu1 %v1306_v16 }
  0x88   : > { %983 = vmatprep.subr.bf16.mxu0 %v1313_v17  ;;  %1026 = vmatprep.subr.bf16.mxu1 %v1315_v18 }
  0x8b   : > { %984 = vmatpush1.bf16.msra.mxu0 %v1312_v23  ;;  %1027 = vmatpush1.bf16.msra.mxu1 %v1314_v25  ;;  %v1063_v25 = vld [vmem:[%s1766_s6 + $0x20] sm:$0xff] }
  0x8c   : > { %985 = vmatprep.subr.bf16.mxu0 %v1321_v26  ;;  %1028 = vmatprep.subr.bf16.mxu1 %v1323_v27 }
  0x8f   : > { %986 = vmatpush1.bf16.msra.mxu0 %v1320_v32  ;;  %1029 = vmatpush1.bf16.msra.mxu1 %v1322_v33 }
  0x90   : > { %987 = vmatprep.subr.bf16.mxu0 %v1329_v34  ;;  %1030 = vmatprep.subr.bf16.mxu1 %v1331_v35  ;;  %v1066_v34 = vld [vmem:[%s1766_s6 + $0x38] sm:$0xff] }
  0x93   : > { %988 = vmatpush1.bf16.msra.mxu0 %v1328_v40  ;;  %1031 = vmatpush1.bf16.msra.mxu1 %v1330_v41  ;;  %v1073_v41 = vld [vmem:[%s1766_s6 + $0x70] sm:$0xff] }
  0x94   : > { %989 = vmatprep.subr.bf16.mxu0 %v1337_v42  ;;  %1032 = vmatprep.subr.bf16.mxu1 %v1339_v43  ;;  %v1072_v43 = vld [vmem:[%s1766_s6 + $0x68] sm:$0xff] }
  0x97   : > { %990 = vmatpush1.bf16.msra.mxu0 %v1336_v44  ;;  %1033 = vmatpush1.bf16.msra.mxu1 %v1338_v46 }
  0x9a   : > { %1006 = vmatmul.mubr.bf16.vlgmr.msra.gmra.mrb[4].mxu0 %v1719_v45  ;;  %1049 = vmatmul.mubr.bf16.vlgmr.msra.gmra.mrb[4].mxu1 %v1719_v45 }
  0xcb   : > { %v1759_v47 = vpop.permute.xlu0 %506 }
  0xcf   : > { %v1769_v50 = vpop.permute.xlu0 %511 }
 0x149   : > { %v921_v48 = vpop.f32.mrb[0].mxu0  ;;  %v964_v51 = vpop.f32.mrb[0].mxu1 }
 0x14a   : > { %v922_v45 = vadd.f32 %v921_v48, %v1759_v47  ;;  %v923_v53 = vpop.f32.mrb[1].mxu0  ;;  %v965_v55 = vadd.f32 %v964_v51, %v1759_v47  ;;  %v966_v57 = vpop.f32.mrb[1].mxu1  ;;  %v1074_v51 = vld [vmem:[%s1766_s6 + $0x78] sm:$0xff] }
 0x14b   : > { %v924_v56 = vadd.f32 %v923_v53, %v1759_v47  ;;  %v925_v59 = vpop.f32.mrb[2].mxu0  ;;  %v967_v62 = vadd.f32 %v966_v57, %v1759_v47  ;;  %v968_v0 = vpop.f32.mrb[2].mxu1 }
 0x14c   : > { %v1075_v61 = vadd.f32 %v1059_v49, %v922_v45  ;;  %v926_v63 = vadd.f32 %v925_v59, %v1769_v50  ;;  %v927_v2 = vpop.f32.mrb[3].mxu0  ;;  %v1077_v4 = vadd.f32 %v1061_v52, %v965_v55  ;;  %v969_v6 = vadd.f32 %v968_v0, %v1769_v50  ;;  %v970_v8 = vpop.f32.mrb[3].mxu1 }
 0x14d   : > { %v1076_v5 = vadd.f32 %v1060_v54, %v924_v56  ;;  %v928_v7 = vadd.f32 %v927_v2, %v1769_v50  ;;  %v1078_v10 = vadd.f32 %v1062_v58, %v967_v62  ;;  %v971_v12 = vadd.f32 %v970_v8, %v1769_v50 }
 0x14e   : > { %v1091_v9 = vmax.f32 %v1075_v61, 0.0  ;;  %v1083_v11 = vadd.f32 %v1067_v60, %v926_v63  ;;  %v1093_v13 = vmax.f32 %v1077_v4, 0.0  ;;  %v1085_v15 = vadd.f32 %v1069_v1, %v969_v6 }
 0x14f   : > { %v1092_v14 = vmax.f32 %v1076_v5, 0.0  ;;  %v1084_v16 = vadd.f32 %v1068_v3, %v928_v7  ;;  %v1094_v17 = vmax.f32 %v1078_v10, 0.0  ;;  %v1086_v19 = vadd.f32 %v1070_v24, %v971_v12 }
 0x150   : > { %1107 = vst [vmem:[%s1787_s15] sm:$0xff] %v1091_v9  ;;  %v1099_v18 = vmax.f32 %v1083_v11, 0.0  ;;  %1109 = vst [vmem:[%s1787_s15 + $0x10] sm:$0xff] %v1093_v13  ;;  %v1101_v20 = vmax.f32 %v1085_v15, 0.0 }
 0x151   : > { %1108 = vst [vmem:[%s1787_s15 + $0x8] sm:$0xff] %v1092_v14  ;;  %v1100_v21 = vmax.f32 %v1084_v16, 0.0  ;;  %1110 = vst [vmem:[%s1787_s15 + $0x18] sm:$0xff] %v1094_v17  ;;  %v1102_v22 = vmax.f32 %v1086_v19, 0.0 }
 0x152   : > { %1115 = vst [vmem:[%s1787_s15 + $0x40] sm:$0xff] %v1099_v18  ;;  %1117 = vst [vmem:[%s1787_s15 + $0x50] sm:$0xff] %v1101_v20 }
 0x153   : > { %1116 = vst [vmem:[%s1787_s15 + $0x48] sm:$0xff] %v1100_v21  ;;  %1118 = vst [vmem:[%s1787_s15 + $0x58] sm:$0xff] %v1102_v22 }
 0x157   : > { %v1149_v2 = vld [vmem:[%s1787_s15 + $0x10] sm:$0xff] (%p1467_p5) }
 0x158   : > { %v1147_v1 = vld [vmem:[%s1787_s15 + $0x8] sm:$0xff] (%p1467_p5)  ;;  %v1151_v3 = vld [vmem:[%s1787_s15 + $0x18] sm:$0xff] (%p1467_p5)  ;;  %1150 = vst [vmem:[%s1132_s24 + $0x10] sm:$0xff] (%p1467_p5), %v1149_v2 }
 0x159   : > { %1148 = vst [vmem:[%s1132_s24 + $0x8] sm:$0xff] (%p1467_p5), %v1147_v1  ;;  %1152 = vst [vmem:[%s1132_s24 + $0x18] sm:$0xff] (%p1467_p5), %v1151_v3  ;;  %v1161_v8 = vld [vmem:[%s1787_s15 + $0x40] sm:$0xff] (%p1467_p5)  ;;  %v1165_v9 = vld [vmem:[%s1787_s15 + $0x50] sm:$0xff] (%p1467_p5) }
 0x15a   : > { %1162 = vst [vmem:[%s1132_s24 + $0x80] sm:$0xff] (%p1467_p5), %v1161_v8  ;;  %v1163_v24 = vld [vmem:[%s1787_s15 + $0x48] sm:$0xff] (%p1467_p5)  ;;  %v1167_v10 = vld [vmem:[%s1787_s15 + $0x58] sm:$0xff] (%p1467_p5)  ;;  %1166 = vst [vmem:[%s1132_s24 + $0x90] sm:$0xff] (%p1467_p5), %v1165_v9 }
 0x15b   : > { %1164 = vst [vmem:[%s1132_s24 + $0x88] sm:$0xff] (%p1467_p5), %v1163_v24  ;;  %1168 = vst [vmem:[%s1132_s24 + $0x98] sm:$0xff] (%p1467_p5), %v1167_v10 }
 0x16d   : > { %v1007_v23 = vpop.f32.mrb[4].mxu0  ;;  %v1050_v27 = vpop.f32.mrb[4].mxu1 }
 0x16e   : > { %v1008_v26 = vadd.f32 %v1007_v23, %v1759_v47  ;;  %v1009_v29 = vpop.f32.mrb[5].mxu0  ;;  %v1051_v31 = vadd.f32 %v1050_v27, %v1759_v47  ;;  %v1052_v33 = vpop.f32.mrb[5].mxu1 }
 0x16f   : > { %v1010_v32 = vadd.f32 %v1009_v29, %v1759_v47  ;;  %v1011_v35 = vpop.f32.mrb[6].mxu0  ;;  %v1053_v38 = vadd.f32 %v1052_v33, %v1759_v47  ;;  %v1054_v40 = vpop.f32.mrb[6].mxu1 }
 0x170   : > { %v1079_v37 = vadd.f32 %v1063_v25, %v1008_v26  ;;  %v1012_v39 = vadd.f32 %v1011_v35, %v1769_v50  ;;  %v1013_v42 = vpop.f32.mrb[7].mxu0  ;;  %v1081_v44 = vadd.f32 %v1065_v28, %v1051_v31  ;;  %v1055_v48 = vadd.f32 %v1054_v40, %v1769_v50  ;;  %v1056_v45 = vpop.f32.mrb[7].mxu1 }
 0x171   : > { %v1080_v46 = vadd.f32 %v1064_v30, %v1010_v32  ;;  %v1014_v49 = vadd.f32 %v1013_v42, %v1769_v50  ;;  %v1082_v47 = vadd.f32 %v1066_v34, %v1053_v38  ;;  %v1057_v54 = vadd.f32 %v1056_v45, %v1769_v50  ;;  %1129 = sbr.rel (!%p1467_p5) target bundleno = 384 (0x180), region = 86  ;;  %v1145_v50 = vld [vmem:[%s1787_s15] sm:$0xff] (%p1467_p5) }
 0x172   : > { %v1095_v52 = vmax.f32 %v1079_v37, 0.0  ;;  %v1087_v53 = vadd.f32 %v1071_v36, %v1012_v39  ;;  %v1097_v55 = vmax.f32 %v1081_v44, 0.0  ;;  %v1089_v57 = vadd.f32 %v1073_v41, %v1055_v48  ;;  %1146 = vst [vmem:[%s1132_s24] sm:$0xff] (%p1467_p5), %v1145_v50 }
 0x173   : > { %v1096_v56 = vmax.f32 %v1080_v46, 0.0  ;;  %v1088_v58 = vadd.f32 %v1072_v43, %v1014_v49  ;;  %v1098_v59 = vmax.f32 %v1082_v47, 0.0  ;;  %v1090_v61 = vadd.f32 %v1074_v51, %v1057_v54 }
 0x174   : > { %1111 = vst [vmem:[%s1787_s15 + $0x20] sm:$0xff] %v1095_v52  ;;  %v1103_v60 = vmax.f32 %v1087_v53, 0.0  ;;  %1113 = vst [vmem:[%s1787_s15 + $0x30] sm:$0xff] %v1097_v55  ;;  %v1105_v62 = vmax.f32 %v1089_v57, 0.0 }
 0x175   : > { %1112 = vst [vmem:[%s1787_s15 + $0x28] sm:$0xff] %v1096_v56  ;;  %v1104_v63 = vmax.f32 %v1088_v58, 0.0  ;;  %1114 = vst [vmem:[%s1787_s15 + $0x38] sm:$0xff] %v1098_v59  ;;  %v1106_v0 = vmax.f32 %v1090_v61, 0.0 }
 0x176   : > { %1119 = vst [vmem:[%s1787_s15 + $0x60] sm:$0xff] %v1103_v60  ;;  %1121 = vst [vmem:[%s1787_s15 + $0x70] sm:$0xff] %v1105_v62 }
 0x177   : > { %1120 = vst [vmem:[%s1787_s15 + $0x68] sm:$0xff] %v1104_v63  ;;  %1122 = vst [vmem:[%s1787_s15 + $0x78] sm:$0xff] %v1106_v0 }
 0x17b   : > { %v1153_v4 = vld [vmem:[%s1787_s15 + $0x20] sm:$0xff]  ;;  %v1157_v6 = vld [vmem:[%s1787_s15 + $0x30] sm:$0xff] }
 0x17c   : > { %v1155_v5 = vld [vmem:[%s1787_s15 + $0x28] sm:$0xff]  ;;  %1154 = vst [vmem:[%s1132_s24 + $0x20] sm:$0xff] %v1153_v4  ;;  %v1159_v7 = vld [vmem:[%s1787_s15 + $0x38] sm:$0xff]  ;;  %1158 = vst [vmem:[%s1132_s24 + $0x30] sm:$0xff] %v1157_v6 }
 0x17d   : > { %1156 = vst [vmem:[%s1132_s24 + $0x28] sm:$0xff] %v1155_v5  ;;  %1160 = vst [vmem:[%s1132_s24 + $0x38] sm:$0xff] %v1159_v7  ;;  %v1169_v11 = vld [vmem:[%s1787_s15 + $0x60] sm:$0xff]  ;;  %v1173_v13 = vld [vmem:[%s1787_s15 + $0x70] sm:$0xff] }
 0x17e   : > { %v1171_v12 = vld [vmem:[%s1787_s15 + $0x68] sm:$0xff]  ;;  %1170 = vst [vmem:[%s1132_s24 + $0xa0] sm:$0xff] %v1169_v11  ;;  %1174 = vst [vmem:[%s1132_s24 + $0xb0] sm:$0xff] %v1173_v13  ;;  %v1175_v14 = vld [vmem:[%s1787_s15 + $0x78] sm:$0xff] }
 0x17f   : > { %1172 = vst [vmem:[%s1132_s24 + $0xa8] sm:$0xff] %v1171_v12  ;;  %1176 = vst [vmem:[%s1132_s24 + $0xb8] sm:$0xff] %v1175_v14 }
 0x180 PF: > { %p11_p10 = scmp.ge.s32.totalorder %s1450_s19, 4   ;;  %s1861_s15 = smov %s1401_s16 }
 0x181   : > { %s1862_s16 = smov %s1461_s22  ;;  %s1863_s17 = smov %s1450_s19 }
 0x182   :  { %13 = sbr.rel (!%p11_p10) target bundleno = 2 (0x2), region = 148 }

// kernel: _lambda_.11
= control target key start
LH: loop header
LB: loop body
LE: loop exit
PB: predicated region body
PF: predicated region fallthrough
CT: control target
= control target key end

     0   :  { %s762_s12 = smov 0   ;;  %s764_s13 = smov 0   ;;  %s890_s0 = inlined_call_operand.vmem [shape: bf16[32,144], index: 0, kind: input, shape index: {}]   ;;  %s891_s1 = inlined_call_operand.vmem [shape: bf16[144,512], index: 1, kind: input, shape index: {}]   ;;  %s892_s2 = inlined_call_operand.vmem [shape: f32[32,1], index: 2, kind: input, shape index: {}]   ;;  %s893_s3 = inlined_call_operand.vmem [shape: f32[32,512], index: 3, kind: output, shape index: {}]  }
   0x1   :  { %s766_s14 = smov 0  }
   0x2 LB: > { %s598_s15 = sadd.s32 4294967295, %s739_s14   ;;  %s779_s16 = sadd.s32 1, %s739_s14   ;;  %s739_s14 = sphi %s766_s14, %s897_s14   ;;  %s735_s13 = sphi %s764_s13, %s896_s13   ;;  %s731_s12 = sphi %s762_s12, %s895_s12  }
   0x3   : > { %s38_s17 = ssub.s32 %s739_s14, %s779_s16  ;;  %s41_s18 = sadd.s32 1, %s735_s13 }
   0x4   : > { %p39_p0 = scmp.eq.s32.totalorder %s38_s17, 0  ;;  %p48_p1 = scmp.ne.s32.totalorder %s735_s13, %s731_s12 }
   0x5   : > { %p49_p2 = scmp.eq.s32.totalorder %s739_s14, 0  ;;  %p99_p3 = scmp.eq.s32.totalorder %s598_s15, 1 }
   0x6   : > { %s790_s19 = scalar_select %p39_p0, %s735_s13, %s41_s18  }
   0x7   : > { %p50_p4 = por %p49_p2, %p48_p1  ;;  %p792_p5 = por %p99_p3, %p48_p1 }
   0x8   : > { %p601_p6 = scmp.ge.s32.totalorder %s739_s14, 2 }
   0xa   : > { %127 = sbr.rel (%p601_p6) target bundleno = 30 (0x1e), region = 24 }
  0x11   : > { %130 = sbr.rel (!%p50_p4) target bundleno = 30 (0x1e), region = 28  ;;  %s132_s21 = sand.u32 (%p50_p4), 1, %s735_s13  }
  0x12   : > { %s635_s22 = sshll.u32 (%p50_p4), %s739_s14, 3  ;;  %s655_s23 = smul.u32 (%p50_p4), 144, %s132_s21 }
  0x13   : > { %s802_s26 = scalar_lea.vmem (%p50_p4), %s891_s1, %s635_s22 }
  0x14   : > { %v199_v0 = vld [vmem:[%s802_s26] sm:$0xff] (%p50_p4)  ;;  %v201_v1 = vld [vmem:[%s802_s26 + $0x10] sm:$0xff] (%p50_p4)  ;;  %s134_s27 = scalar_lea.vmem (%p50_p4), [#allocation2], %s655_s23 }
  0x15   : > { %v203_v2 = vld [vmem:[%s802_s26 + $0x20] sm:$0xff] (%p50_p4)  ;;  %v205_v3 = vld [vmem:[%s802_s26 + $0x30] sm:$0xff] (%p50_p4)  ;;  %200 = vst [vmem:[%s134_s27] sm:$0xff] (%p50_p4), %v199_v0  ;;  %202 = vst [vmem:[%s134_s27 + $0x8] sm:$0xff] (%p50_p4), %v201_v1 }
  0x16   : > { %v207_v4 = vld [vmem:[%s802_s26 + $0x40] sm:$0xff] (%p50_p4)  ;;  %v209_v5 = vld [vmem:[%s802_s26 + $0x50] sm:$0xff] (%p50_p4)  ;;  %204 = vst [vmem:[%s134_s27 + $0x10] sm:$0xff] (%p50_p4), %v203_v2  ;;  %206 = vst [vmem:[%s134_s27 + $0x18] sm:$0xff] (%p50_p4), %v205_v3 }
  0x17   : > { %208 = vst [vmem:[%s134_s27 + $0x20] sm:$0xff] (%p50_p4), %v207_v4  ;;  %210 = vst [vmem:[%s134_s27 + $0x28] sm:$0xff] (%p50_p4), %v209_v5  ;;  %v211_v6 = vld [vmem:[%s802_s26 + $0x60] sm:$0xff] (%p50_p4)  ;;  %v213_v7 = vld [vmem:[%s802_s26 + $0x70] sm:$0xff] (%p50_p4) }
  0x18   : > { %v215_v8 = vld [vmem:[%s802_s26 + $0x80] sm:$0xff]  ;;  %212 = vst [vmem:[%s134_s27 + $0x30] sm:$0xff] %v211_v6  ;;  %214 = vst [vmem:[%s134_s27 + $0x38] sm:$0xff] %v213_v7  ;;  %v217_v9 = vld [vmem:[%s802_s26 + $0x90] sm:$0xff] }
  0x19   : > { %216 = vst [vmem:[%s134_s27 + $0x40] sm:$0xff] %v215_v8  ;;  %v219_v10 = vld [vmem:[%s802_s26 + $0xa0] sm:$0xff]  ;;  %v221_v11 = vld [vmem:[%s802_s26 + $0xb0] sm:$0xff]  ;;  %218 = vst [vmem:[%s134_s27 + $0x48] sm:$0xff] %v217_v9 }
  0x1a   : > { %220 = vst [vmem:[%s134_s27 + $0x50] sm:$0xff] %v219_v10  ;;  %222 = vst [vmem:[%s134_s27 + $0x58] sm:$0xff] %v221_v11  ;;  %v223_v12 = vld [vmem:[%s802_s26 + $0xc0] sm:$0xff]  ;;  %v225_v13 = vld [vmem:[%s802_s26 + $0xd0] sm:$0xff] }
  0x1b   : > { %v227_v14 = vld [vmem:[%s802_s26 + $0xe0] sm:$0xff]  ;;  %224 = vst [vmem:[%s134_s27 + $0x60] sm:$0xff] %v223_v12  ;;  %226 = vst [vmem:[%s134_s27 + $0x68] sm:$0xff] %v225_v13  ;;  %v229_v15 = vld [vmem:[%s802_s26 + $0xf0] sm:$0xff] }
  0x1c   : > { %228 = vst [vmem:[%s134_s27 + $0x70] sm:$0xff] %v227_v14  ;;  %v231_v16 = vld [vmem:[%s802_s26 + $0x100] sm:$0xff]  ;;  %v233_v17 = vld [vmem:[%s802_s26 + $0x110] sm:$0xff]  ;;  %230 = vst [vmem:[%s134_s27 + $0x78] sm:$0xff] %v229_v15 }
  0x1d   : > { %232 = vst [vmem:[%s134_s27 + $0x80] sm:$0xff] %v231_v16  ;;  %234 = vst [vmem:[%s134_s27 + $0x88] sm:$0xff] %v233_v17 }
  0x1e PF: > { %p604_p7 = scmp.ge.s32.totalorder %s739_s14, 1  ;;  %p239_p8 = scmp.lt.s32.totalorder %s739_s14, 3 }
  0x20   : > { %p240_p9 = pnand %p604_p7, %p239_p8 }
  0x21   : > { %s246_s28 = sand.u32 (!%p240_p9), 1, %s731_s12   ;;  %vm425_vm0 = vcmask (!%p240_p9), 130048   ;;  %v713_v18 = vld [vmem:[%s890_s0 + $0x4] ss:$8 sps:$4 sm:$0xff] (!%p240_p9)   ;;  %v716_v19 = vld [vmem:[%s890_s0 + $0x14] ss:$8 sps:$4 sm:$0xff] (!%p240_p9)  }
  0x22   : > { %243 = sbr.rel (%p240_p9) target bundleno = 304 (0x130), region = 66  ;;  %v741_v20 = vmov (!%p240_p9), 0   ;;  %v295_v21 = vld [vmem:[%s892_s2 + $0x10] sm:$0xff] (!%p240_p9)  ;;  %628 = vmatprep.mubr.msk.bf16.mxu0 (!%p240_p9), %vm425_vm0, %v713_v18  ;;  %v293_v22 = vld [vmem:[%s892_s2] sm:$0xff] (!%p240_p9)  ;;  %629 = vmatprep.mubr.msk.bf16.mxu1 (!%p240_p9), %vm425_vm0, %v716_v19  ;;  %v296_v24 = vld [vmem:[%s892_s2 + $0x18] sm:$0xff] (!%p240_p9)  ;;  %s605_s27 = sshll.u32 (!%p240_p9), %s246_s28, 6 }
  0x23   : > { %s656_s29 = smul.u32 (!%p240_p9), 144, %s246_s28  ;;  %683 = vset.pattern.permute.xlu1 (!%p240_p9), %v741_v20  ;;  %682 = vset.pattern.permute.xlu0 (!%p240_p9), %v741_v20  ;;  %v294_v27 = vld [vmem:[%s892_s2 + $0x8] sm:$0xff] (!%p240_p9)  ;;  %v714_v44 = vld [vmem:[%s890_s0 + $0x10] ss:$8 sps:$4 sm:$0xff] (!%p240_p9)   ;;  %s267_s12 = scalar_lea.vmem (!%p240_p9), [#allocation3], %s605_s27 }
  0x24   : > { %309 = vperm.xlu1 (!%p240_p9), %683, %v295_v21   ;;  %299 = vperm.xlu0 (!%p240_p9), %682, %v293_v22   ;;  %v711_v43 = vld [vmem:[%s890_s0] ss:$8 sps:$4 sm:$0xff] (!%p240_p9)  }
  0x25   : > { %s839_s11 = scalar_lea.vmem (!%p240_p9), [#allocation2], %s656_s29 }
  0x26   : > { %v684_v23 = vld [vmem:[%s839_s11 + $0x4] ss:$8 sps:$4 sm:$0xff] (!%p240_p9)   ;;  %v686_v25 = vld [vmem:[%s839_s11] ss:$8 sps:$4 sm:$0xff] (!%p240_p9)   ;;  %v687_v26 = vld [vmem:[%s839_s11 + $0x14] ss:$8 sps:$4 sm:$0xff] (!%p240_p9)  }
  0x27   : > { %432 = vmatprep.subr.bf16.mxu0 (!%p240_p9), %v684_v23  ;;  %637 = vmatprep.subr.bf16.mxu1 (!%p240_p9), %v684_v23  ;;  %v689_v28 = vld [vmem:[%s839_s11 + $0x10] ss:$8 sps:$4 sm:$0xff] (!%p240_p9)   ;;  %v690_v29 = vld [vmem:[%s839_s11 + $0x24] ss:$8 sps:$4 sm:$0xff] (!%p240_p9)   ;;  %v692_v30 = vld [vmem:[%s839_s11 + $0x20] ss:$8 sps:$4 sm:$0xff] (!%p240_p9)  }
  0x28   : > { %433 = vmatpush1.bf16.msra.mxu0 (!%p240_p9), %v686_v25  ;;  %646 = vmatpush1.bf16.msra.mxu1 (!%p240_p9), %v686_v25  ;;  %v693_v31 = vld [vmem:[%s839_s11 + $0x34] ss:$8 sps:$4 sm:$0xff] (!%p240_p9)   ;;  %v695_v32 = vld [vmem:[%s839_s11 + $0x30] ss:$8 sps:$4 sm:$0xff] (!%p240_p9)   ;;  %v696_v33 = vld [vmem:[%s839_s11 + $0x44] ss:$8 sps:$4 sm:$0xff] (!%p240_p9)  }
  0x29   : > { %434 = vmatprep.subr.bf16.mxu0 %v687_v26  ;;  %638 = vmatprep.subr.bf16.mxu1 %v687_v26  ;;  %v698_v34 = vld [vmem:[%s839_s11 + $0x40] ss:$8 sps:$4 sm:$0xff]   ;;  %v699_v35 = vld [vmem:[%s839_s11 + $0x54] ss:$8 sps:$4 sm:$0xff]   ;;  %v701_v36 = vld [vmem:[%s839_s11 + $0x50] ss:$8 sps:$4 sm:$0xff]  }
  0x2a   : > { %314 = vperm.xlu1 %683, %v296_v24   ;;  %304 = vperm.xlu0 %682, %v294_v27   ;;  %v702_v37 = vld [vmem:[%s839_s11 + $0x64] ss:$8 sps:$4 sm:$0xff]   ;;  %v704_v38 = vld [vmem:[%s839_s11 + $0x60] ss:$8 sps:$4 sm:$0xff]   ;;  %v705_v39 = vld [vmem:[%s839_s11 + $0x74] ss:$8 sps:$4 sm:$0xff]  }
  0x2b   : > { %v707_v40 = vld [vmem:[%s839_s11 + $0x70] ss:$8 sps:$4 sm:$0xff]   ;;  %v708_v41 = vld [vmem:[%s839_s11 + $0x84] ss:$8 sps:$4 sm:$0xff]   ;;  %v710_v42 = vld [vmem:[%s839_s11 + $0x80] ss:$8 sps:$4 sm:$0xff]  }
  0x2c   : > { %435 = vmatpush1.bf16.msra.mxu0 %v689_v28  ;;  %647 = vmatpush1.bf16.msra.mxu1 %v689_v28  ;;  %s636_s28 = sshll.u32 (%p792_p5), %s598_s15, 4 }
  0x2d   : > { %436 = vmatprep.subr.bf16.mxu0 %v690_v29  ;;  %639 = vmatprep.subr.bf16.mxu1 %v690_v29  ;;  %s510_s4 = scalar_lea.vmem (%p792_p5), %s893_s3, %s636_s28 }
  0x30   : > { %437 = vmatpush1.bf16.msra.mxu0 %v692_v30  ;;  %648 = vmatpush1.bf16.msra.mxu1 %v692_v30 }
  0x31   : > { %438 = vmatprep.subr.bf16.mxu0 %v693_v31  ;;  %640 = vmatprep.subr.bf16.mxu1 %v693_v31 }
  0x34   : > { %439 = vmatpush1.bf16.msra.mxu0 %v695_v32  ;;  %649 = vmatpush1.bf16.msra.mxu1 %v695_v32 }
  0x35   : > { %440 = vmatprep.subr.bf16.mxu0 %v696_v33  ;;  %641 = vmatprep.subr.bf16.mxu1 %v696_v33 }
  0x38   : > { %441 = vmatpush1.bf16.msra.mxu0 %v698_v34  ;;  %650 = vmatpush1.bf16.msra.mxu1 %v698_v34 }
  0x39   : > { %442 = vmatprep.subr.bf16.mxu0 %v699_v35  ;;  %642 = vmatprep.subr.bf16.mxu1 %v699_v35 }
  0x3c   : > { %443 = vmatpush1.bf16.msra.mxu0 %v701_v36  ;;  %651 = vmatpush1.bf16.msra.mxu1 %v701_v36 }
  0x3d   : > { %444 = vmatprep.subr.bf16.mxu0 %v702_v37  ;;  %643 = vmatprep.subr.bf16.mxu1 %v702_v37 }
  0x40   : > { %445 = vmatpush1.bf16.msra.mxu0 %v704_v38  ;;  %652 = vmatpush1.bf16.msra.mxu1 %v704_v38 }
  0x41   : > { %446 = vmatprep.subr.bf16.mxu0 %v705_v39  ;;  %644 = vmatprep.subr.bf16.mxu1 %v705_v39 }
  0x44   : > { %447 = vmatpush1.bf16.msra.mxu0 %v707_v40  ;;  %653 = vmatpush1.bf16.msra.mxu1 %v707_v40 }
  0x45   : > { %448 = vmatprep.subr.bf16.mxu0 %v708_v41  ;;  %645 = vmatprep.subr.bf16.mxu1 %v708_v41 }
  0x48   : > { %449 = vmatpush1.bf16.msra.mxu0 %v710_v42  ;;  %654 = vmatpush1.bf16.msra.mxu1 %v710_v42 }
  0x4b   : > { %465 = vmatmul.mubr.bf16.vlgmr.msra.gmra.mrb[0].mxu0 %v711_v43  ;;  %475 = vmatmul.mubr.bf16.vlgmr.msra.gmra.mrb[0].mxu1 %v714_v44 }
  0xa3   : > { %v310_v45 = vpop.permute.xlu1 %309  ;;  %v300_v46 = vpop.permute.xlu0 %299 }
  0xa9   : > { %v315_v47 = vpop.permute.xlu1 %314  ;;  %v305_v48 = vpop.permute.xlu0 %304 }
 0x11e   : > { %v466_v49 = vpop.f32.mrb[0].mxu0  ;;  %v476_v50 = vpop.f32.mrb[0].mxu1 }
 0x11f   : > { %v467_v51 = vadd.f32 %v466_v49, %v300_v46  ;;  %v477_v52 = vadd.f32 %v476_v50, %v310_v45  ;;  %v468_v53 = vpop.f32.mrb[1].mxu0  ;;  %v478_v54 = vpop.f32.mrb[1].mxu1 }
 0x120   : > { %v469_v55 = vadd.f32 %v468_v53, %v300_v46  ;;  %v479_v56 = vadd.f32 %v478_v54, %v310_v45  ;;  %v470_v57 = vpop.f32.mrb[2].mxu0  ;;  %v480_v58 = vpop.f32.mrb[2].mxu1  ;;  %507 = sbr.rel (!%p792_p5) target bundleno = 304 (0x130), region = 74 }
 0x121   : > { %v485_v59 = vmax.f32 %v467_v51, 0.0  ;;  %v489_v60 = vmax.f32 %v477_v52, 0.0  ;;  %v471_v61 = vadd.f32 %v470_v57, %v305_v48  ;;  %v481_v62 = vadd.f32 %v480_v58, %v315_v47  ;;  %v472_v63 = vpop.f32.mrb[3].mxu0  ;;  %v482_v0 = vpop.f32.mrb[3].mxu1 }
 0x122   : > { %v486_v1 = vmax.f32 %v469_v55, 0.0  ;;  %v490_v2 = vmax.f32 %v479_v56, 0.0  ;;  %v473_v3 = vadd.f32 %v472_v63, %v305_v48  ;;  %v483_v4 = vadd.f32 %v482_v0, %v315_v47 }
 0x123   : > { %493 = vst [vmem:[%s267_s12] sm:$0xff] %v485_v59  ;;  %497 = vst [vmem:[%s267_s12 + $0x20] sm:$0xff] %v489_v60  ;;  %v487_v5 = vmax.f32 %v471_v61, 0.0  ;;  %v491_v6 = vmax.f32 %v481_v62, 0.0 }
 0x124   : > { %494 = vst [vmem:[%s267_s12 + $0x8] sm:$0xff] %v486_v1  ;;  %498 = vst [vmem:[%s267_s12 + $0x28] sm:$0xff] %v490_v2  ;;  %v488_v7 = vmax.f32 %v473_v3, 0.0  ;;  %v492_v8 = vmax.f32 %v483_v4, 0.0 }
 0x125   : > { %495 = vst [vmem:[%s267_s12 + $0x10] sm:$0xff] %v487_v5  ;;  %499 = vst [vmem:[%s267_s12 + $0x30] sm:$0xff] %v491_v6 }
 0x126   : > { %496 = vst [vmem:[%s267_s12 + $0x18] sm:$0xff] %v488_v7  ;;  %500 = vst [vmem:[%s267_s12 + $0x38] sm:$0xff] %v492_v8 }
 0x12a   : > { %v523_v9 = vld [vmem:[%s267_s12] sm:$0xff] }
 0x12b   : > { %v525_v10 = vld [vmem:[%s267_s12 + $0x8] sm:$0xff]  ;;  %v531_v13 = vld [vmem:[%s267_s12 + $0x20] sm:$0xff]  ;;  %524 = vst [vmem:[%s510_s4] sm:$0xff] %v523_v9 }
 0x12c   : > { %v527_v11 = vld [vmem:[%s267_s12 + $0x10] sm:$0xff]  ;;  %v533_v14 = vld [vmem:[%s267_s12 + $0x28] sm:$0xff]  ;;  %526 = vst [vmem:[%s510_s4 + $0x8] sm:$0xff] %v525_v10  ;;  %532 = vst [vmem:[%s510_s4 + $0x40] sm:$0xff] %v531_v13 }
 0x12d   : > { %v529_v12 = vld [vmem:[%s267_s12 + $0x18] sm:$0xff]  ;;  %528 = vst [vmem:[%s510_s4 + $0x20] sm:$0xff] %v527_v11  ;;  %534 = vst [vmem:[%s510_s4 + $0x48] sm:$0xff] %v533_v14  ;;  %v535_v15 = vld [vmem:[%s267_s12 + $0x30] sm:$0xff] }
 0x12e   : > { %530 = vst [vmem:[%s510_s4 + $0x28] sm:$0xff] %v529_v12  ;;  %v537_v16 = vld [vmem:[%s267_s12 + $0x38] sm:$0xff]  ;;  %536 = vst [vmem:[%s510_s4 + $0x60] sm:$0xff] %v535_v15 }
 0x12f   : > { %538 = vst [vmem:[%s510_s4 + $0x68] sm:$0xff] %v537_v16 }
 0x130 PF: > { %p10_p10 = scmp.ge.s32.totalorder %s779_s16, 4   ;;  %s895_s12 = smov %s735_s13 }
 0x131   : > { %s896_s13 = smov %s790_s19  ;;  %s897_s14 = smov %s779_s16 }
 0x132   :  { %12 = sbr.rel (!%p10_p10) target bundleno = 2 (0x2), region = 128 }

// kernel: _lambda_.12
= control target key start
LH: loop header
LB: loop body
LE: loop exit
PB: predicated region body
PF: predicated region fallthrough
CT: control target
= control target key end

     0   :  { %s1382_s21 = smov 0   ;;  %s1384_s22 = smov 0   ;;  %s1650_s0 = inlined_call_operand.vmem [shape: bf16[32,288], index: 0, kind: input, shape index: {}]   ;;  %s1651_s1 = inlined_call_operand.vmem [shape: bf16[288,512], index: 1, kind: input, shape index: {}]   ;;  %s1652_s2 = inlined_call_operand.vmem [shape: f32[32,1], index: 2, kind: input, shape index: {}, may-alias: {2,5}]   ;;  %s1653_s3 = inlined_call_operand.vmem [shape: bf16[32,16], index: 3, kind: input, shape index: {}]   ;;  %s1654_s4 = inlined_call_operand.vmem [shape: bf16[16,512], index: 4, kind: input, shape index: {}]   ;;  %s1655_s5 = inlined_call_operand.vmem [shape: f32[32,1], index: 5, kind: input, shape index: {}, may-alias: {2,5}]   ;;  %s1656_s6 = inlined_call_operand.vmem [shape: f32[32,512], index: 6, kind: output, shape index: {}]  }
   0x1   :  { %s1386_s23 = smov 0  }
   0x2 LB: > { %s1132_s24 = sadd.s32 4294967295, %s1344_s23   ;;  %s1399_s25 = sadd.s32 1, %s1344_s23   ;;  %s1344_s23 = sphi %s1386_s23, %s1661_s23   ;;  %s1340_s22 = sphi %s1384_s22, %s1660_s22   ;;  %s1336_s21 = sphi %s1382_s21, %s1659_s21  }
   0x3   : > { %s41_s26 = ssub.s32 %s1344_s23, %s1399_s25  ;;  %s44_s27 = sadd.s32 1, %s1340_s22 }
   0x4   : > { %p42_p0 = scmp.eq.s32.totalorder %s41_s26, 0  ;;  %p51_p1 = scmp.ne.s32.totalorder %s1340_s22, %s1336_s21 }
   0x5   : > { %p52_p2 = scmp.eq.s32.totalorder %s1344_s23, 0  ;;  %p170_p3 = scmp.eq.s32.totalorder %s1132_s24, 1 }
   0x6   : > { %s1410_s28 = scalar_select %p42_p0, %s1340_s22, %s44_s27  }
   0x7   : > { %p1412_p4 = por %p52_p2, %p51_p1  ;;  %p1416_p5 = por %p170_p3, %p51_p1 }
   0x8   : > { %p1135_p6 = scmp.ge.s32.totalorder %s1344_s23, 2 }
   0xa   : > { %204 = sbr.rel (%p1135_p6) target bundleno = 46 (0x2e), region = 32 }
  0x11   : > { %207 = sbr.rel (!%p1412_p4) target bundleno = 39 (0x27), region = 36  ;;  %s209_s7 = sand.u32 (%p1412_p4), 1, %s1340_s22  }
  0x12   : > { %s1199_s8 = sshll.u32 (%p1412_p4), %s1344_s23, 3  ;;  %s1226_s9 = smul.u32 (%p1412_p4), 288, %s209_s7 }
  0x13   : > { %s1428_s12 = scalar_lea.vmem (%p1412_p4), %s1651_s1, %s1199_s8 }
  0x14   : > { %v312_v0 = vld [vmem:[%s1428_s12] sm:$0xff] (%p1412_p4)  ;;  %v314_v1 = vld [vmem:[%s1428_s12 + $0x10] sm:$0xff] (%p1412_p4)  ;;  %s1436_s13 = scalar_lea.vmem (%p1412_p4), [#allocation2], %s1226_s9 }
  0x15   : > { %v316_v2 = vld [vmem:[%s1428_s12 + $0x20] sm:$0xff] (%p1412_p4)  ;;  %v318_v3 = vld [vmem:[%s1428_s12 + $0x30] sm:$0xff] (%p1412_p4)  ;;  %313 = vst [vmem:[%s1436_s13] sm:$0xff] (%p1412_p4), %v312_v0  ;;  %315 = vst [vmem:[%s1436_s13 + $0x8] sm:$0xff] (%p1412_p4), %v314_v1 }
  0x16   : > { %v320_v4 = vld [vmem:[%s1428_s12 + $0x40] sm:$0xff] (%p1412_p4)  ;;  %v322_v5 = vld [vmem:[%s1428_s12 + $0x50] sm:$0xff] (%p1412_p4)  ;;  %317 = vst [vmem:[%s1436_s13 + $0x10] sm:$0xff] (%p1412_p4), %v316_v2  ;;  %319 = vst [vmem:[%s1436_s13 + $0x18] sm:$0xff] (%p1412_p4), %v318_v3 }
  0x17   : > { %321 = vst [vmem:[%s1436_s13 + $0x20] sm:$0xff] (%p1412_p4), %v320_v4  ;;  %323 = vst [vmem:[%s1436_s13 + $0x28] sm:$0xff] (%p1412_p4), %v322_v5  ;;  %v324_v6 = vld [vmem:[%s1428_s12 + $0x60] sm:$0xff] (%p1412_p4)  ;;  %v326_v7 = vld [vmem:[%s1428_s12 + $0x70] sm:$0xff] (%p1412_p4) }
  0x18   : > { %v328_v8 = vld [vmem:[%s1428_s12 + $0x80] sm:$0xff]  ;;  %325 = vst [vmem:[%s1436_s13 + $0x30] sm:$0xff] %v324_v6  ;;  %327 = vst [vmem:[%s1436_s13 + $0x38] sm:$0xff] %v326_v7  ;;  %v330_v9 = vld [vmem:[%s1428_s12 + $0x90] sm:$0xff] }
  0x19   : > { %329 = vst [vmem:[%s1436_s13 + $0x40] sm:$0xff] %v328_v8  ;;  %v332_v10 = vld [vmem:[%s1428_s12 + $0xa0] sm:$0xff]  ;;  %v334_v11 = vld [vmem:[%s1428_s12 + $0xb0] sm:$0xff]  ;;  %331 = vst [vmem:[%s1436_s13 + $0x48] sm:$0xff] %v330_v9 }
  0x1a   : > { %333 = vst [vmem:[%s1436_s13 + $0x50] sm:$0xff] %v332_v10  ;;  %335 = vst [vmem:[%s1436_s13 + $0x58] sm:$0xff] %v334_v11  ;;  %v336_v12 = vld [vmem:[%s1428_s12 + $0xc0] sm:$0xff]  ;;  %v338_v13 = vld [vmem:[%s1428_s12 + $0xd0] sm:$0xff] }
  0x1b   : > { %v340_v14 = vld [vmem:[%s1428_s12 + $0xe0] sm:$0xff]  ;;  %337 = vst [vmem:[%s1436_s13 + $0x60] sm:$0xff] %v336_v12  ;;  %339 = vst [vmem:[%s1436_s13 + $0x68] sm:$0xff] %v338_v13  ;;  %v342_v15 = vld [vmem:[%s1428_s12 + $0xf0] sm:$0xff] }
  0x1c   : > { %341 = vst [vmem:[%s1436_s13 + $0x70] sm:$0xff] %v340_v14  ;;  %v344_v16 = vld [vmem:[%s1428_s12 + $0x100] sm:$0xff]  ;;  %v346_v17 = vld [vmem:[%s1428_s12 + $0x110] sm:$0xff]  ;;  %343 = vst [vmem:[%s1436_s13 + $0x78] sm:$0xff] %v342_v15 }
  0x1d   : > { %345 = vst [vmem:[%s1436_s13 + $0x80] sm:$0xff] %v344_v16  ;;  %347 = vst [vmem:[%s1436_s13 + $0x88] sm:$0xff] %v346_v17  ;;  %v348_v18 = vld [vmem:[%s1428_s12 + $0x120] sm:$0xff]  ;;  %v350_v19 = vld [vmem:[%s1428_s12 + $0x130] sm:$0xff] }
  0x1e   : > { %v352_v20 = vld [vmem:[%s1428_s12 + $0x140] sm:$0xff]  ;;  %349 = vst [vmem:[%s1436_s13 + $0x90] sm:$0xff] %v348_v18  ;;  %351 = vst [vmem:[%s1436_s13 + $0x98] sm:$0xff] %v350_v19  ;;  %v354_v21 = vld [vmem:[%s1428_s12 + $0x150] sm:$0xff] }
  0x1f   : > { %353 = vst [vmem:[%s1436_s13 + $0xa0] sm:$0xff] %v352_v20  ;;  %v356_v22 = vld [vmem:[%s1428_s12 + $0x160] sm:$0xff]  ;;  %v358_v23 = vld [vmem:[%s1428_s12 + $0x170] sm:$0xff]  ;;  %355 = vst [vmem:[%s1436_s13 + $0xa8] sm:$0xff] %v354_v21 }
  0x20   : > { %357 = vst [vmem:[%s1436_s13 + $0xb0] sm:$0xff] %v356_v22  ;;  %359 = vst [vmem:[%s1436_s13 + $0xb8] sm:$0xff] %v358_v23  ;;  %v360_v24 = vld [vmem:[%s1428_s12 + $0x180] sm:$0xff]  ;;  %v362_v25 = vld [vmem:[%s1428_s12 + $0x190] sm:$0xff] }
  0x21   : > { %v364_v26 = vld [vmem:[%s1428_s12 + $0x1a0] sm:$0xff]  ;;  %361 = vst [vmem:[%s1436_s13 + $0xc0] sm:$0xff] %v360_v24  ;;  %363 = vst [vmem:[%s1436_s13 + $0xc8] sm:$0xff] %v362_v25  ;;  %v366_v27 = vld [vmem:[%s1428_s12 + $0x1b0] sm:$0xff] }
  0x22   : > { %365 = vst [vmem:[%s1436_s13 + $0xd0] sm:$0xff] %v364_v26  ;;  %v368_v28 = vld [vmem:[%s1428_s12 + $0x1c0] sm:$0xff]  ;;  %v370_v29 = vld [vmem:[%s1428_s12 + $0x1d0] sm:$0xff]  ;;  %367 = vst [vmem:[%s1436_s13 + $0xd8] sm:$0xff] %v366_v27 }
  0x23   : > { %369 = vst [vmem:[%s1436_s13 + $0xe0] sm:$0xff] %v368_v28  ;;  %371 = vst [vmem:[%s1436_s13 + $0xe8] sm:$0xff] %v370_v29  ;;  %v372_v30 = vld [vmem:[%s1428_s12 + $0x1e0] sm:$0xff]  ;;  %v374_v31 = vld [vmem:[%s1428_s12 + $0x1f0] sm:$0xff] }
  0x24   : > { %v376_v32 = vld [vmem:[%s1428_s12 + $0x200] sm:$0xff]  ;;  %373 = vst [vmem:[%s1436_s13 + $0xf0] sm:$0xff] %v372_v30  ;;  %375 = vst [vmem:[%s1436_s13 + $0xf8] sm:$0xff] %v374_v31  ;;  %v378_v33 = vld [vmem:[%s1428_s12 + $0x210] sm:$0xff] }
  0x25   : > { %377 = vst [vmem:[%s1436_s13 + $0x100] sm:$0xff] %v376_v32  ;;  %v380_v34 = vld [vmem:[%s1428_s12 + $0x220] sm:$0xff]  ;;  %v382_v35 = vld [vmem:[%s1428_s12 + $0x230] sm:$0xff]  ;;  %379 = vst [vmem:[%s1436_s13 + $0x108] sm:$0xff] %v378_v33 }
  0x26   : > { %381 = vst [vmem:[%s1436_s13 + $0x110] sm:$0xff] %v380_v34  ;;  %383 = vst [vmem:[%s1436_s13 + $0x118] sm:$0xff] %v382_v35 }
  0x27 PF: > { %389 = sbr.rel (!%p1412_p4) target bundleno = 46 (0x2e), region = 74  ;;  %s391_s14 = sand.u32 (%p1412_p4), 1, %s1340_s22  }
  0x28   : > { %s1200_s15 = sshll.u32 (%p1412_p4), %s1344_s23, 3  ;;  %s1138_s16 = sshll.u32 (%p1412_p4), %s391_s14, 4 }
  0x29   : > { %s396_s19 = scalar_lea.vmem (%p1412_p4), %s1654_s4, %s1200_s15  ;;  %s393_s20 = scalar_lea.vmem (%p1412_p4), [#allocation3], %s1138_s16 }
  0x2a   : > { %v426_v36 = vld [vmem:[%s396_s19] sm:$0xff] (%p1412_p4)  ;;  %v428_v37 = vld [vmem:[%s396_s19 + $0x10] sm:$0xff] (%p1412_p4) }
  0x2b   : > { %427 = vst [vmem:[%s393_s20] sm:$0xff] (%p1412_p4), %v426_v36  ;;  %429 = vst [vmem:[%s393_s20 + $0x8] sm:$0xff] (%p1412_p4), %v428_v37 }
  0x2e PF: > { %p1141_p7 = scmp.ge.s32.totalorder %s1344_s23, 1  ;;  %p434_p8 = scmp.lt.s32.totalorder %s1344_s23, 3 }
  0x30   : > { %p435_p9 = pnand %p1141_p7, %p434_p8 }
  0x31   : > { %s1514_s26 = sand.u32 (!%p435_p9), 1, %s1336_s21   ;;  %v1346_v38 = vmov (!%p435_p9), 0   ;;  %v1294_v50 = vld [vmem:[%s1653_s3] sm:$0xff] (!%p435_p9)   ;;  %vm554_vm0 = vcmask (!%p435_p9), 130048   ;;  %v1304_v57 = vld [vmem:[%s1653_s3 + $0x8] sm:$0xff] (!%p435_p9)   ;;  %v616_v2 = vld [vmem:[%s1652_s2 + $0x10] sm:$0xff] (!%p435_p9) }
  0x32   : > { %438 = sbr.rel (%p435_p9) target bundleno = 359 (0x167), region = 112  ;;  %s1142_s29 = sshll.u32 (!%p435_p9), %s1514_s26, 4  ;;  %593 = vmatprep.mubr.bf16.mxu0 (!%p435_p9), %v1346_v38  ;;  %1253 = vset.pattern.permute.xlu0 (!%p435_p9), %v1346_v38  ;;  %v1316_v62 = vld [vmem:[%s1650_s0 + $0x4] ss:$12 sps:$4 sm:$0xff] (!%p435_p9)   ;;  %v615_v3 = vld [vmem:[%s1652_s2 + $0x8] sm:$0xff] (!%p435_p9)  ;;  %v617_v6 = vld [vmem:[%s1652_s2 + $0x18] sm:$0xff] (!%p435_p9) }
  0x33   : > { %s1227_s27 = smul.u32 (!%p435_p9), 288, %s1514_s26  ;;  %1254 = vset.pattern.permute.xlu1 (!%p435_p9), %v1346_v38  ;;  %s450_s7 = scalar_lea.vmem (!%p435_p9), [#allocation3], %s1142_s29  ;;  %v614_v1 = vld [vmem:[%s1652_s2] sm:$0xff] (!%p435_p9)  ;;  %887 = vmatprep.mubr.bf16.mxu1 (!%p435_p9), %v1316_v62  ;;  %v1317_v5 = vld [vmem:[%s1650_s0 + $0x8] ss:$12 sps:$4 sm:$0xff] (!%p435_p9)   ;;  %vm848_vm1 = vcmask (!%p435_p9), 261120  }
  0x34   : > { %v1288_v39 = vld [vmem:[%s450_s7 + $0x4] ss:$8 sps:$4 sm:$0xff] (!%p435_p9)   ;;  %v1290_v49 = vld [vmem:[%s450_s7] ss:$8 sps:$4 sm:$0xff] (!%p435_p9)   ;;  %620 = vperm.xlu0 (!%p435_p9), %1253, %v614_v1   ;;  %630 = vperm.xlu1 (!%p435_p9), %1254, %v616_v2  }
  0x35   : > { %s1521_s8 = scalar_lea.vmem (!%p435_p9), [#allocation2], %s1227_s27  ;;  %561 = vmatprep.subr.bf16.mxu0 (!%p435_p9), %v1288_v39  ;;  %v969_v8 = vld [vmem:[%s1655_s5] sm:$0xff] (!%p435_p9)  ;;  %v970_v10 = vld [vmem:[%s1655_s5 + $0x8] sm:$0xff] (!%p435_p9)  ;;  %v971_v12 = vld [vmem:[%s1655_s5 + $0x10] sm:$0xff] (!%p435_p9) }
  0x36   : > { %v1255_v40 = vld [vmem:[%s1521_s8 + $0x4] ss:$8 sps:$4 sm:$0xff] (!%p435_p9)   ;;  %v1257_v41 = vld [vmem:[%s1521_s8] ss:$8 sps:$4 sm:$0xff] (!%p435_p9)   ;;  %v1258_v42 = vld [vmem:[%s1521_s8 + $0x14] ss:$8 sps:$4 sm:$0xff] (!%p435_p9)   ;;  %562 = vmatpush1.bf16.msra.mxu0 (!%p435_p9), %v1290_v49 }
  0x37   : > { %855 = vmatprep.subr.bf16.mxu1 (!%p435_p9), %v1255_v40  ;;  %v1260_v43 = vld [vmem:[%s1521_s8 + $0x10] ss:$8 sps:$4 sm:$0xff] (!%p435_p9)   ;;  %v1261_v44 = vld [vmem:[%s1521_s8 + $0x24] ss:$8 sps:$4 sm:$0xff] (!%p435_p9)   ;;  %v1263_v45 = vld [vmem:[%s1521_s8 + $0x20] ss:$8 sps:$4 sm:$0xff] (!%p435_p9)  }
  0x38   : > { %856 = vmatpush1.bf16.msra.mxu1 (!%p435_p9), %v1257_v41  ;;  %v1264_v46 = vld [vmem:[%s1521_s8 + $0x34] ss:$8 sps:$4 sm:$0xff] (!%p435_p9)   ;;  %v1266_v47 = vld [vmem:[%s1521_s8 + $0x30] ss:$8 sps:$4 sm:$0xff] (!%p435_p9)   ;;  %v1267_v48 = vld [vmem:[%s1521_s8 + $0x44] ss:$8 sps:$4 sm:$0xff] (!%p435_p9)   ;;  %625 = vperm.xlu0 (!%p435_p9), %1253, %v615_v3  }
  0x39   : > { %857 = vmatprep.subr.bf16.mxu1 %v1258_v42  ;;  %v1269_v51 = vld [vmem:[%s1521_s8 + $0x40] ss:$8 sps:$4 sm:$0xff]   ;;  %v1270_v52 = vld [vmem:[%s1521_s8 + $0x54] ss:$8 sps:$4 sm:$0xff]   ;;  %v1300_v54 = vld [vmem:[%s1521_s8 + $0x104] ss:$8 sps:$4 sm:$0xff]   ;;  %1148 = vmatmul.mubr.msk.bf16.vlgmr.msra.gmra.mrb[0].mxu0 %vm554_vm0, %v1294_v50 }
  0x3a   : > { %v1298_v53 = vld [vmem:[%s1521_s8 + $0x100] ss:$8 sps:$4 sm:$0xff]   ;;  %v1272_v55 = vld [vmem:[%s1521_s8 + $0x50] ss:$8 sps:$4 sm:$0xff]   ;;  %v1273_v56 = vld [vmem:[%s1521_s8 + $0x64] ss:$8 sps:$4 sm:$0xff]   ;;  %908 = vmatprep.subr.bf16.mxu0 %v1300_v54  ;;  %603 = vmatprep.mubr.bf16.mxu0 %v1346_v38 }
  0x3b   : > { %909 = vmatpush1.bf16.msra.mxu0 %v1298_v53  ;;  %v1308_v58 = vld [vmem:[%s1521_s8 + $0x110] ss:$8 sps:$4 sm:$0xff]   ;;  %v1310_v59 = vld [vmem:[%s1521_s8 + $0x114] ss:$8 sps:$4 sm:$0xff]   ;;  %v1275_v60 = vld [vmem:[%s1521_s8 + $0x60] ss:$8 sps:$4 sm:$0xff]   ;;  %635 = vperm.xlu1 %1254, %v617_v6  }
  0x3c   : > { %858 = vmatpush1.bf16.msra.mxu1 %v1260_v43  ;;  %v1276_v61 = vld [vmem:[%s1521_s8 + $0x74] ss:$8 sps:$4 sm:$0xff]   ;;  %910 = vmatprep.subr.bf16.mxu0 %v1310_v59  ;;  %v1278_v63 = vld [vmem:[%s1521_s8 + $0x70] ss:$8 sps:$4 sm:$0xff]   ;;  %v1279_v0 = vld [vmem:[%s1521_s8 + $0x84] ss:$8 sps:$4 sm:$0xff]  }
  0x3d   : > { %859 = vmatprep.subr.bf16.mxu1 %v1261_v44  ;;  %v1281_v4 = vld [vmem:[%s1521_s8 + $0x80] ss:$8 sps:$4 sm:$0xff]   ;;  %v1282_v7 = vld [vmem:[%s1521_s8 + $0x94] ss:$8 sps:$4 sm:$0xff]   ;;  %v1284_v9 = vld [vmem:[%s1521_s8 + $0x90] ss:$8 sps:$4 sm:$0xff]   ;;  %975 = vperm.xlu0 %1253, %v969_v8  }
  0x3e   : > { %v1285_v11 = vld [vmem:[%s1521_s8 + $0xa4] ss:$8 sps:$4 sm:$0xff]   ;;  %v1287_v13 = vld [vmem:[%s1521_s8 + $0xa0] ss:$8 sps:$4 sm:$0xff]   ;;  %v972_v15 = vld [vmem:[%s1655_s5 + $0x18] sm:$0xff]  ;;  %s1201_s21 = sshll.u32 (%p1416_p5), %s1132_s24, 4 }
  0x3f   : > { %911 = vmatpush1.bf16.msra.mxu0 %v1308_v58  ;;  %980 = vperm.xlu1 %1254, %v970_v10   ;;  %v1320_v14 = vld [vmem:[%s1650_s0 + $0x20] ss:$12 sps:$4 sm:$0xff]   ;;  %v1291_v16 = vld [vmem:[%s1521_s8 + $0xb4] ss:$8 sps:$4 sm:$0xff]   ;;  %v1293_v17 = vld [vmem:[%s1521_s8 + $0xb0] ss:$8 sps:$4 sm:$0xff]   ;;  %s1026_s11 = scalar_lea.vmem (%p1416_p5), %s1656_s6, %s1201_s21 }
  0x40   : > { %860 = vmatpush1.bf16.msra.mxu1 %v1263_v45  ;;  %v1295_v18 = vld [vmem:[%s1521_s8 + $0xc4] ss:$8 sps:$4 sm:$0xff]   ;;  %v1297_v19 = vld [vmem:[%s1521_s8 + $0xc0] ss:$8 sps:$4 sm:$0xff]   ;;  %v1301_v20 = vld [vmem:[%s1521_s8 + $0xd4] ss:$8 sps:$4 sm:$0xff]  }
  0x41   : > { %861 = vmatprep.subr.bf16.mxu1 %v1264_v46  ;;  %1149 = vmatmul.mubr.msk.bf16.gmra.mrb[4].mxu0 %vm554_vm0, %v1304_v57  ;;  %v1303_v21 = vld [vmem:[%s1521_s8 + $0xd0] ss:$8 sps:$4 sm:$0xff]   ;;  %v1305_v22 = vld [vmem:[%s1521_s8 + $0xe4] ss:$8 sps:$4 sm:$0xff]   ;;  %v1307_v23 = vld [vmem:[%s1521_s8 + $0xe0] ss:$8 sps:$4 sm:$0xff]  }
  0x42   : > { %940 = vmatprep.mubr.bf16.mxu0 %v1346_v38  ;;  %985 = vperm.xlu0 %1253, %v971_v12   ;;  %v1311_v24 = vld [vmem:[%s1521_s8 + $0xf4] ss:$8 sps:$4 sm:$0xff]   ;;  %v1313_v25 = vld [vmem:[%s1521_s8 + $0xf0] ss:$8 sps:$4 sm:$0xff]   ;;  %v1314_v26 = vld [vmem:[%s1650_s0] ss:$12 sps:$4 sm:$0xff]  }
  0x43   : > { %990 = vperm.xlu1 %1254, %v972_v15   ;;  %v1318_v27 = vld [vmem:[%s1650_s0 + $0x1c] ss:$12 sps:$4 sm:$0xff]   ;;  %v1321_v28 = vld [vmem:[%s1650_s0 + $0x18] ss:$12 sps:$4 sm:$0xff]   ;;  %s1143_s8 = sshll.u32 %s1514_s26, 6 }
  0x44   : > { %862 = vmatpush1.bf16.msra.mxu1 %v1266_v47  ;;  %s1615_s26 = scalar_lea.vmem [#allocation4], %s1143_s8 }
  0x45   : > { %863 = vmatprep.subr.bf16.mxu1 %v1267_v48 }
  0x48   : > { %864 = vmatpush1.bf16.msra.mxu1 %v1269_v51 }
  0x49   : > { %865 = vmatprep.subr.bf16.mxu1 %v1270_v52  ;;  %1192 = vmatmul.mubr.msk.bf16.vlgmr.msra.gmra.mrb[8].mxu0 %vm848_vm1, %v1317_v5 }
  0x4a   : > { %950 = vmatprep.mubr.bf16.mxu0 %v1346_v38 }
  0x4c   : > { %866 = vmatpush1.bf16.msra.mxu1 %v1272_v55 }
  0x4d   : > { %867 = vmatprep.subr.bf16.mxu1 %v1273_v56 }
  0x50   : > { %868 = vmatpush1.bf16.msra.mxu1 %v1275_v60 }
  0x51   : > { %869 = vmatprep.subr.bf16.mxu1 %v1276_v61  ;;  %1193 = vmatmul.mubr.msk.bf16.gmra.mrb[12].mxu0 %vm848_vm1, %v1320_v14 }
  0x54   : > { %870 = vmatpush1.bf16.msra.mxu1 %v1278_v63 }
  0x55   : > { %871 = vmatprep.subr.bf16.mxu1 %v1279_v0 }
  0x58   : > { %872 = vmatpush1.bf16.msra.mxu1 %v1281_v4 }
  0x59   : > { %873 = vmatprep.subr.bf16.mxu1 %v1282_v7 }
  0x5c   : > { %874 = vmatpush1.bf16.msra.mxu1 %v1284_v9 }
  0x5d   : > { %875 = vmatprep.subr.bf16.mxu1 %v1285_v11 }
  0x60   : > { %876 = vmatpush1.bf16.msra.mxu1 %v1287_v13 }
  0x61   : > { %877 = vmatprep.subr.bf16.mxu1 %v1291_v16 }
  0x64   : > { %878 = vmatpush1.bf16.msra.mxu1 %v1293_v17 }
  0x65   : > { %879 = vmatprep.subr.bf16.mxu1 %v1295_v18 }
  0x68   : > { %880 = vmatpush1.bf16.msra.mxu1 %v1297_v19 }
  0x69   : > { %881 = vmatprep.subr.bf16.mxu1 %v1301_v20 }
  0x6c   : > { %882 = vmatpush1.bf16.msra.mxu1 %v1303_v21 }
  0x6d   : > { %883 = vmatprep.subr.bf16.mxu1 %v1305_v22 }
  0x70   : > { %884 = vmatpush1.bf16.msra.mxu1 %v1307_v23 }
  0x71   : > { %885 = vmatprep.subr.bf16.mxu1 %v1311_v24 }
  0x74   : > { %886 = vmatpush1.bf16.msra.mxu1 %v1313_v25 }
  0x77   : > { %888 = vmatmul.mubr.bf16.vlgmr.msra.gmra.mrb[0].mxu1 %v1314_v26 }
  0x78   : > { %897 = vmatprep.mubr.bf16.mxu1 %v1318_v27 }
  0x7f   : > { %898 = vmatmul.mubr.bf16.gmra.mrb[4].mxu1 %v1321_v28 }
  0xb3   : > { %v621_v45 = vpop.permute.xlu0 %620  ;;  %v631_v46 = vpop.permute.xlu1 %630 }
  0xb7   : > { %v626_v47 = vpop.permute.xlu0 %625 }
  0xba   : > { %v636_v50 = vpop.permute.xlu1 %635 }
  0xbc   : > { %v976_v61 = vpop.permute.xlu0 %975 }
  0xbe   : > { %v981_v2 = vpop.permute.xlu1 %980 }
  0xc1   : > { %v986_v23 = vpop.permute.xlu0 %985 }
  0xc2   : > { %v991_v28 = vpop.permute.xlu1 %990 }
 0x10c   : > { %v595_v29 = vpop.f32.mrb[0].mxu0 }
 0x10d   : > { %v597_v30 = vpop.f32.mrb[1].mxu0  ;;  %v1202_v48 = vadd.f32 %v621_v45, %v595_v29 }
 0x10e   : > { %v599_v31 = vpop.f32.mrb[2].mxu0  ;;  %v1205_v49 = vadd.f32 %v621_v45, %v597_v30 }
 0x10f   : > { %v601_v32 = vpop.f32.mrb[3].mxu0  ;;  %v1208_v52 = vadd.f32 %v626_v47, %v599_v31 }
 0x110   : > { %v1211_v55 = vadd.f32 %v626_v47, %v601_v32 }
 0x114   : > { %v605_v33 = vpop.f32.mrb[4].mxu0 }
 0x115   : > { %v607_v34 = vpop.f32.mrb[5].mxu0  ;;  %v1214_v5 = vadd.f32 %v631_v46, %v605_v33 }
 0x116   : > { %v609_v35 = vpop.f32.mrb[6].mxu0  ;;  %v1217_v8 = vadd.f32 %v631_v46, %v607_v34 }
 0x117   : > { %v611_v36 = vpop.f32.mrb[7].mxu0  ;;  %v1220_v12 = vadd.f32 %v636_v50, %v609_v35 }
 0x118   : > { %v1223_v16 = vadd.f32 %v636_v50, %v611_v36 }
 0x11c   : > { %v942_v37 = vpop.f32.mrb[8].mxu0 }
 0x11d   : > { %v944_v38 = vpop.f32.mrb[9].mxu0 }
 0x11e   : > { %v946_v39 = vpop.f32.mrb[10].mxu0 }
 0x11f   : > { %v948_v40 = vpop.f32.mrb[11].mxu0 }
 0x124   : > { %v952_v41 = vpop.f32.mrb[12].mxu0 }
 0x125   : > { %v954_v42 = vpop.f32.mrb[13].mxu0 }
 0x126   : > { %v956_v43 = vpop.f32.mrb[14].mxu0 }
 0x127   : > { %v958_v44 = vpop.f32.mrb[15].mxu0 }
 0x14a   : > { %v889_v51 = vpop.f32.mrb[0].mxu1 }
 0x14b   : > { %v1203_v53 = vadd.f32 %v1202_v48, %v889_v51  ;;  %v891_v54 = vpop.f32.mrb[1].mxu1 }
 0x14c   : > { %v1206_v56 = vadd.f32 %v1205_v49, %v891_v54  ;;  %v893_v57 = vpop.f32.mrb[2].mxu1 }
 0x14d   : > { %v1204_v58 = vadd.f32 %v1203_v53, %v942_v37  ;;  %v1209_v59 = vadd.f32 %v1208_v52, %v893_v57  ;;  %v895_v60 = vpop.f32.mrb[3].mxu1 }
 0x14e   : > { %v1207_v62 = vadd.f32 %v1206_v56, %v944_v38  ;;  %v1212_v63 = vadd.f32 %v1211_v55, %v895_v60 }
 0x14f   : > { %v993_v0 = vadd.f32 %v1204_v58, %v976_v61  ;;  %v1210_v1 = vadd.f32 %v1209_v59, %v946_v39 }
 0x150   : > { %v994_v3 = vadd.f32 %v1207_v62, %v976_v61  ;;  %v1213_v4 = vadd.f32 %v1212_v63, %v948_v40 }
 0x151   : > { %v1001_v6 = vmax.f32 %v993_v0, 0.0  ;;  %v995_v7 = vadd.f32 %v1210_v1, %v981_v2 }
 0x152   : > { %v1002_v9 = vmax.f32 %v994_v3, 0.0  ;;  %v996_v10 = vadd.f32 %v1213_v4, %v981_v2  ;;  %v899_v11 = vpop.f32.mrb[4].mxu1 }
 0x153   : > { %1009 = vst [vmem:[%s1615_s26] sm:$0xff] %v1001_v6  ;;  %v1003_v13 = vmax.f32 %v995_v7, 0.0  ;;  %v1215_v14 = vadd.f32 %v1214_v5, %v899_v11  ;;  %v901_v15 = vpop.f32.mrb[5].mxu1 }
 0x154   : > { %1010 = vst [vmem:[%s1615_s26 + $0x8] sm:$0xff] %v1002_v9  ;;  %v1004_v17 = vmax.f32 %v996_v10, 0.0  ;;  %v1218_v18 = vadd.f32 %v1217_v8, %v901_v15  ;;  %v903_v19 = vpop.f32.mrb[6].mxu1 }
 0x155   : > { %1011 = vst [vmem:[%s1615_s26 + $0x10] sm:$0xff] %v1003_v13  ;;  %v1216_v20 = vadd.f32 %v1215_v14, %v952_v41  ;;  %v1221_v21 = vadd.f32 %v1220_v12, %v903_v19  ;;  %v905_v22 = vpop.f32.mrb[7].mxu1 }
 0x156   : > { %1012 = vst [vmem:[%s1615_s26 + $0x18] sm:$0xff] %v1004_v17  ;;  %v1219_v24 = vadd.f32 %v1218_v18, %v954_v42  ;;  %v1224_v25 = vadd.f32 %v1223_v16, %v905_v22 }
 0x157   : > { %v997_v26 = vadd.f32 %v1216_v20, %v986_v23  ;;  %v1222_v27 = vadd.f32 %v1221_v21, %v956_v43 }
 0x158   : > { %v998_v29 = vadd.f32 %v1219_v24, %v986_v23  ;;  %v1225_v30 = vadd.f32 %v1224_v25, %v958_v44  ;;  %1023 = sbr.rel (!%p1416_p5) target bundleno = 359 (0x167), region = 124 }
 0x159   : > { %v1005_v31 = vmax.f32 %v997_v26, 0.0  ;;  %v999_v32 = vadd.f32 %v1222_v27, %v991_v28 }
 0x15a   : > { %v1006_v33 = vmax.f32 %v998_v29, 0.0  ;;  %v1000_v34 = vadd.f32 %v1225_v30, %v991_v28  ;;  %v1039_v37 = vld [vmem:[%s1615_s26] sm:$0xff] (%p1416_p5) }
 0x15b   : > { %1013 = vst [vmem:[%s1615_s26 + $0x20] sm:$0xff] %v1005_v31  ;;  %v1007_v35 = vmax.f32 %v999_v32, 0.0  ;;  %v1041_v38 = vld [vmem:[%s1615_s26 + $0x8] sm:$0xff] (%p1416_p5)  ;;  %1040 = vst [vmem:[%s1026_s11] sm:$0xff] (%p1416_p5), %v1039_v37 }
 0x15c   : > { %1014 = vst [vmem:[%s1615_s26 + $0x28] sm:$0xff] %v1006_v33  ;;  %v1008_v36 = vmax.f32 %v1000_v34, 0.0  ;;  %v1043_v39 = vld [vmem:[%s1615_s26 + $0x10] sm:$0xff] (%p1416_p5)  ;;  %1042 = vst [vmem:[%s1026_s11 + $0x8] sm:$0xff] (%p1416_p5), %v1041_v38 }
 0x15d   : > { %1015 = vst [vmem:[%s1615_s26 + $0x30] sm:$0xff] %v1007_v35  ;;  %v1045_v40 = vld [vmem:[%s1615_s26 + $0x18] sm:$0xff] (%p1416_p5)  ;;  %1044 = vst [vmem:[%s1026_s11 + $0x20] sm:$0xff] (%p1416_p5), %v1043_v39 }
 0x15e   : > { %1016 = vst [vmem:[%s1615_s26 + $0x38] sm:$0xff] %v1008_v36  ;;  %1046 = vst [vmem:[%s1026_s11 + $0x28] sm:$0xff] (%p1416_p5), %v1045_v40 }
 0x162   : > { %v1047_v41 = vld [vmem:[%s1615_s26 + $0x20] sm:$0xff] }
 0x163   : > { %v1049_v42 = vld [vmem:[%s1615_s26 + $0x28] sm:$0xff]  ;;  %1048 = vst [vmem:[%s1026_s11 + $0x40] sm:$0xff] %v1047_v41 }
 0x164   : > { %1050 = vst [vmem:[%s1026_s11 + $0x48] sm:$0xff] %v1049_v42  ;;  %v1051_v43 = vld [vmem:[%s1615_s26 + $0x30] sm:$0xff] }
 0x165   : > { %v1053_v44 = vld [vmem:[%s1615_s26 + $0x38] sm:$0xff]  ;;  %1052 = vst [vmem:[%s1026_s11 + $0x60] sm:$0xff] %v1051_v43 }
 0x166   : > { %1054 = vst [vmem:[%s1026_s11 + $0x68] sm:$0xff] %v1053_v44 }
 0x167 PF: > { %p13_p10 = scmp.ge.s32.totalorder %s1399_s25, 4   ;;  %s1659_s21 = smov %s1340_s22 }
 0x168   : > { %s1660_s22 = smov %s1410_s28  ;;  %s1661_s23 = smov %s1399_s25 }
 0x169   :  { %15 = sbr.rel (!%p13_p10) target bundleno = 2 (0x2), region = 186 }

// kernel: _lambda_.13
= control target key start
LH: loop header
LB: loop body
LE: loop exit
PB: predicated region body
PF: predicated region fallthrough
CT: control target
= control target key end

     0   :  { %v591_v1 = vmov 0   ;;  %vm283_vm0 = vcmask 261120   ;;  %s754_s1 = inlined_call_operand.vmem [shape: bf16[288,128], index: 1, kind: input, shape index: {}]   ;;  %s755_s0 = inlined_call_operand.vmem [shape: bf16[64,288], index: 0, kind: input, shape index: {}]   ;;  %s756_s2 = inlined_call_operand.vmem [shape: f32[64,1], index: 2, kind: input, shape index: {}]   ;;  %s757_s3 = inlined_call_operand.vmem [shape: f32[64,128], index: 3, kind: output, shape index: {}]  }
   0x1   :  { %v557_v0 = vld [vmem:[%s754_s1 + $0x40] sm:$0xff]   ;;  %556 = vset.pattern.permute.xlu1 %v591_v1  ;;  %555 = vset.pattern.permute.xlu0 %v591_v1  ;;  %v559_v3 = vld [vmem:[%s754_s1 + $0x48] sm:$0xff]   ;;  %v561_v5 = vld [vmem:[%s754_s1 + $0x50] sm:$0xff]  }
   0x2   :  { %v558_v2 = vld [vmem:[%s754_s1] sm:$0xff]   ;;  %480 = vmatprep.subr.bf16.mxu0 %v557_v0  ;;  %538 = vmatprep.subr.bf16.mxu1 %v557_v0  ;;  %v560_v4 = vld [vmem:[%s754_s1 + $0x8] sm:$0xff]   ;;  %v562_v6 = vld [vmem:[%s754_s1 + $0x10] sm:$0xff]  }
   0x3   :  { %481 = vmatpush3.bf16.msra.mxu0 %v558_v2  ;;  %546 = vmatpush3.bf16.msra.mxu1 %v558_v2  ;;  %v563_v7 = vld [vmem:[%s754_s1 + $0x58] sm:$0xff]   ;;  %v565_v9 = vld [vmem:[%s754_s1 + $0x60] sm:$0xff]   ;;  %v567_v11 = vld [vmem:[%s754_s1 + $0x68] sm:$0xff]  }
   0x4   :  { %482 = vmatprep.subr.bf16.mxu0 %v559_v3  ;;  %539 = vmatprep.subr.bf16.mxu1 %v559_v3  ;;  %v564_v8 = vld [vmem:[%s754_s1 + $0x18] sm:$0xff]   ;;  %v566_v10 = vld [vmem:[%s754_s1 + $0x20] sm:$0xff]   ;;  %v568_v14 = vld [vmem:[%s754_s1 + $0x28] sm:$0xff]  }
   0x5   :  { %v575_v12 = vld [vmem:[%s755_s0 + $0x4] ss:$12 sps:$4 sm:$0xff]   ;;  %v578_v13 = vld [vmem:[%s755_s0 + $0x4c] ss:$12 sps:$4 sm:$0xff]   ;;  %v576_v23 = vld [vmem:[%s755_s0 + $0x48] ss:$12 sps:$4 sm:$0xff]  }
   0x6   :  { %v569_v15 = vld [vmem:[%s754_s1 + $0x70] sm:$0xff]   ;;  %328 = vmatprep.mubr.bf16.mxu0 %v575_v12  ;;  %352 = vmatprep.mubr.bf16.mxu1 %v578_v13  ;;  %v571_v17 = vld [vmem:[%s754_s1 + $0x78] sm:$0xff]   ;;  %v67_v20 = vld [vmem:[%s756_s2] sm:$0xff] }
   0x7   :  { %483 = vmatpush3.bf16.msra.mxu0 %v560_v4  ;;  %547 = vmatpush3.bf16.msra.mxu1 %v560_v4  ;;  %v570_v16 = vld [vmem:[%s754_s1 + $0x30] sm:$0xff]   ;;  %v572_v18 = vld [vmem:[%s754_s1 + $0x38] sm:$0xff]   ;;  %v579_v21 = vld [vmem:[%s754_s1 + $0x80] sm:$0xff]  }
   0x8   :  { %484 = vmatprep.subr.bf16.mxu0 %v561_v5  ;;  %540 = vmatprep.subr.bf16.mxu1 %v561_v5  ;;  %v69_v19 = vld [vmem:[%s756_s2 + $0x10] sm:$0xff]  ;;  %v573_v22 = vld [vmem:[%s755_s0] ss:$12 sps:$4 sm:$0xff]   ;;  %v70_v24 = vld [vmem:[%s756_s2 + $0x18] sm:$0xff] }
   0x9   :  { %87 = vperm.xlu1 %556, %v69_v19   ;;  %77 = vperm.xlu0 %555, %v67_v20   ;;  %v68_v25 = vld [vmem:[%s756_s2 + $0x8] sm:$0xff]  ;;  %v71_v30 = vld [vmem:[%s756_s2 + $0x20] sm:$0xff]  ;;  %v74_v33 = vld [vmem:[%s756_s2 + $0x38] sm:$0xff] }
   0xa   :  { %v581_v26 = vld [vmem:[%s755_s0 + $0x1c] ss:$12 sps:$4 sm:$0xff]   ;;  %v584_v31 = vld [vmem:[%s755_s0 + $0x18] ss:$12 sps:$4 sm:$0xff]   ;;  %v585_v32 = vld [vmem:[%s755_s0 + $0x20] ss:$12 sps:$4 sm:$0xff]  }
   0xb   :  { %485 = vmatpush3.bf16.msra.mxu0 %v562_v6  ;;  %548 = vmatpush3.bf16.msra.mxu1 %v562_v6  ;;  %v580_v27 = vld [vmem:[%s754_s1 + $0x88] sm:$0xff]   ;;  %v73_v34 = vld [vmem:[%s756_s2 + $0x30] sm:$0xff]  ;;  %v588_v36 = vld [vmem:[%s755_s0 + $0x38] ss:$12 sps:$4 sm:$0xff]  }
   0xc   :  { %486 = vmatprep.subr.bf16.mxu0 %v563_v7  ;;  %541 = vmatprep.subr.bf16.mxu1 %v563_v7  ;;  %v583_v28 = vld [vmem:[%s755_s0 + $0x8] ss:$12 sps:$4 sm:$0xff]   ;;  %v589_v37 = vld [vmem:[%s755_s0 + $0x30] ss:$12 sps:$4 sm:$0xff]  }
   0xd   :  { %92 = vperm.xlu1 %556, %v70_v24   ;;  %82 = vperm.xlu0 %555, %v68_v25   ;;  %v72_v29 = vld [vmem:[%s756_s2 + $0x28] sm:$0xff]  ;;  %v586_v35 = vld [vmem:[%s755_s0 + $0x34] ss:$12 sps:$4 sm:$0xff]   ;;  %v590_v38 = vld [vmem:[%s755_s0 + $0x50] ss:$12 sps:$4 sm:$0xff]  }
   0xf   :  { %487 = vmatpush3.bf16.msra.mxu0 %v564_v8  ;;  %549 = vmatpush3.bf16.msra.mxu1 %v564_v8 }
  0x10   :  { %488 = vmatprep.subr.bf16.mxu0 %v565_v9  ;;  %542 = vmatprep.subr.bf16.mxu1 %v565_v9 }
  0x11   :  { %102 = vperm.xlu1 %556, %v72_v29   ;;  %97 = vperm.xlu0 %555, %v71_v30  }
  0x13   :  { %489 = vmatpush3.bf16.msra.mxu0 %v566_v10  ;;  %550 = vmatpush3.bf16.msra.mxu1 %v566_v10 }
  0x14   :  { %490 = vmatprep.subr.bf16.mxu0 %v567_v11  ;;  %543 = vmatprep.subr.bf16.mxu1 %v567_v11 }
  0x15   :  { %112 = vperm.xlu1 %556, %v74_v33   ;;  %107 = vperm.xlu0 %555, %v73_v34  }
  0x17   :  { %491 = vmatpush3.bf16.msra.mxu0 %v568_v14  ;;  %551 = vmatpush3.bf16.msra.mxu1 %v568_v14 }
  0x18   :  { %492 = vmatprep.subr.bf16.mxu0 %v569_v15  ;;  %544 = vmatprep.subr.bf16.mxu1 %v569_v15 }
  0x1b   :  { %493 = vmatpush3.bf16.msra.mxu0 %v570_v16  ;;  %552 = vmatpush3.bf16.msra.mxu1 %v570_v16 }
  0x1c   :  { %494 = vmatprep.subr.bf16.mxu0 %v571_v17  ;;  %545 = vmatprep.subr.bf16.mxu1 %v571_v17 }
  0x1f   :  { %495 = vmatpush3.bf16.msra.mxu0 %v572_v18  ;;  %553 = vmatpush3.bf16.msra.mxu1 %v572_v18 }
  0x20   :  { %526 = vmatprep.subr.bf16.mxu1 %v579_v21 }
  0x22   :  { %329 = vmatmul.mubr.bf16.vlgmr.msra.gmra.mrb[0].mxu0 %v573_v22  ;;  %353 = vmatmul.mubr.bf16.vlgmr.msra.gmra.mrb[0].mxu1 %v576_v23 }
  0x23   :  { %527 = vmatpush3.bf16.msra.mxu1 %v579_v21  ;;  %336 = vmatprep.mubr.bf16.mxu0 %v581_v26 }
  0x24   :  { %528 = vmatprep.subr.bf16.mxu1 %v580_v27  ;;  %530 = vmatprep.mubr.msk.bf16.mxu1 %vm283_vm0, %v583_v28 }
  0x27   :  { %529 = vmatpush3.bf16.msra.mxu1 %v580_v27 }
  0x2a   :  { %337 = vmatmul.mubr.bf16.gmra.mrb[4].mxu0 %v584_v31  ;;  %531 = vmatmul.mubr.msk.bf16.vlgmr.msra.gmra.mrb[4].mxu1 %vm283_vm0, %v585_v32 }
  0x2b   :  { %344 = vmatprep.mubr.bf16.mxu0 %v586_v35  ;;  %534 = vmatprep.mubr.msk.bf16.mxu1 %vm283_vm0, %v588_v36 }
  0x32   :  { %345 = vmatmul.mubr.bf16.gmra.mrb[8].mxu0 %v589_v37  ;;  %535 = vmatmul.mubr.msk.bf16.gmra.mrb[8].mxu1 %vm283_vm0, %v590_v38 }
  0x88   :  { %v88_v39 = vpop.permute.xlu1 %87  ;;  %v78_v40 = vpop.permute.xlu0 %77 }
  0x8c   :  { %v93_v41 = vpop.permute.xlu1 %92  ;;  %v83_v42 = vpop.permute.xlu0 %82 }
  0x90   :  { %v98_v55 = vpop.permute.xlu0 %97  ;;  %v103_v56 = vpop.permute.xlu1 %102 }
  0x94   :  { %v108_v5 = vpop.permute.xlu0 %107  ;;  %v113_v10 = vpop.permute.xlu1 %112 }
  0xf5   :  { %v496_v43 = vpop.f32.mrb[0].mxu0  ;;  %v514_v44 = vpop.f32.mrb[0].mxu1 }
  0xf6   :  { %v497_v45 = vpop.f32.mrb[1].mxu0  ;;  %v515_v46 = vpop.f32.mrb[1].mxu1 }
  0xf7   :  { %v498_v47 = vadd.f32 %v497_v45, %v496_v43  ;;  %v499_v48 = vpop.f32.mrb[2].mxu0  ;;  %v516_v49 = vadd.f32 %v515_v46, %v514_v44  ;;  %v517_v50 = vpop.f32.mrb[2].mxu1 }
  0xf8   :  { %v500_v51 = vpop.f32.mrb[3].mxu0  ;;  %v518_v52 = vpop.f32.mrb[3].mxu1 }
  0xf9   :  { %v501_v53 = vadd.f32 %v500_v51, %v499_v48  ;;  %v519_v54 = vadd.f32 %v518_v52, %v517_v50  ;;  %v331_v59 = vadd.f32 %v498_v47, %v78_v40  ;;  %v355_v14 = vadd.f32 %v516_v49, %v108_v5 }
  0xfb   :  { %v334_v2 = vadd.f32 %v501_v53, %v83_v42  ;;  %v358_v19 = vadd.f32 %v519_v54, %v113_v10 }
  0xfd   :  { %v502_v57 = vpop.f32.mrb[4].mxu0  ;;  %v532_v58 = vpop.f32.mrb[4].mxu1 }
  0xfe   :  { %v503_v60 = vpop.f32.mrb[5].mxu0  ;;  %v395_v61 = vpop.f32.mrb[5].mxu1 }
  0xff   :  { %v504_v62 = vadd.f32 %v503_v60, %v502_v57  ;;  %v396_v63 = vadd.f32 %v395_v61, %v331_v59  ;;  %v505_v0 = vpop.f32.mrb[6].mxu0  ;;  %v533_v1 = vpop.f32.mrb[6].mxu1 }
 0x100   :  { %v506_v3 = vpop.f32.mrb[7].mxu0  ;;  %v398_v4 = vpop.f32.mrb[7].mxu1 }
 0x101   :  { %v339_v6 = vadd.f32 %v504_v62, %v88_v39  ;;  %v426_v7 = vmax.f32 %v396_v63, 0.0  ;;  %v507_v8 = vadd.f32 %v506_v3, %v505_v0  ;;  %v399_v9 = vadd.f32 %v398_v4, %v334_v2 }
 0x103   :  { %v404_v11 = vadd.f32 %v532_v58, %v339_v6  ;;  %434 = vst [vmem:[%s757_s3] sm:$0xff] %v426_v7  ;;  %v342_v12 = vadd.f32 %v507_v8, %v93_v41  ;;  %v427_v13 = vmax.f32 %v399_v9, 0.0 }
 0x105   :  { %v428_v15 = vmax.f32 %v404_v11, 0.0  ;;  %v407_v16 = vadd.f32 %v533_v1, %v342_v12  ;;  %435 = vst [vmem:[%s757_s3 + $0x8] sm:$0xff] %v427_v13  ;;  %v508_v17 = vpop.f32.mrb[8].mxu0  ;;  %v536_v18 = vpop.f32.mrb[8].mxu1 }
 0x106   :  { %v420_v20 = vadd.f32 %v536_v18, %v355_v14  ;;  %v509_v21 = vpop.f32.mrb[9].mxu0  ;;  %v411_v22 = vpop.f32.mrb[9].mxu1 }
 0x107   :  { %436 = vst [vmem:[%s757_s3 + $0x10] sm:$0xff] %v428_v15  ;;  %v429_v23 = vmax.f32 %v407_v16, 0.0  ;;  %v510_v24 = vadd.f32 %v509_v21, %v508_v17  ;;  %v511_v25 = vpop.f32.mrb[10].mxu0  ;;  %v537_v26 = vpop.f32.mrb[10].mxu1 }
 0x108   :  { %v432_v27 = vmax.f32 %v420_v20, 0.0  ;;  %v423_v28 = vadd.f32 %v537_v26, %v358_v19  ;;  %v512_v29 = vpop.f32.mrb[11].mxu0  ;;  %v414_v30 = vpop.f32.mrb[11].mxu1 }
 0x109   :  { %437 = vst [vmem:[%s757_s3 + $0x18] sm:$0xff] %v429_v23  ;;  %v347_v31 = vadd.f32 %v510_v24, %v98_v55  ;;  %v513_v32 = vadd.f32 %v512_v29, %v511_v25 }
 0x10a   :  { %440 = vst [vmem:[%s757_s3 + $0x30] sm:$0xff] %v432_v27  ;;  %v433_v33 = vmax.f32 %v423_v28, 0.0 }
 0x10b   :  { %v412_v34 = vadd.f32 %v411_v22, %v347_v31  ;;  %v350_v35 = vadd.f32 %v513_v32, %v103_v56 }
 0x10c   :  { %441 = vst [vmem:[%s757_s3 + $0x38] sm:$0xff] %v433_v33 }
 0x10d   :  { %v430_v36 = vmax.f32 %v412_v34, 0.0  ;;  %v415_v37 = vadd.f32 %v414_v30, %v350_v35 }
 0x10f   :  { %438 = vst [vmem:[%s757_s3 + $0x20] sm:$0xff] %v430_v36  ;;  %v431_v38 = vmax.f32 %v415_v37, 0.0 }
 0x111   :  { %439 = vst [vmem:[%s757_s3 + $0x28] sm:$0xff] %v431_v38 }

// kernel: _lambda_.15
= control target key start
LH: loop header
LB: loop body
LE: loop exit
PB: predicated region body
PF: predicated region fallthrough
CT: control target
= control target key end

     0   :  { %vm78_vm0 = vcmask 517120   ;;  %vm742_vm1 = vcmask 523264   ;;  %vm671_vm2 = vcmask 1041409   ;;  %vm673_vm3 = vcmask 1042434   ;;  %s1433_s0 = inlined_call_operand.vmem [shape: f32[64,2,64], index: 0, kind: input, shape index: {}]   ;;  %s1434_s1 = inlined_call_operand.vmem [shape: f32[10,64], index: 1, kind: input, shape index: {}]   ;;  %s1435_s2 = inlined_call_operand.vmem [shape: f32[10,1], index: 2, kind: input, shape index: {}]   ;;  %s1436_s3 = inlined_call_operand.vmem [shape: f32[10,2], index: 3, kind: output, shape index: {}]  }
   0x1   :  { %v22_v0 = vld [vmem:[%s1433_s0 + $0x10] sm:$0x3]  ;;  %v14_v1 = vld [vmem:[%s1433_s0] sm:$0x3]  ;;  %v23_v2 = vld [vmem:[%s1433_s0 + $0x12] sm:$0x3] }
   0x2   :  { %v103_v3 = vsel %vm78_vm0, %v22_v0, 0.0  ;;  %v79_v4 = vsel %vm78_vm0, %v14_v1, 0.0  ;;  %v15_v5 = vld [vmem:[%s1433_s0 + $0x2] sm:$0x3]  ;;  %v106_v6 = vsel %vm78_vm0, %v23_v2, 0.0  ;;  %vm675_vm4 = vcmask 1043459  }
   0x3   :  { %104 = vadd.xlane.f32.xlu1 %v103_v3  ;;  %80 = vadd.xlane.f32.xlu0 %v79_v4  ;;  %v82_v7 = vsel %vm78_vm0, %v15_v5, 0.0  ;;  %v24_v8 = vld [vmem:[%s1433_s0 + $0x14] sm:$0x3]  ;;  %v16_v9 = vld [vmem:[%s1433_s0 + $0x4] sm:$0x3]  ;;  %vm677_vm5 = vcmask 1044484  }
   0x4   :  { %v109_v10 = vsel %vm78_vm0, %v24_v8, 0.0  ;;  %v85_v11 = vsel %vm78_vm0, %v16_v9, 0.0  ;;  %v25_v12 = vld [vmem:[%s1433_s0 + $0x16] sm:$0x3]  ;;  %v17_v13 = vld [vmem:[%s1433_s0 + $0x6] sm:$0x3] }
   0x5   :  { %v112_v14 = vsel %vm78_vm0, %v25_v12, 0.0  ;;  %v88_v15 = vsel %vm78_vm0, %v17_v13, 0.0  ;;  %v26_v16 = vld [vmem:[%s1433_s0 + $0x18] sm:$0x3]  ;;  %v18_v17 = vld [vmem:[%s1433_s0 + $0x8] sm:$0x3] }
   0x6   :  { %v27_v18 = vld [vmem:[%s1433_s0 + $0x1a] sm:$0x3]  ;;  %v19_v19 = vld [vmem:[%s1433_s0 + $0xa] sm:$0x3]  ;;  %v31_v20 = vld [vmem:[%s1433_s0 + $0x22] sm:$0x3] }
   0x7   :  { %107 = vadd.xlane.f32.xlu1 %v106_v6  ;;  %83 = vadd.xlane.f32.xlu0 %v82_v7  ;;  %v30_v21 = vld [vmem:[%s1433_s0 + $0x20] sm:$0x3]  ;;  %v39_v22 = vld [vmem:[%s1433_s0 + $0x32] sm:$0x3]  ;;  %v38_v23 = vld [vmem:[%s1433_s0 + $0x30] sm:$0x3] }
   0x8   :  { %v28_v24 = vld [vmem:[%s1433_s0 + $0x1c] sm:$0x3]  ;;  %v20_v25 = vld [vmem:[%s1433_s0 + $0xc] sm:$0x3]  ;;  %v115_v26 = vsel %vm78_vm0, %v26_v16, 0.0  ;;  %v91_v27 = vsel %vm78_vm0, %v18_v17, 0.0 }
   0x9   :  { %v118_v28 = vsel %vm78_vm0, %v27_v18, 0.0  ;;  %v94_v29 = vsel %vm78_vm0, %v19_v19, 0.0  ;;  %v130_v30 = vsel %vm78_vm0, %v31_v20, 0.0  ;;  %v127_v31 = vsel %vm78_vm0, %v30_v21, 0.0  ;;  %v44_v36 = vld [vmem:[%s1433_s0 + $0x3c] sm:$0x3] }
   0xa   :  { %v972_v32 = vsel %vm78_vm0, %v39_v22, 0.0  ;;  %v975_v33 = vsel %vm78_vm0, %v38_v23, 0.0  ;;  %v978_v34 = vsel %vm78_vm0, %v28_v24, 0.0  ;;  %v981_v35 = vsel %vm78_vm0, %v20_v25, 0.0  ;;  %v36_v37 = vld [vmem:[%s1433_s0 + $0x2c] sm:$0x3] }
   0xb   :  { %110 = vadd.xlane.f32.xlu1 %v109_v10  ;;  %86 = vadd.xlane.f32.xlu0 %v85_v11  ;;  %v990_v38 = vsel %vm78_vm0, %v44_v36, 0.0  ;;  %v993_v39 = vsel %vm78_vm0, %v36_v37, 0.0  ;;  %v56_v40 = vld [vmem:[%s1433_s0 + $0x54] sm:$0x3]  ;;  %v48_v41 = vld [vmem:[%s1433_s0 + $0x44] sm:$0x3] }
   0xc   :  { %v1002_v42 = vsel %vm78_vm0, %v56_v40, 0.0  ;;  %v1005_v43 = vsel %vm78_vm0, %v48_v41, 0.0  ;;  %v45_v44 = vld [vmem:[%s1433_s0 + $0x3e] sm:$0x3]  ;;  %v37_v45 = vld [vmem:[%s1433_s0 + $0x2e] sm:$0x3] }
   0xd   :  { %v1014_v46 = vsel %vm78_vm0, %v45_v44, 0.0  ;;  %v1017_v47 = vsel %vm78_vm0, %v37_v45, 0.0  ;;  %v57_v48 = vld [vmem:[%s1433_s0 + $0x56] sm:$0x3]  ;;  %v49_v49 = vld [vmem:[%s1433_s0 + $0x46] sm:$0x3] }
   0xe   :  { %v1026_v50 = vsel %vm78_vm0, %v57_v48, 0.0  ;;  %v1029_v51 = vsel %vm78_vm0, %v49_v49, 0.0  ;;  %v58_v52 = vld [vmem:[%s1433_s0 + $0x58] sm:$0x3]  ;;  %v50_v53 = vld [vmem:[%s1433_s0 + $0x48] sm:$0x3] }
   0xf   :  { %113 = vadd.xlane.f32.xlu1 %v112_v14  ;;  %89 = vadd.xlane.f32.xlu0 %v88_v15  ;;  %v1038_v54 = vsel %vm78_vm0, %v58_v52, 0.0  ;;  %v1041_v55 = vsel %vm78_vm0, %v50_v53, 0.0  ;;  %v59_v56 = vld [vmem:[%s1433_s0 + $0x5a] sm:$0x3]  ;;  %v51_v57 = vld [vmem:[%s1433_s0 + $0x4a] sm:$0x3] }
  0x10   :  { %v1050_v58 = vsel %vm78_vm0, %v59_v56, 0.0  ;;  %v1053_v59 = vsel %vm78_vm0, %v51_v57, 0.0  ;;  %v63_v60 = vld [vmem:[%s1433_s0 + $0x62] sm:$0x3]  ;;  %v62_v61 = vld [vmem:[%s1433_s0 + $0x60] sm:$0x3] }
  0x11   :  { %v1062_v62 = vsel %vm78_vm0, %v63_v60, 0.0  ;;  %v1065_v63 = vsel %vm78_vm0, %v62_v61, 0.0  ;;  %v71_v0 = vld [vmem:[%s1433_s0 + $0x72] sm:$0x3]  ;;  %v70_v1 = vld [vmem:[%s1433_s0 + $0x70] sm:$0x3] }
  0x12   :  { %v1074_v2 = vsel %vm78_vm0, %v71_v0, 0.0  ;;  %v1077_v3 = vsel %vm78_vm0, %v70_v1, 0.0  ;;  %v60_v4 = vld [vmem:[%s1433_s0 + $0x5c] sm:$0x3]  ;;  %v52_v5 = vld [vmem:[%s1433_s0 + $0x4c] sm:$0x3] }
  0x13   :  { %116 = vadd.xlane.f32.xlu1 %v115_v26  ;;  %92 = vadd.xlane.f32.xlu0 %v91_v27  ;;  %v1086_v6 = vsel %vm78_vm0, %v60_v4, 0.0  ;;  %v1089_v7 = vsel %vm78_vm0, %v52_v5, 0.0  ;;  %v72_v8 = vld [vmem:[%s1433_s0 + $0x74] sm:$0x3]  ;;  %v64_v9 = vld [vmem:[%s1433_s0 + $0x64] sm:$0x3] }
  0x14   :  { %v1098_v10 = vsel %vm78_vm0, %v72_v8, 0.0  ;;  %v1101_v11 = vsel %vm78_vm0, %v64_v9, 0.0  ;;  %v61_v12 = vld [vmem:[%s1433_s0 + $0x5e] sm:$0x3]  ;;  %v53_v13 = vld [vmem:[%s1433_s0 + $0x4e] sm:$0x3] }
  0x15   :  { %v1110_v14 = vsel %vm78_vm0, %v61_v12, 0.0  ;;  %v1113_v15 = vsel %vm78_vm0, %v53_v13, 0.0  ;;  %v73_v16 = vld [vmem:[%s1433_s0 + $0x76] sm:$0x3]  ;;  %v65_v17 = vld [vmem:[%s1433_s0 + $0x66] sm:$0x3] }
  0x16   :  { %v1122_v18 = vsel %vm78_vm0, %v73_v16, 0.0  ;;  %v1125_v19 = vsel %vm78_vm0, %v65_v17, 0.0  ;;  %v74_v20 = vld [vmem:[%s1433_s0 + $0x78] sm:$0x3]  ;;  %v66_v21 = vld [vmem:[%s1433_s0 + $0x68] sm:$0x3] }
  0x17   :  { %119 = vadd.xlane.f32.xlu1 %v118_v28  ;;  %95 = vadd.xlane.f32.xlu0 %v94_v29  ;;  %v1134_v22 = vsel %vm78_vm0, %v74_v20, 0.0  ;;  %v1137_v23 = vsel %vm78_vm0, %v66_v21, 0.0  ;;  %v75_v24 = vld [vmem:[%s1433_s0 + $0x7a] sm:$0x3]  ;;  %v67_v25 = vld [vmem:[%s1433_s0 + $0x6a] sm:$0x3] }
  0x18   :  { %v1148_v26 = vsel %vm78_vm0, %v75_v24, 0.0  ;;  %v1151_v27 = vsel %vm78_vm0, %v67_v25, 0.0  ;;  %v76_v28 = vld [vmem:[%s1433_s0 + $0x7c] sm:$0x3]  ;;  %v68_v29 = vld [vmem:[%s1433_s0 + $0x6c] sm:$0x3] }
  0x19   :  { %v40_v36 = vld [vmem:[%s1433_s0 + $0x34] sm:$0x3]  ;;  %v32_v37 = vld [vmem:[%s1433_s0 + $0x24] sm:$0x3]  ;;  %v29_v48 = vld [vmem:[%s1433_s0 + $0x1e] sm:$0x3] }
  0x1a   :  { %v157_v44 = vsel %vm78_vm0, %v40_v36, 0.0  ;;  %v133_v45 = vsel %vm78_vm0, %v32_v37, 0.0  ;;  %v21_v49 = vld [vmem:[%s1433_s0 + $0xe] sm:$0x3]  ;;  %v124_v52 = vsel %vm78_vm0, %v29_v48, 0.0  ;;  %vm679_vm6 = vcmask 1045509  }
  0x1b   :  { %131 = vadd.xlane.f32.xlu1 %v130_v30  ;;  %128 = vadd.xlane.f32.xlu0 %v127_v31  ;;  %v1160_v30 = vsel %vm78_vm0, %v76_v28, 0.0  ;;  %v1163_v31 = vsel %vm78_vm0, %v68_v29, 0.0  ;;  %v33_v53 = vld [vmem:[%s1433_s0 + $0x26] sm:$0x3]  ;;  %v42_v60 = vld [vmem:[%s1433_s0 + $0x38] sm:$0x3] }
  0x1c   :  { %v136_v57 = vsel %vm78_vm0, %v33_v53, 0.0  ;;  %v34_v61 = vld [vmem:[%s1433_s0 + $0x28] sm:$0x3]  ;;  %v163_v0 = vsel %vm78_vm0, %v42_v60, 0.0  ;;  %v43_v4 = vld [vmem:[%s1433_s0 + $0x3a] sm:$0x3] }
  0x1d   :  { %v139_v1 = vsel %vm78_vm0, %v34_v61, 0.0  ;;  %v35_v5 = vld [vmem:[%s1433_s0 + $0x2a] sm:$0x3]  ;;  %v166_v8 = vsel %vm78_vm0, %v43_v4, 0.0  ;;  %v47_v12 = vld [vmem:[%s1433_s0 + $0x42] sm:$0x3] }
  0x1e   :  { %v142_v9 = vsel %vm78_vm0, %v35_v5, 0.0  ;;  %v46_v13 = vld [vmem:[%s1433_s0 + $0x40] sm:$0x3]  ;;  %v178_v16 = vsel %vm78_vm0, %v47_v12, 0.0  ;;  %v55_v20 = vld [vmem:[%s1433_s0 + $0x52] sm:$0x3] }
  0x1f   :  { %155 = vadd.xlane.f32.xlu1 %v972_v32  ;;  %152 = vadd.xlane.f32.xlu0 %v975_v33  ;;  %v77_v32 = vld [vmem:[%s1433_s0 + $0x7e] sm:$0x3]  ;;  %v69_v33 = vld [vmem:[%s1433_s0 + $0x6e] sm:$0x3]  ;;  %v175_v17 = vsel %vm78_vm0, %v46_v13, 0.0  ;;  %v202_v24 = vsel %vm78_vm0, %v55_v20, 0.0 }
  0x20   :  { %v1178_v40 = vsel %vm78_vm0, %v77_v32, 0.0  ;;  %v1181_v41 = vsel %vm78_vm0, %v69_v33, 0.0  ;;  %v54_v21 = vld [vmem:[%s1433_s0 + $0x50] sm:$0x3]  ;;  %vm681_vm7 = vcmask 1046534   ;;  %vm683_vm8 = vcmask 1047559  }
  0x21   :  { %v199_v25 = vsel %vm78_vm0, %v54_v21, 0.0  ;;  %vm826_vm9 = vcmask 9216   ;;  %vm824_vm10 = vcmask 15360  }
  0x23   :  { %122 = vadd.xlane.f32.xlu1 %v978_v34  ;;  %98 = vadd.xlane.f32.xlu0 %v981_v35  ;;  %v100_v34 = vsel %vm78_vm0, %v21_v49, 0.0  ;;  %v41_v35 = vld [vmem:[%s1433_s0 + $0x36] sm:$0x3] }
  0x24   :  { %v160_v56 = vsel %vm78_vm0, %v41_v35, 0.0 }
  0x27   :  { %158 = vadd.xlane.f32.xlu1 %v157_v44  ;;  %134 = vadd.xlane.f32.xlu0 %v133_v45 }
  0x2b   :  { %125 = vadd.xlane.f32.xlu1 %v124_v52  ;;  %101 = vadd.xlane.f32.xlu0 %v100_v34 }
  0x2f   :  { %161 = vadd.xlane.f32.xlu1 %v160_v56  ;;  %137 = vadd.xlane.f32.xlu0 %v136_v57 }
  0x33   :  { %164 = vadd.xlane.f32.xlu1 %v163_v0  ;;  %140 = vadd.xlane.f32.xlu0 %v139_v1 }
  0x37   :  { %167 = vadd.xlane.f32.xlu1 %v166_v8  ;;  %143 = vadd.xlane.f32.xlu0 %v142_v9 }
  0x3b   :  { %179 = vadd.xlane.f32.xlu1 %v178_v16  ;;  %176 = vadd.xlane.f32.xlu0 %v175_v17 }
  0x3f   :  { %203 = vadd.xlane.f32.xlu1 %v202_v24  ;;  %200 = vadd.xlane.f32.xlu0 %v199_v25 }
  0x43   :  { %170 = vadd.xlane.f32.xlu1 %v990_v38  ;;  %146 = vadd.xlane.f32.xlu0 %v993_v39 }
  0x47   :  { %206 = vadd.xlane.f32.xlu1 %v1002_v42  ;;  %182 = vadd.xlane.f32.xlu0 %v1005_v43 }
  0x4b   :  { %173 = vadd.xlane.f32.xlu1 %v1014_v46  ;;  %149 = vadd.xlane.f32.xlu0 %v1017_v47  ;;  %v335_v46 = vld [vmem:[%s1434_s1] sm:$0xff] }
  0x4c   :  { %860 = vmatprep.mubr.msk.f32.mxu0 %vm742_vm1, %v335_v46 }
  0x4f   :  { %209 = vadd.xlane.f32.xlu1 %v1026_v50  ;;  %185 = vadd.xlane.f32.xlu0 %v1029_v51  ;;  %v882_v51 = vmov 0  }
  0x50   :  { %881 = vset.pattern.permute.xlu1 %v882_v51  ;;  %880 = vset.pattern.permute.xlu0 %v882_v51 }
  0x53   :  { %212 = vadd.xlane.f32.xlu1 %v1038_v54  ;;  %188 = vadd.xlane.f32.xlu0 %v1041_v55  ;;  %v338_v54 = vld [vmem:[%s1435_s2 + $0x8] sm:$0x3]  ;;  %v337_v55 = vld [vmem:[%s1435_s2] sm:$0xff] }
  0x57   :  { %215 = vadd.xlane.f32.xlu1 %v1050_v58  ;;  %191 = vadd.xlane.f32.xlu0 %v1053_v59 }
  0x5b   :  { %227 = vadd.xlane.f32.xlu1 %v1062_v62  ;;  %224 = vadd.xlane.f32.xlu0 %v1065_v63 }
  0x5f   :  { %251 = vadd.xlane.f32.xlu1 %v1074_v2  ;;  %248 = vadd.xlane.f32.xlu0 %v1077_v3 }
  0x63   :  { %218 = vadd.xlane.f32.xlu1 %v1086_v6  ;;  %194 = vadd.xlane.f32.xlu0 %v1089_v7  ;;  %v413_v6 = vlaneseq }
  0x67   :  { %254 = vadd.xlane.f32.xlu1 %v1098_v10  ;;  %230 = vadd.xlane.f32.xlu0 %v1101_v11  ;;  %v414_v11 = vand.u32 127, %v413_v6 }
  0x6b   :  { %221 = vadd.xlane.f32.xlu1 %v1110_v14  ;;  %197 = vadd.xlane.f32.xlu0 %v1113_v15  ;;  %v416_v14 = vshrl.u32 %v413_v6, 7 }
  0x6f   :  { %257 = vadd.xlane.f32.xlu1 %v1122_v18  ;;  %233 = vadd.xlane.f32.xlu0 %v1125_v19  ;;  %v1285_v19 = vsub.s32 %v414_v11, %v416_v14 }
  0x73   :  { %260 = vadd.xlane.f32.xlu1 %v1134_v22  ;;  %236 = vadd.xlane.f32.xlu0 %v1137_v23 }
  0x77   :  { %263 = vadd.xlane.f32.xlu1 %v1148_v26  ;;  %239 = vadd.xlane.f32.xlu0 %v1151_v27 }
  0x7b   :  { %266 = vadd.xlane.f32.xlu1 %v1160_v30  ;;  %242 = vadd.xlane.f32.xlu0 %v1163_v31 }
  0x7f   :  { %269 = vadd.xlane.f32.xlu1 %v1178_v40  ;;  %245 = vadd.xlane.f32.xlu0 %v1181_v41 }
  0x90   :  { %v105_v38 = vpop.xlane.xlu1 %104  ;;  %v81_v39 = vpop.xlane.xlu0 %80  ;;  %346 = vperm.xlu1 %881, %v338_v54  }
  0x91   :  { %v279_v30 = vmul.f32 0.015625, %v105_v38  ;;  %v271_v31 = vmul.f32 0.015625, %v81_v39 }
  0x93   :  { %v450_v56 = vrot.slane %v279_v30, %v1285_v19  ;;  %v418_v57 = vrot.slane %v271_v31, %v1285_v19 }
  0x94   :  { %v108_v42 = vpop.xlane.xlu1 %107  ;;  %v84_v43 = vpop.xlane.xlu0 %83 }
  0x95   :  { %341 = vperm.xlu0 %880, %v337_v55   ;;  %v280_v22 = vmul.f32 0.015625, %v108_v42  ;;  %v272_v23 = vmul.f32 0.015625, %v84_v43 }
  0x97   :  { %v454_v40 = vrot.slane %v280_v22, %v1285_v19  ;;  %v422_v41 = vrot.slane %v272_v23, %v1285_v19 }
  0x98   :  { %v111_v47 = vpop.xlane.xlu1 %110  ;;  %v87_v50 = vpop.xlane.xlu0 %86 }
  0x99   :  { %v281_v26 = vmul.f32 0.015625, %v111_v47  ;;  %v273_v27 = vmul.f32 0.015625, %v87_v50  ;;  %v685_v4 = vsel %vm671_vm2, %v454_v40, %v450_v56  ;;  %v672_v5 = vsel %vm671_vm2, %v422_v41, %v418_v57 }
  0x9b   :  { %v458_v48 = vrot.slane %v281_v26, %v1285_v19  ;;  %v426_v49 = vrot.slane %v273_v27, %v1285_v19 }
  0x9c   :  { %v114_v58 = vpop.xlane.xlu1 %113  ;;  %v90_v59 = vpop.xlane.xlu0 %89 }
  0x9d   :  { %v282_v32 = vmul.f32 0.015625, %v114_v58  ;;  %v274_v33 = vmul.f32 0.015625, %v90_v59  ;;  %v686_v12 = vsel %vm673_vm3, %v458_v48, %v685_v4  ;;  %v674_v13 = vsel %vm673_vm3, %v426_v49, %v672_v5 }
  0x9f   :  { %v462_v60 = vrot.slane %v282_v32, %v1285_v19  ;;  %v430_v61 = vrot.slane %v274_v33, %v1285_v19 }
  0xa0   :  { %v117_v62 = vpop.xlane.xlu1 %116  ;;  %v93_v63 = vpop.xlane.xlu0 %92 }
  0xa1   :  { %v283_v36 = vmul.f32 0.015625, %v117_v62  ;;  %v275_v37 = vmul.f32 0.015625, %v93_v63  ;;  %v687_v24 = vsel %vm675_vm4, %v462_v60, %v686_v12  ;;  %v676_v25 = vsel %vm675_vm4, %v430_v61, %v674_v13 }
  0xa3   :  { %v466_v0 = vrot.slane %v283_v36, %v1285_v19  ;;  %v434_v1 = vrot.slane %v275_v37, %v1285_v19 }
  0xa4   :  { %v120_v2 = vpop.xlane.xlu1 %119  ;;  %v96_v3 = vpop.xlane.xlu0 %95 }
  0xa5   :  { %v284_v44 = vmul.f32 0.015625, %v120_v2  ;;  %v276_v45 = vmul.f32 0.015625, %v96_v3  ;;  %v688_v42 = vsel %vm677_vm5, %v466_v0, %v687_v24  ;;  %v678_v43 = vsel %vm677_vm5, %v434_v1, %v676_v25 }
  0xa7   :  { %v470_v8 = vrot.slane %v284_v44, %v1285_v19  ;;  %v438_v9 = vrot.slane %v276_v45, %v1285_v19 }
  0xa8   :  { %v1277_v7 = vpop.xlane.xlu1 %131  ;;  %v1279_v10 = vpop.xlane.xlu0 %128 }
  0xa9   :  { %v680_v50 = vsel %vm679_vm6, %v438_v9, %v678_v43  ;;  %v689_v51 = vsel %vm679_vm6, %v470_v8, %v688_v42 }
  0xac   :  { %v1281_v15 = vpop.xlane.xlu1 %155  ;;  %v1283_v18 = vpop.xlane.xlu0 %152 }
  0xad   :  { %v296_v30 = vmul.f32 0.015625, %v1281_v15  ;;  %v295_v31 = vmul.f32 0.015625, %v1283_v18 }
  0xb0   :  { %v123_v28 = vpop.xlane.xlu1 %122  ;;  %v99_v29 = vpop.xlane.xlu0 %98 }
  0xb1   :  { %v285_v52 = vmul.f32 0.015625, %v123_v28  ;;  %v277_v34 = vmul.f32 0.015625, %v99_v29  ;;  %v288_v28 = vmul.f32 0.015625, %v1277_v7  ;;  %v287_v29 = vmul.f32 0.015625, %v1279_v10 }
  0xb2   :  { %v518_v7 = vrot.slane %v296_v30, %v1285_v19  ;;  %v514_v10 = vrot.slane %v295_v31, %v1285_v19 }
  0xb3   :  { %v474_v16 = vrot.slane %v285_v52, %v1285_v19  ;;  %v442_v17 = vrot.slane %v277_v34, %v1285_v19  ;;  %v486_v44 = vrot.slane %v288_v28, %v1285_v19  ;;  %v482_v45 = vrot.slane %v287_v29, %v1285_v19 }
  0xb4   :  { %v159_v35 = vpop.xlane.xlu1 %158  ;;  %v135_v53 = vpop.xlane.xlu0 %134  ;;  %v699_v5 = vsel %vm671_vm2, %v518_v7, %v514_v10 }
  0xb5   :  { %v682_v58 = vsel %vm681_vm7, %v442_v17, %v680_v50  ;;  %v690_v59 = vsel %vm681_vm7, %v474_v16, %v689_v51  ;;  %v297_v32 = vmul.f32 0.015625, %v159_v35  ;;  %v289_v33 = vmul.f32 0.015625, %v135_v53 }
  0xb6   :  { %v692_v4 = vsel %vm671_vm2, %v486_v44, %v482_v45 }
  0xb7   :  { %v522_v18 = vrot.slane %v297_v32, %v1285_v19  ;;  %v490_v34 = vrot.slane %v289_v33, %v1285_v19 }
  0xb8   :  { %v126_v20 = vpop.xlane.xlu1 %125  ;;  %v102_v21 = vpop.xlane.xlu0 %101 }
  0xb9   :  { %v286_v38 = vmul.f32 0.015625, %v126_v20  ;;  %v278_v39 = vmul.f32 0.015625, %v102_v21  ;;  %v700_v12 = vsel %vm673_vm3, %v522_v18, %v699_v5  ;;  %v693_v13 = vsel %vm673_vm3, %v490_v34, %v692_v4 }
  0xbb   :  { %v478_v46 = vrot.slane %v286_v38, %v1285_v19  ;;  %v446_v47 = vrot.slane %v278_v39, %v1285_v19 }
  0xbc   :  { %v162_v54 = vpop.xlane.xlu1 %161  ;;  %v138_v55 = vpop.xlane.xlu0 %137 }
  0xbd   :  { %v684_v62 = vsel %vm683_vm8, %v446_v47, %v682_v58  ;;  %v691_v63 = vsel %vm683_vm8, %v478_v46, %v690_v59  ;;  %v298_v40 = vmul.f32 0.015625, %v162_v54  ;;  %v290_v41 = vmul.f32 0.015625, %v138_v55 }
  0xbe   :  { %v863_v2 = vpack.c.bf16 %v691_v63, %v684_v62 }
  0xbf   :  { %v526_v60 = vrot.slane %v298_v40, %v1285_v19  ;;  %v494_v61 = vrot.slane %v290_v41, %v1285_v19 }
  0xc0   :  { %v165_v3 = vpop.xlane.xlu1 %164  ;;  %864 = vmatprep.subr.bf16.mxu0 %v863_v2  ;;  %v141_v6 = vpop.xlane.xlu0 %140 }
  0xc1   :  { %866 = vmatpush3.bf16.msra.mxu0 %v863_v2  ;;  %v299_v48 = vmul.f32 0.015625, %v165_v3  ;;  %v291_v49 = vmul.f32 0.015625, %v141_v6  ;;  %v701_v24 = vsel %vm675_vm4, %v526_v60, %v700_v12  ;;  %v694_v25 = vsel %vm675_vm4, %v494_v61, %v693_v13 }
  0xc3   :  { %v530_v0 = vrot.slane %v299_v48, %v1285_v19  ;;  %v498_v1 = vrot.slane %v291_v49, %v1285_v19 }
  0xc4   :  { %v168_v11 = vpop.xlane.xlu1 %167  ;;  %v144_v14 = vpop.xlane.xlu0 %143 }
  0xc5   :  { %v300_v52 = vmul.f32 0.015625, %v168_v11  ;;  %v292_v15 = vmul.f32 0.015625, %v144_v14  ;;  %v702_v42 = vsel %vm677_vm5, %v530_v0, %v701_v24  ;;  %v695_v43 = vsel %vm677_vm5, %v498_v1, %v694_v25 }
  0xc7   :  { %v534_v8 = vrot.slane %v300_v52, %v1285_v19  ;;  %v502_v9 = vrot.slane %v292_v15, %v1285_v19 }
  0xc8   :  { %v1317_v22 = vpop.xlane.xlu1 %179  ;;  %v1319_v23 = vpop.xlane.xlu0 %176 }
  0xc9   :  { %v703_v46 = vsel %vm679_vm6, %v534_v8, %v702_v42  ;;  %v696_v47 = vsel %vm679_vm6, %v502_v9, %v695_v43  ;;  %v304_v32 = vmul.f32 0.015625, %v1317_v22  ;;  %v303_v33 = vmul.f32 0.015625, %v1319_v23 }
  0xcb   :  { %v550_v7 = vrot.slane %v304_v32, %v1285_v19  ;;  %v546_v10 = vrot.slane %v303_v33, %v1285_v19 }
  0xcc   :  { %v1321_v26 = vpop.xlane.xlu1 %203  ;;  %v1323_v27 = vpop.xlane.xlu0 %200 }
  0xcd   :  { %v706_v4 = vsel %vm671_vm2, %v550_v7, %v546_v10 }
  0xd0   :  { %v171_v36 = vpop.xlane.xlu1 %170  ;;  %v147_v37 = vpop.xlane.xlu0 %146 }
  0xd1   :  { %v301_v35 = vmul.f32 0.015625, %v171_v36  ;;  %v293_v53 = vmul.f32 0.015625, %v147_v37  ;;  %v312_v36 = vmul.f32 0.015625, %v1321_v26  ;;  %v311_v37 = vmul.f32 0.015625, %v1323_v27 }
  0xd3   :  { %v538_v16 = vrot.slane %v301_v35, %v1285_v19  ;;  %v506_v17 = vrot.slane %v293_v53, %v1285_v19  ;;  %v582_v22 = vrot.slane %v312_v36, %v1285_v19  ;;  %v578_v23 = vrot.slane %v311_v37, %v1285_v19 }
  0xd4   :  { %v207_v56 = vpop.xlane.xlu1 %206  ;;  %v183_v57 = vpop.xlane.xlu0 %182 }
  0xd5   :  { %v704_v54 = vsel %vm681_vm7, %v538_v16, %v703_v46  ;;  %v697_v55 = vsel %vm681_vm7, %v506_v17, %v696_v47  ;;  %v313_v40 = vmul.f32 0.015625, %v207_v56  ;;  %v305_v41 = vmul.f32 0.015625, %v183_v57 }
  0xd6   :  { %v713_v5 = vsel %vm671_vm2, %v582_v22, %v578_v23 }
  0xd7   :  { %v586_v27 = vrot.slane %v313_v40, %v1285_v19  ;;  %v554_v34 = vrot.slane %v305_v41, %v1285_v19 }
  0xd8   :  { %v174_v20 = vpop.xlane.xlu1 %173  ;;  %v150_v21 = vpop.xlane.xlu0 %149 }
  0xd9   :  { %v302_v38 = vmul.f32 0.015625, %v174_v20  ;;  %v294_v39 = vmul.f32 0.015625, %v150_v21  ;;  %v714_v12 = vsel %vm673_vm3, %v586_v27, %v713_v5  ;;  %v707_v13 = vsel %vm673_vm3, %v554_v34, %v706_v4 }
  0xdb   :  { %v542_v50 = vrot.slane %v302_v38, %v1285_v19  ;;  %v510_v51 = vrot.slane %v294_v39, %v1285_v19 }
  0xdc   :  { %v210_v58 = vpop.xlane.xlu1 %209  ;;  %v186_v59 = vpop.xlane.xlu0 %185 }
  0xdd   :  { %v698_v62 = vsel %vm683_vm8, %v510_v51, %v697_v55  ;;  %v705_v63 = vsel %vm683_vm8, %v542_v50, %v704_v54  ;;  %v314_v48 = vmul.f32 0.015625, %v210_v58  ;;  %v306_v49 = vmul.f32 0.015625, %v186_v59 }
  0xde   :  { %v867_v2 = vpack.c.bf16 %v705_v63, %v698_v62 }
  0xdf   :  { %v590_v60 = vrot.slane %v314_v48, %v1285_v19  ;;  %v558_v61 = vrot.slane %v306_v49, %v1285_v19 }
  0xe0   :  { %v213_v3 = vpop.xlane.xlu1 %212  ;;  %868 = vmatprep.subr.bf16.mxu0 %v867_v2  ;;  %v189_v6 = vpop.xlane.xlu0 %188 }
  0xe1   :  { %870 = vmatpush3.bf16.msra.mxu0 %v867_v2  ;;  %v315_v52 = vmul.f32 0.015625, %v213_v3  ;;  %v307_v15 = vmul.f32 0.015625, %v189_v6  ;;  %v715_v24 = vsel %vm675_vm4, %v590_v60, %v714_v12  ;;  %v708_v25 = vsel %vm675_vm4, %v558_v61, %v707_v13 }
  0xe3   :  { %v594_v0 = vrot.slane %v315_v52, %v1285_v19  ;;  %v562_v1 = vrot.slane %v307_v15, %v1285_v19 }
  0xe4   :  { %v216_v11 = vpop.xlane.xlu1 %215  ;;  %v192_v14 = vpop.xlane.xlu0 %191 }
  0xe5   :  { %v316_v18 = vmul.f32 0.015625, %v216_v11  ;;  %v308_v26 = vmul.f32 0.015625, %v192_v14  ;;  %v716_v42 = vsel %vm677_vm5, %v594_v0, %v715_v24  ;;  %v709_v43 = vsel %vm677_vm5, %v562_v1, %v708_v25 }
  0xe7   :  { %v598_v8 = vrot.slane %v316_v18, %v1285_v19  ;;  %v566_v9 = vrot.slane %v308_v26, %v1285_v19 }
  0xe8   :  { %v228_v28 = vpop.xlane.xlu1 %227  ;;  %v225_v29 = vpop.xlane.xlu0 %224 }
  0xe9   :  { %v717_v46 = vsel %vm679_vm6, %v598_v8, %v716_v42  ;;  %v710_v47 = vsel %vm679_vm6, %v566_v9, %v709_v43  ;;  %v320_v11 = vmul.f32 0.015625, %v228_v28  ;;  %v319_v14 = vmul.f32 0.015625, %v225_v29 }
  0xeb   :  { %v614_v48 = vrot.slane %v320_v11, %v1285_v19  ;;  %v610_v49 = vrot.slane %v319_v14, %v1285_v19 }
  0xec   :  { %v252_v30 = vpop.xlane.xlu1 %251  ;;  %v249_v31 = vpop.xlane.xlu0 %248 }
  0xed   :  { %v328_v32 = vmul.f32 0.015625, %v252_v30  ;;  %v327_v33 = vmul.f32 0.015625, %v249_v31 }
  0xef   :  { %v646_v52 = vrot.slane %v328_v32, %v1285_v19  ;;  %v642_v15 = vrot.slane %v327_v33, %v1285_v19 }
  0xf0   :  { %v219_v44 = vpop.xlane.xlu1 %218  ;;  %v195_v45 = vpop.xlane.xlu0 %194 }
  0xf1   :  { %v317_v35 = vmul.f32 0.015625, %v219_v44  ;;  %v309_v53 = vmul.f32 0.015625, %v195_v45 }
  0xf3   :  { %v602_v16 = vrot.slane %v317_v35, %v1285_v19  ;;  %v570_v17 = vrot.slane %v309_v53, %v1285_v19 }
  0xf4   :  { %v255_v56 = vpop.xlane.xlu1 %254  ;;  %v231_v57 = vpop.xlane.xlu0 %230 }
  0xf5   :  { %v718_v54 = vsel %vm681_vm7, %v602_v16, %v717_v46  ;;  %v711_v55 = vsel %vm681_vm7, %v570_v17, %v710_v47  ;;  %v329_v36 = vmul.f32 0.015625, %v255_v56  ;;  %v321_v37 = vmul.f32 0.015625, %v231_v57 }
  0xf6   :  { %v720_v56 = vsel %vm671_vm2, %v614_v48, %v610_v49  ;;  %v727_v57 = vsel %vm671_vm2, %v646_v52, %v642_v15 }
  0xf7   :  { %v650_v30 = vrot.slane %v329_v36, %v1285_v19  ;;  %v618_v31 = vrot.slane %v321_v37, %v1285_v19 }
  0xf8   :  { %v222_v20 = vpop.xlane.xlu1 %221  ;;  %v198_v21 = vpop.xlane.xlu0 %197 }
  0xf9   :  { %v318_v38 = vmul.f32 0.015625, %v222_v20  ;;  %v310_v39 = vmul.f32 0.015625, %v198_v21  ;;  %v728_v0 = vsel %vm673_vm3, %v650_v30, %v727_v57  ;;  %v721_v1 = vsel %vm673_vm3, %v618_v31, %v720_v56 }
  0xfb   :  { %v606_v50 = vrot.slane %v318_v38, %v1285_v19  ;;  %v574_v51 = vrot.slane %v310_v39, %v1285_v19 }
  0xfc   :  { %v258_v58 = vpop.xlane.xlu1 %257  ;;  %v234_v59 = vpop.xlane.xlu0 %233 }
  0xfd   :  { %v712_v62 = vsel %vm683_vm8, %v574_v51, %v711_v55  ;;  %v719_v63 = vsel %vm683_vm8, %v606_v50, %v718_v54  ;;  %v330_v44 = vmul.f32 0.015625, %v258_v58  ;;  %v322_v45 = vmul.f32 0.015625, %v234_v59  ;;  %v336_v51 = vld [vmem:[%s1434_s1 + $0x8] sm:$0x3] }
  0xfe   :  { %v871_v2 = vpack.c.bf16 %v719_v63, %v712_v62 }
  0xff   :  { %v654_v18 = vrot.slane %v330_v44, %v1285_v19  ;;  %v622_v26 = vrot.slane %v322_v45, %v1285_v19 }
 0x100   :  { %v261_v3 = vpop.xlane.xlu1 %260  ;;  %872 = vmatprep.subr.bf16.mxu0 %v871_v2  ;;  %v237_v6 = vpop.xlane.xlu0 %236 }
 0x101   :  { %874 = vmatpush3.bf16.msra.mxu0 %v871_v2  ;;  %v331_v7 = vmul.f32 0.015625, %v261_v3  ;;  %v323_v10 = vmul.f32 0.015625, %v237_v6  ;;  %v729_v12 = vsel %vm675_vm4, %v654_v18, %v728_v0  ;;  %v722_v13 = vsel %vm675_vm4, %v622_v26, %v721_v1 }
 0x103   :  { %v658_v35 = vrot.slane %v331_v7, %v1285_v19  ;;  %v626_v53 = vrot.slane %v323_v10, %v1285_v19 }
 0x104   :  { %v264_v40 = vpop.xlane.xlu1 %263  ;;  %v240_v41 = vpop.xlane.xlu0 %239 }
 0x105   :  { %v332_v28 = vmul.f32 0.015625, %v264_v40  ;;  %v324_v29 = vmul.f32 0.015625, %v240_v41  ;;  %v730_v20 = vsel %vm677_vm5, %v658_v35, %v729_v12  ;;  %v723_v21 = vsel %vm677_vm5, %v626_v53, %v722_v13 }
 0x107   :  { %v662_v60 = vrot.slane %v332_v28, %v1285_v19  ;;  %v630_v61 = vrot.slane %v324_v29, %v1285_v19 }
 0x108   :  { %v267_v22 = vpop.xlane.xlu1 %266  ;;  %v243_v23 = vpop.xlane.xlu0 %242 }
 0x109   :  { %v333_v27 = vmul.f32 0.015625, %v267_v22  ;;  %v325_v34 = vmul.f32 0.015625, %v243_v23  ;;  %v731_v24 = vsel %vm679_vm6, %v662_v60, %v730_v20  ;;  %v724_v25 = vsel %vm679_vm6, %v630_v61, %v723_v21 }
 0x10b   :  { %v666_v4 = vrot.slane %v333_v27, %v1285_v19  ;;  %v634_v5 = vrot.slane %v325_v34, %v1285_v19 }
 0x10c   :  { %v270_v8 = vpop.xlane.xlu1 %269  ;;  %v246_v9 = vpop.xlane.xlu0 %245 }
 0x10d   :  { %v334_v16 = vmul.f32 0.015625, %v270_v8  ;;  %v326_v17 = vmul.f32 0.015625, %v246_v9  ;;  %v732_v42 = vsel %vm681_vm7, %v666_v4, %v731_v24  ;;  %v725_v43 = vsel %vm681_vm7, %v634_v5, %v724_v25 }
 0x10f   :  { %v670_v38 = vrot.slane %v334_v16, %v1285_v19  ;;  %v638_v39 = vrot.slane %v326_v17, %v1285_v19 }
 0x110   :  { %v347_v54 = vpop.permute.xlu1 %346 }
 0x111   :  { %v726_v46 = vsel %vm683_vm8, %v638_v39, %v725_v43  ;;  %v733_v47 = vsel %vm683_vm8, %v670_v38, %v732_v42 }
 0x112   :  { %v875_v50 = vpack.c.bf16 %v733_v47, %v726_v46 }
 0x114   :  { %876 = vmatprep.subr.bf16.mxu0 %v875_v50  ;;  %v342_v55 = vpop.permute.xlu0 %341 }
 0x115   :  { %878 = vmatpush3.bf16.msra.mxu0 %v875_v50 }
 0x118   :  { %861 = vmatmul.mubr.msk.f32.vlgmr.msra.gmra.mrb[0].mxu0 %vm742_vm1, %v336_v51 }
 0x1eb   :  { %v862_v19 = vpop.f32.mrb[0].mxu0 }
 0x1ec   :  { %v821_v58 = vadd.f32 %v862_v19, %v347_v54  ;;  %v815_v59 = vpop.f32.mrb[1].mxu0 }
 0x1ed   :  { %v816_v62 = vadd.f32 %v815_v59, %v342_v55 }
 0x1ee   :  { %827 = vst.msk [vmem:[%s1436_s3 + $0x8] sm:$0x3] %vm826_vm9, %v821_v58 }
 0x1ef   :  { %825 = vst.msk [vmem:[%s1436_s3] sm:$0xff] %vm824_vm10, %v816_v62 }

// kernel: _lambda_.14
= control target key start
LH: loop header
LB: loop body
LE: loop exit
PB: predicated region body
PF: predicated region fallthrough
CT: control target
= control target key end

     0   :  { %v1179_v1 = vmov 0   ;;  %vm164_vm0 = vcmask 261120   ;;  %vm606_vm1 = vcmask 523264   ;;  %s1499_s4 = inlined_call_operand.vmem [shape: bf16[32,128], index: 4, kind: input, shape index: {}]   ;;  %s1500_s1 = inlined_call_operand.vmem [shape: bf16[576,128], index: 1, kind: input, shape index: {}]   ;;  %s1501_s3 = inlined_call_operand.vmem [shape: bf16[64,32], index: 3, kind: input, shape index: {}]   ;;  %s1502_s0 = inlined_call_operand.vmem [shape: bf16[64,576], index: 0, kind: input, shape index: {}]   ;;  %s1503_s2 = inlined_call_operand.vmem [shape: f32[64,1], index: 2, kind: input, shape index: {}, may-alias: {2,5}]   ;;  %s1504_s5 = inlined_call_operand.vmem [shape: f32[64,1], index: 5, kind: input, shape index: {}, may-alias: {2,5}]   ;;  %s1505_s6 = inlined_call_operand.vmem [shape: f32[64,128], index: 6, kind: output, shape index: {}]  }
   0x1   :  { %v1109_v0 = vld [vmem:[%s1499_s4] sm:$0xff]   ;;  %1108 = vset.pattern.permute.xlu1 %v1179_v1  ;;  %1107 = vset.pattern.permute.xlu0 %v1179_v1  ;;  %v1112_v4 = vld [vmem:[%s1499_s4 + $0x8] sm:$0xff]   ;;  %v1118_v10 = vld [vmem:[%s1500_s1 + $0xd0] sm:$0xff]  }
   0x2   :  { %v1110_v2 = vld [vmem:[%s1500_s1 + $0xc0] sm:$0xff]   ;;  %1062 = vmatprep.subr.bf16.mxu1 %v1109_v0  ;;  %v1113_v5 = vld [vmem:[%s1500_s1 + $0xc8] sm:$0xff]   ;;  %v1120_v12 = vld [vmem:[%s1500_s1 + $0x90] sm:$0xff]  }
   0x3   :  { %v1111_v3 = vld [vmem:[%s1500_s1 + $0x80] sm:$0xff]   ;;  %1014 = vmatprep.subr.bf16.mxu0 %v1110_v2  ;;  %1063 = vmatpush3.bf16.msra.mxu1 %v1109_v0  ;;  %v1114_v6 = vld [vmem:[%s1500_s1 + $0x88] sm:$0xff]   ;;  %v1122_v14 = vld [vmem:[%s1500_s1 + $0xd8] sm:$0xff]  }
   0x4   :  { %1015 = vmatpush3.bf16.msra.mxu0 %v1111_v3  ;;  %1064 = vmatprep.subr.bf16.mxu1 %v1112_v4  ;;  %v1115_v7 = vld [vmem:[%s1501_s3] sm:$0xff]   ;;  %v1116_v8 = vld [vmem:[%s1501_s3 + $0x8] sm:$0xff]   ;;  %v1124_v16 = vld [vmem:[%s1500_s1 + $0x98] sm:$0xff]  }
   0x5   :  { %1016 = vmatprep.subr.bf16.mxu0 %v1113_v5  ;;  %1066 = vmatprep.mubr.msk.bf16.mxu1 %vm164_vm0, %v1115_v7  ;;  %v1117_v9 = vld [vmem:[%s1500_s1 + $0x40] sm:$0xff]   ;;  %v1121_v13 = vld [vmem:[%s1500_s1 + $0x48] sm:$0xff]   ;;  %v1125_v17 = vld [vmem:[%s1500_s1 + $0x50] sm:$0xff]  }
   0x6   :  { %v1119_v11 = vld [vmem:[%s1500_s1] sm:$0xff]   ;;  %v1123_v15 = vld [vmem:[%s1500_s1 + $0x8] sm:$0xff]   ;;  %v1127_v19 = vld [vmem:[%s1500_s1 + $0x10] sm:$0xff]  }
   0x7   :  { %1065 = vmatpush3.bf16.msra.mxu1 %v1112_v4  ;;  %v1126_v18 = vld [vmem:[%s1500_s1 + $0xe0] sm:$0xff]   ;;  %v1129_v21 = vld [vmem:[%s1500_s1 + $0x58] sm:$0xff]   ;;  %v1130_v22 = vld [vmem:[%s1500_s1 + $0xe8] sm:$0xff]  }
   0x8   :  { %1017 = vmatpush3.bf16.msra.mxu0 %v1114_v6  ;;  %974 = vmatprep.subr.bf16.mxu1 %v1117_v9  ;;  %v1128_v20 = vld [vmem:[%s1500_s1 + $0xa0] sm:$0xff]   ;;  %v1131_v23 = vld [vmem:[%s1500_s1 + $0x18] sm:$0xff]   ;;  %v1132_v24 = vld [vmem:[%s1500_s1 + $0xa8] sm:$0xff]  }
   0x9   :  { %1018 = vmatprep.subr.bf16.mxu0 %v1118_v10  ;;  %v1133_v25 = vld [vmem:[%s1500_s1 + $0x60] sm:$0xff]   ;;  %v1134_v26 = vld [vmem:[%s1500_s1 + $0xf0] sm:$0xff]   ;;  %v1137_v29 = vld [vmem:[%s1500_s1 + $0x68] sm:$0xff]  }
   0xa   :  { %1067 = vmatmul.mubr.msk.bf16.vlgmr.msra.gmra.mrb[0].mxu1 %vm164_vm0, %v1116_v8  ;;  %v1135_v27 = vld [vmem:[%s1500_s1 + $0x20] sm:$0xff]   ;;  %v1136_v28 = vld [vmem:[%s1500_s1 + $0xb0] sm:$0xff]   ;;  %v1138_v30 = vld [vmem:[%s1500_s1 + $0xf8] sm:$0xff]  }
   0xb   :  { %975 = vmatpush3.bf16.msra.mxu1 %v1119_v11  ;;  %v1139_v31 = vld [vmem:[%s1501_s3 + $0x10] sm:$0xff]   ;;  %v1140_v32 = vld [vmem:[%s1500_s1 + $0x28] sm:$0xff]   ;;  %v1141_v33 = vld [vmem:[%s1500_s1 + $0xb8] sm:$0xff]  }
   0xc   :  { %1019 = vmatpush3.bf16.msra.mxu0 %v1120_v12  ;;  %976 = vmatprep.subr.bf16.mxu1 %v1121_v13  ;;  %v1142_v34 = vld [vmem:[%s1501_s3 + $0x18] sm:$0xff]   ;;  %v1145_v36 = vld [vmem:[%s1502_s0 + $0xc] ss:$20 sps:$4 sm:$0xff]   ;;  %v1146_v37 = vld [vmem:[%s1500_s1 + $0x70] sm:$0xff]  }
   0xd   :  { %1020 = vmatprep.subr.bf16.mxu0 %v1122_v14  ;;  %1070 = vmatprep.mubr.msk.bf16.mxu1 %vm164_vm0, %v1139_v31  ;;  %v1143_v35 = vld [vmem:[%s1502_s0 + $0x8] ss:$20 sps:$4 sm:$0xff]   ;;  %v1147_v38 = vld [vmem:[%s1500_s1 + $0x100] sm:$0xff]   ;;  %v1148_v39 = vld [vmem:[%s1500_s1 + $0x30] sm:$0xff]  }
   0xe   :  { %716 = vmatprep.mubr.bf16.mxu0 %v1145_v36  ;;  %v1149_v40 = vld [vmem:[%s1500_s1 + $0x78] sm:$0xff]   ;;  %v1151_v42 = vld [vmem:[%s1502_s0] ss:$20 sps:$4 sm:$0xff]   ;;  %v1156_v45 = vld [vmem:[%s1502_s0 + $0x30] ss:$20 sps:$4 sm:$0xff]  }
   0xf   :  { %977 = vmatpush3.bf16.msra.mxu1 %v1123_v15  ;;  %v1150_v41 = vld [vmem:[%s1500_s1 + $0x38] sm:$0xff]   ;;  %v1154_v44 = vld [vmem:[%s1502_s0 + $0x34] ss:$20 sps:$4 sm:$0xff]   ;;  %v1158_v47 = vld [vmem:[%s1502_s0 + $0x2c] ss:$20 sps:$4 sm:$0xff]  }
  0x10   :  { %1021 = vmatpush3.bf16.msra.mxu0 %v1124_v16  ;;  %978 = vmatprep.subr.bf16.mxu1 %v1125_v17  ;;  %v1153_v43 = vld [vmem:[%s1502_s0 + $0x4] ss:$20 sps:$4 sm:$0xff]   ;;  %v1157_v46 = vld [vmem:[%s1500_s1 + $0x108] sm:$0xff]   ;;  %v1160_v48 = vld [vmem:[%s1502_s0 + $0x5c] ss:$20 sps:$4 sm:$0xff]  }
  0x11   :  { %1022 = vmatprep.subr.bf16.mxu0 %v1126_v18  ;;  %v1164_v49 = vld [vmem:[%s1500_s1 + $0x110] sm:$0xff]   ;;  %v1162_v50 = vld [vmem:[%s1502_s0 + $0x28] ss:$20 sps:$4 sm:$0xff]   ;;  %v1163_v51 = vld [vmem:[%s1502_s0 + $0x58] ss:$20 sps:$4 sm:$0xff]  }
  0x12   :  { %1071 = vmatmul.mubr.msk.bf16.gmra.mrb[4].mxu1 %vm164_vm0, %v1142_v34  ;;  %v1167_v52 = vld [vmem:[%s1502_s0 + $0x84] ss:$20 sps:$4 sm:$0xff]   ;;  %v1165_v54 = vld [vmem:[%s1502_s0 + $0x54] ss:$20 sps:$4 sm:$0xff]   ;;  %v1172_v62 = vld [vmem:[%s1502_s0 + $0x7c] ss:$20 sps:$4 sm:$0xff]  }
  0x13   :  { %979 = vmatpush3.bf16.msra.mxu1 %v1127_v19  ;;  %651 = vmatprep.mubr.bf16.mxu1 %v1153_v43  ;;  %v1171_v53 = vld [vmem:[%s1500_s1 + $0x118] sm:$0xff]   ;;  %v244_v55 = vld [vmem:[%s1503_s2 + $0x10] sm:$0xff]  ;;  %v242_v56 = vld [vmem:[%s1503_s2] sm:$0xff] }
  0x14   :  { %1023 = vmatpush3.bf16.msra.mxu0 %v1128_v20  ;;  %980 = vmatprep.subr.bf16.mxu1 %v1129_v21  ;;  %v1170_v57 = vld [vmem:[%s1502_s0 + $0x80] ss:$20 sps:$4 sm:$0xff]   ;;  %v245_v58 = vld [vmem:[%s1503_s2 + $0x18] sm:$0xff]  ;;  %v1169_v59 = vld [vmem:[%s1502_s0 + $0x50] ss:$20 sps:$4 sm:$0xff]  }
  0x15   :  { %1024 = vmatprep.subr.bf16.mxu0 %v1130_v22  ;;  %262 = vperm.xlu1 %1108, %v244_v55   ;;  %v1174_v60 = vld [vmem:[%s1502_s0 + $0x10] ss:$20 sps:$4 sm:$0xff]   ;;  %v243_v61 = vld [vmem:[%s1503_s2 + $0x8] sm:$0xff]  ;;  %v249_v2 = vld [vmem:[%s1503_s2 + $0x38] sm:$0xff] }
  0x16   :  { %252 = vperm.xlu0 %1107, %v242_v56   ;;  %v247_v63 = vld [vmem:[%s1503_s2 + $0x28] sm:$0xff]  ;;  %v246_v0 = vld [vmem:[%s1503_s2 + $0x20] sm:$0xff]  ;;  %v248_v5 = vld [vmem:[%s1503_s2 + $0x30] sm:$0xff] }
  0x17   :  { %981 = vmatpush3.bf16.msra.mxu1 %v1131_v23  ;;  %v1176_v1 = vld [vmem:[%s1502_s0 + $0x38] ss:$20 sps:$4 sm:$0xff]   ;;  %v1177_v4 = vld [vmem:[%s1502_s0 + $0x60] ss:$20 sps:$4 sm:$0xff]   ;;  %v1178_v8 = vld [vmem:[%s1502_s0 + $0x88] ss:$20 sps:$4 sm:$0xff]  }
  0x18   :  { %1025 = vmatpush3.bf16.msra.mxu0 %v1132_v24  ;;  %982 = vmatprep.subr.bf16.mxu1 %v1133_v25  ;;  %v1175_v3 = vld [vmem:[%s1502_s0 + $0x78] ss:$20 sps:$4 sm:$0xff]   ;;  %v822_v7 = vld [vmem:[%s1504_s5] sm:$0xff]  ;;  %v824_v10 = vld [vmem:[%s1504_s5 + $0x10] sm:$0xff] }
  0x19   :  { %1026 = vmatprep.subr.bf16.mxu0 %v1134_v26  ;;  %267 = vperm.xlu1 %1108, %v245_v58   ;;  %v823_v6 = vld [vmem:[%s1504_s5 + $0x8] sm:$0xff]  ;;  %v825_v9 = vld [vmem:[%s1504_s5 + $0x18] sm:$0xff]  ;;  %v826_v12 = vld [vmem:[%s1504_s5 + $0x20] sm:$0xff] }
  0x1a   :  { %257 = vperm.xlu0 %1107, %v243_v61   ;;  %v827_v11 = vld [vmem:[%s1504_s5 + $0x28] sm:$0xff]  ;;  %v829_v13 = vld [vmem:[%s1504_s5 + $0x38] sm:$0xff]  ;;  %v828_v14 = vld [vmem:[%s1504_s5 + $0x30] sm:$0xff] }
  0x1b   :  { %983 = vmatpush3.bf16.msra.mxu1 %v1135_v27 }
  0x1c   :  { %1027 = vmatpush3.bf16.msra.mxu0 %v1136_v28  ;;  %984 = vmatprep.subr.bf16.mxu1 %v1137_v29 }
  0x1d   :  { %1028 = vmatprep.subr.bf16.mxu0 %v1138_v30  ;;  %277 = vperm.xlu1 %1108, %v247_v63  }
  0x1e   :  { %272 = vperm.xlu0 %1107, %v246_v0  }
  0x1f   :  { %985 = vmatpush3.bf16.msra.mxu1 %v1140_v32 }
  0x20   :  { %1029 = vmatpush3.bf16.msra.mxu0 %v1141_v33  ;;  %986 = vmatprep.subr.bf16.mxu1 %v1146_v37 }
  0x21   :  { %1074 = vmatprep.subr.bf16.mxu0 %v1147_v38  ;;  %287 = vperm.xlu1 %1108, %v249_v2  }
  0x22   :  { %282 = vperm.xlu0 %1107, %v248_v5  }
  0x23   :  { %717 = vmatmul.mubr.bf16.vlgmr.msra.gmra.mrb[0].mxu0 %v1143_v35  ;;  %987 = vmatpush3.bf16.msra.mxu1 %v1148_v39 }
  0x24   :  { %1075 = vmatpush3.bf16.msra.mxu0 %v1147_v38  ;;  %988 = vmatprep.subr.bf16.mxu1 %v1149_v40 }
  0x25   :  { %724 = vmatprep.mubr.bf16.mxu0 %v1154_v44  ;;  %1076 = vmatprep.subr.bf16.mxu0 %v1157_v46 }
  0x26   :  { %837 = vperm.xlu1 %1108, %v823_v6   ;;  %832 = vperm.xlu0 %1107, %v822_v7  }
  0x27   :  { %989 = vmatpush3.bf16.msra.mxu1 %v1150_v41 }
  0x28   :  { %1077 = vmatpush3.bf16.msra.mxu0 %v1157_v46 }
  0x29   :  { %1078 = vmatprep.subr.bf16.mxu0 %v1164_v49 }
  0x2a   :  { %652 = vmatmul.mubr.bf16.vlgmr.msra.gmra.mrb[8].mxu1 %v1151_v42  ;;  %847 = vperm.xlu1 %1108, %v825_v9  }
  0x2b   :  { %725 = vmatmul.mubr.bf16.gmra.mrb[4].mxu0 %v1156_v45  ;;  %659 = vmatprep.mubr.bf16.mxu1 %v1158_v47 }
  0x2c   :  { %732 = vmatprep.mubr.bf16.mxu0 %v1160_v48  ;;  %1079 = vmatpush3.bf16.msra.mxu0 %v1164_v49 }
  0x2d   :  { %1080 = vmatprep.subr.bf16.mxu0 %v1171_v53  ;;  %842 = vperm.xlu0 %1107, %v824_v10  }
  0x2e   :  { %857 = vperm.xlu1 %1108, %v827_v11  }
  0x30   :  { %1081 = vmatpush3.bf16.msra.mxu0 %v1171_v53 }
  0x31   :  { %852 = vperm.xlu0 %1107, %v826_v12  }
  0x32   :  { %660 = vmatmul.mubr.bf16.gmra.mrb[12].mxu1 %v1162_v50  ;;  %867 = vperm.xlu1 %1108, %v829_v13  }
  0x33   :  { %733 = vmatmul.mubr.bf16.gmra.mrb[8].mxu0 %v1163_v51  ;;  %667 = vmatprep.mubr.bf16.mxu1 %v1165_v54 }
  0x34   :  { %740 = vmatprep.mubr.bf16.mxu0 %v1167_v52 }
  0x35   :  { %862 = vperm.xlu0 %1107, %v828_v14  }
  0x3a   :  { %668 = vmatmul.mubr.bf16.gmra.mrb[16].mxu1 %v1169_v59 }
  0x3b   :  { %741 = vmatmul.mubr.bf16.gmra.mrb[12].mxu0 %v1170_v57  ;;  %675 = vmatprep.mubr.bf16.mxu1 %v1172_v62 }
  0x3c   :  { %1082 = vmatprep.mubr.msk.bf16.mxu0 %vm606_vm1, %v1174_v60 }
  0x42   :  { %676 = vmatmul.mubr.bf16.gmra.mrb[20].mxu1 %v1175_v3 }
  0x43   :  { %1083 = vmatmul.mubr.msk.bf16.vlgmr.msra.gmra.mrb[16].mxu0 %vm606_vm1, %v1176_v1 }
  0x44   :  { %1086 = vmatprep.mubr.msk.bf16.mxu0 %vm606_vm1, %v1177_v4 }
  0x4b   :  { %1087 = vmatmul.mubr.msk.bf16.gmra.mrb[20].mxu0 %vm606_vm1, %v1178_v8 }
  0x94   :  { %v263_v19 = vpop.permute.xlu1 %262 }
  0x95   :  { %v253_v20 = vpop.permute.xlu0 %252 }
  0x98   :  { %v268_v26 = vpop.permute.xlu1 %267 }
  0x99   :  { %v258_v28 = vpop.permute.xlu0 %257 }
  0x9c   :  { %v278_v33 = vpop.permute.xlu1 %277 }
  0x9d   :  { %v273_v34 = vpop.permute.xlu0 %272 }
  0xa0   :  { %v1467_v48 = vpop.permute.xlu1 %287 }
  0xa1   :  { %v283_v51 = vpop.permute.xlu0 %282 }
  0xa5   :  { %v838_v4 = vpop.permute.xlu1 %837  ;;  %v833_v7 = vpop.permute.xlu0 %832 }
  0xdd   :  { %v1068_v15 = vpop.f32.mrb[0].mxu1 }
  0xde   :  { %v211_v16 = vpop.f32.mrb[1].mxu1 }
  0xdf   :  { %v1457_v17 = vpop.f32.mrb[2].mxu1 }
  0xe0   :  { %v214_v18 = vpop.f32.mrb[3].mxu1 }
  0xe5   :  { %v1459_v21 = vpop.f32.mrb[4].mxu1 }
  0xe6   :  { %v1461_v22 = vpop.f32.mrb[5].mxu1 }
  0xe7   :  { %v1463_v23 = vpop.f32.mrb[6].mxu1 }
  0xe8   :  { %v1465_v25 = vpop.f32.mrb[7].mxu1 }
  0xf6   :  { %v1030_v24 = vpop.f32.mrb[0].mxu0 }
  0xf7   :  { %v1031_v27 = vpop.f32.mrb[1].mxu0 }
  0xf8   :  { %v1032_v29 = vadd.f32 %v1031_v27, %v1030_v24  ;;  %v1033_v30 = vpop.f32.mrb[2].mxu0 }
  0xf9   :  { %v1034_v31 = vpop.f32.mrb[3].mxu0 }
  0xfa   :  { %v1035_v32 = vadd.f32 %v1034_v31, %v1033_v30 }
  0xfd   :  { %v990_v36 = vpop.f32.mrb[8].mxu1 }
  0xfe   :  { %v1036_v35 = vpop.f32.mrb[4].mxu0  ;;  %v991_v38 = vpop.f32.mrb[9].mxu1 }
  0xff   :  { %v1037_v37 = vpop.f32.mrb[5].mxu0  ;;  %v992_v41 = vadd.f32 %v991_v38, %v990_v36  ;;  %v993_v42 = vpop.f32.mrb[10].mxu1 }
 0x100   :  { %v1038_v39 = vadd.f32 %v1037_v37, %v1036_v35  ;;  %v1039_v40 = vpop.f32.mrb[6].mxu0  ;;  %v994_v44 = vpop.f32.mrb[11].mxu1 }
 0x101   :  { %v1040_v43 = vpop.f32.mrb[7].mxu0  ;;  %v654_v46 = vadd.f32 %v992_v41, %v253_v20  ;;  %v995_v47 = vadd.f32 %v994_v44, %v993_v42  ;;  %v843_v35 = vpop.permute.xlu0 %842 }
 0x102   :  { %v1041_v45 = vadd.f32 %v1040_v43, %v1039_v40 }
 0x103   :  { %v657_v49 = vadd.f32 %v995_v47, %v258_v28  ;;  %v719_v50 = vadd.f32 %v1032_v29, %v654_v46 }
 0x105   :  { %v996_v53 = vpop.f32.mrb[12].mxu1  ;;  %v1092_v55 = vadd.f32 %v719_v50, %v211_v16  ;;  %v722_v56 = vadd.f32 %v1035_v32, %v657_v49 }
 0x106   :  { %v1042_v52 = vpop.f32.mrb[8].mxu0  ;;  %v997_v57 = vpop.f32.mrb[13].mxu1 }
 0x107   :  { %v1043_v54 = vpop.f32.mrb[9].mxu0  ;;  %v998_v60 = vadd.f32 %v997_v57, %v996_v53  ;;  %v999_v61 = vpop.f32.mrb[14].mxu1  ;;  %v1096_v63 = vadd.f32 %v722_v56, %v214_v18 }
 0x108   :  { %v1044_v58 = vadd.f32 %v1043_v54, %v1042_v52  ;;  %v1045_v59 = vpop.f32.mrb[10].mxu0  ;;  %v1000_v0 = vpop.f32.mrb[15].mxu1 }
 0x109   :  { %v1046_v62 = vpop.f32.mrb[11].mxu0  ;;  %v662_v2 = vadd.f32 %v998_v60, %v263_v19  ;;  %v1001_v3 = vadd.f32 %v1000_v0, %v999_v61  ;;  %v853_v57 = vpop.permute.xlu0 %852 }
 0x10a   :  { %v1047_v1 = vadd.f32 %v1046_v62, %v1045_v59 }
 0x10b   :  { %v665_v5 = vadd.f32 %v1001_v3, %v268_v26  ;;  %v727_v6 = vadd.f32 %v1038_v39, %v662_v2  ;;  %v848_v26 = vpop.permute.xlu1 %847 }
 0x10d   :  { %v1002_v9 = vpop.f32.mrb[16].mxu1  ;;  %v1090_v11 = vadd.f32 %v1068_v15, %v727_v6  ;;  %v730_v12 = vadd.f32 %v1041_v45, %v665_v5  ;;  %v863_v5 = vpop.permute.xlu0 %862 }
 0x10e   :  { %v1048_v8 = vpop.f32.mrb[12].mxu0  ;;  %v1003_v13 = vpop.f32.mrb[17].mxu1 }
 0x10f   :  { %v1049_v10 = vpop.f32.mrb[13].mxu0  ;;  %v1004_v20 = vadd.f32 %v1003_v13, %v1002_v9  ;;  %v1005_v24 = vpop.f32.mrb[18].mxu1  ;;  %v1094_v18 = vadd.f32 %v1457_v17, %v730_v12 }
 0x110   :  { %v1050_v14 = vadd.f32 %v1049_v10, %v1048_v8  ;;  %v1051_v16 = vpop.f32.mrb[14].mxu0  ;;  %v1006_v28 = vpop.f32.mrb[19].mxu1 }
 0x111   :  { %v1052_v27 = vpop.f32.mrb[15].mxu0  ;;  %v670_v29 = vadd.f32 %v1004_v20, %v273_v34  ;;  %v1007_v30 = vadd.f32 %v1006_v28, %v1005_v24  ;;  %v858_v61 = vpop.permute.xlu1 %857 }
 0x112   :  { %v1053_v19 = vadd.f32 %v1052_v27, %v1051_v16 }
 0x113   :  { %v673_v31 = vadd.f32 %v1007_v30, %v278_v33  ;;  %v735_v32 = vadd.f32 %v1044_v58, %v670_v29 }
 0x115   :  { %v1008_v37 = vpop.f32.mrb[20].mxu1  ;;  %v1100_v39 = vadd.f32 %v735_v32, %v1461_v22  ;;  %v738_v40 = vadd.f32 %v1047_v1, %v673_v31  ;;  %v868_v10 = vpop.permute.xlu1 %867 }
 0x116   :  { %v1084_v36 = vpop.f32.mrb[16].mxu0  ;;  %v1009_v41 = vpop.f32.mrb[21].mxu1 }
 0x117   :  { %v1091_v15 = vadd.f32 %v1090_v11, %v1084_v36  ;;  %v783_v38 = vpop.f32.mrb[17].mxu0  ;;  %v1010_v17 = vadd.f32 %v1009_v41, %v1008_v37  ;;  %v1011_v45 = vpop.f32.mrb[22].mxu1  ;;  %v1104_v47 = vadd.f32 %v738_v40, %v1465_v25 }
 0x118   :  { %v1093_v42 = vadd.f32 %v1092_v55, %v783_v38  ;;  %v1085_v43 = vpop.f32.mrb[18].mxu0  ;;  %v1012_v49 = vpop.f32.mrb[23].mxu1 }
 0x119   :  { %v872_v44 = vadd.f32 %v1091_v15, %v843_v35  ;;  %v1095_v46 = vadd.f32 %v1094_v18, %v1085_v43  ;;  %v786_v34 = vpop.f32.mrb[19].mxu0  ;;  %v678_v53 = vadd.f32 %v1010_v17, %v283_v51  ;;  %v1013_v56 = vadd.f32 %v1012_v49, %v1011_v45 }
 0x11a   :  { %v870_v33 = vadd.f32 %v1093_v42, %v833_v7  ;;  %v1097_v50 = vadd.f32 %v1096_v63, %v786_v34 }
 0x11b   :  { %v880_v52 = vmax.f32 %v872_v44, 0.0  ;;  %v873_v54 = vadd.f32 %v1095_v46, %v848_v26  ;;  %v681_v59 = vadd.f32 %v1013_v56, %v1467_v48  ;;  %v743_v60 = vadd.f32 %v1050_v14, %v678_v53 }
 0x11c   :  { %v878_v22 = vmax.f32 %v870_v33, 0.0  ;;  %v871_v58 = vadd.f32 %v1097_v50, %v838_v4 }
 0x11d   :  { %888 = vst [vmem:[%s1505_s6 + $0x10] sm:$0xff] %v880_v52  ;;  %v881_v55 = vmax.f32 %v873_v54, 0.0  ;;  %v1098_v62 = vadd.f32 %v1459_v21, %v743_v60  ;;  %v746_v0 = vadd.f32 %v1053_v19, %v681_v59 }
 0x11e   :  { %886 = vst [vmem:[%s1505_s6] sm:$0xff] %v878_v22  ;;  %v879_v25 = vmax.f32 %v871_v58, 0.0  ;;  %v1088_v51 = vpop.f32.mrb[20].mxu0 }
 0x11f   :  { %889 = vst [vmem:[%s1505_s6 + $0x18] sm:$0xff] %v881_v55  ;;  %v799_v63 = vpop.f32.mrb[21].mxu0  ;;  %v1099_v2 = vadd.f32 %v1098_v62, %v1088_v51  ;;  %v1102_v3 = vadd.f32 %v1463_v23, %v746_v0 }
 0x120   :  { %887 = vst [vmem:[%s1505_s6 + $0x8] sm:$0xff] %v879_v25  ;;  %v1101_v48 = vadd.f32 %v1100_v39, %v799_v63  ;;  %v1089_v1 = vpop.f32.mrb[22].mxu0 }
 0x121   :  { %v802_v4 = vpop.f32.mrb[23].mxu0  ;;  %v876_v8 = vadd.f32 %v1099_v2, %v863_v5  ;;  %v1103_v9 = vadd.f32 %v1102_v3, %v1089_v1 }
 0x122   :  { %v874_v6 = vadd.f32 %v1101_v48, %v853_v57  ;;  %v1105_v7 = vadd.f32 %v1104_v47, %v802_v4 }
 0x123   :  { %v884_v12 = vmax.f32 %v876_v8, 0.0  ;;  %v877_v13 = vadd.f32 %v1103_v9, %v868_v10 }
 0x124   :  { %v882_v11 = vmax.f32 %v874_v6, 0.0  ;;  %v875_v21 = vadd.f32 %v1105_v7, %v858_v61 }
 0x125   :  { %892 = vst [vmem:[%s1505_s6 + $0x30] sm:$0xff] %v884_v12  ;;  %v885_v23 = vmax.f32 %v877_v13, 0.0 }
 0x126   :  { %890 = vst [vmem:[%s1505_s6 + $0x20] sm:$0xff] %v882_v11  ;;  %v883_v14 = vmax.f32 %v875_v21, 0.0 }
 0x127   :  { %893 = vst [vmem:[%s1505_s6 + $0x38] sm:$0xff] %v885_v23 }
 0x128   :  { %891 = vst [vmem:[%s1505_s6 + $0x28] sm:$0xff] %v883_v14 }

</bundles_post_ra>
